<compile_context>
chip_gen: v7x
topology: tpu7x:2x2x1
jax: 0.10.0
libtpu: 0.0.40
codegen_flags: <defaults>
</compile_context>

<pallas_src>
import functools

import jax
import jax.numpy as jnp
from jax.experimental import pallas as pl
from jax.experimental.pallas import tpu as pltpu

EPS = 1e-5  # nn.BatchNorm3d default eps


def _residual_block_kernel(xpad_ref, mask_ref, w_ref, b_ref, gamma_ref,
                           beta_ref, o_ref, *, dhw, halo):
    # xpad_ref : (C, halo + M + halo) f32  channel-major input flattened over
    #            (n, d, h, w), with `halo` zero lanes on each side
    # mask_ref : (27, M) f32  per-tap {0,1} validity mask (the conv's zero pad)
    # w_ref    : (27, C, C) f32  w_ref[k, co, ci] = conv_w[co, ci, kd, kh, kw]
    # b_ref    : (C, 1) f32  conv bias
    # gamma_ref: (C, 1) f32  BN weight
    # beta_ref : (C, 1) f32  BN bias
    # o_ref    : (C, M) f32  lane-dense channel-major output
    D, H, W = dhw
    C, M = o_ref.shape

    # ---- 3x3x3 conv as 27 accumulating (C, C) @ (C, M) MXU matmuls ---------
    # Tap (kd, kh, kw) is a constant shift of the flattened spatial axis; the
    # per-tap mask zeroes positions whose shifted index left the valid d/h/w
    # range.  Everything stays lane-dense; the accumulator is only C vregs.
    conv = jnp.zeros((C, M), jnp.float32)
    for kd in range(3):
        for kh in range(3):
            for kw in range(3):
                k = kd * 9 + kh * 3 + kw
                delta = (kd - 1) * H * W + (kh - 1) * W + (kw - 1)
                win = xpad_ref[:, halo + delta:halo + delta + M]     # (C, M)
                win = win * mask_ref[k:k + 1, :]                     # zero pad
                conv = conv + jnp.dot(w_ref[k], win,
                                      preferred_element_type=jnp.float32)
    conv = conv + b_ref[...]

    # ---- BatchNorm3d, training mode (biased batch variance) ----------------
    # TODO(synk): nn.BatchNorm3d in training also updates running_mean /
    # running_var; that side effect is not emitted here.
    mean = jnp.mean(conv, axis=1, keepdims=True)                     # (C, 1)
    centered = conv - mean
    var = jnp.mean(centered * centered, axis=1, keepdims=True)       # (C, 1)
    scale = gamma_ref[...] * jax.lax.rsqrt(var + EPS)                # g*inv_std
    normed = centered * scale + beta_ref[...]

    # ---- skip connection + ReLU (residual = aligned center slice, f32) -----
    x_cm = xpad_ref[:, halo:halo + M]                                 # (C, M)
    o_ref[...] = jnp.maximum(x_cm + normed, 0.0)


def residual_block(x_ncdhw, conv_w, conv_b, bn_gamma, bn_beta):
    """x_ncdhw: (N, C, D, H, W) like PyTorch.  conv_w: (Cout, Cin, 3, 3, 3)."""
    N, C, D, H, W = x_ncdhw.shape
    M = N * D * H * W
    # halo >= largest flattened tap offset (H*W + W + 1), rounded to 128 lanes
    halo = ((H * W + W + 1 + 127) // 128) * 128

    # ---- glue (plain JAX): layout only, no compute --------------------------
    x_cm = jnp.transpose(x_ncdhw, (1, 0, 2, 3, 4)).reshape(C, M)
    x_cm = x_cm.astype(jnp.float32)
    xpad = jnp.pad(x_cm, ((0, 0), (halo, halo)))                     # (C, M+2h)

    # per-tap validity masks (shape-only constants), shape (27, M)
    idx = jnp.arange(M)
    d_idx = (idx // (H * W)) % D
    h_idx = (idx // W) % H
    w_idx = idx % W
    masks = []
    for kd in range(3):
        for kh in range(3):
            for kw in range(3):
                ok = ((d_idx + (kd - 1) >= 0) & (d_idx + (kd - 1) < D) &
                      (h_idx + (kh - 1) >= 0) & (h_idx + (kh - 1) < H) &
                      (w_idx + (kw - 1) >= 0) & (w_idx + (kw - 1) < W))
                masks.append(ok)
    mask = jnp.stack(masks).astype(jnp.float32)                      # (27, M)

    # tap-major channel-square weights: w_taps[k, co, ci]
    w_taps = jnp.transpose(conv_w, (2, 3, 4, 0, 1)).reshape(27, C, C)
    w_taps = w_taps.astype(jnp.float32)
    b = conv_b.reshape(C, 1).astype(jnp.float32)
    g = bn_gamma.reshape(C, 1).astype(jnp.float32)
    bt = bn_beta.reshape(C, 1).astype(jnp.float32)

    kernel = functools.partial(_residual_block_kernel, dhw=(D, H, W), halo=halo)

    # TODO(synk): for large M, tile the lane axis with a "parallel" grid axis
    # (dimension_semantics) and split BN into a stats pass + apply pass,
    # sizing tiles for v7x's 64 MiB VMEM; at this toy size the whole problem
    # (<0.5 MiB) fits in VMEM, so a single invocation is simplest and fastest.
    out_cm = pl.pallas_call(
        kernel,
        out_shape=jax.ShapeDtypeStruct((C, M), jnp.float32),
        in_specs=[pl.BlockSpec(memory_space=pltpu.MemorySpace.VMEM)] * 6,
        out_specs=pl.BlockSpec(memory_space=pltpu.MemorySpace.VMEM),
    )(xpad, mask, w_taps, b, g, bt)

    # (C, M) -> (N, C, D, H, W)
    return jnp.transpose(out_cm.reshape(C, N, D, H, W), (1, 0, 2, 3, 4))


def residual_block_reference(x_ncdhw, conv_w, conv_b, bn_gamma, bn_beta):
    """Pure-JAX reference (for correctness check)."""
    res = jax.lax.conv_general_dilated(
        x_ncdhw.astype(jnp.float32), conv_w.astype(jnp.float32),
        window_strides=(1, 1, 1), padding=((1, 1), (1, 1), (1, 1)),
        dimension_numbers=("NCDHW", "OIDHW", "NCDHW"))
    res = res + conv_b.reshape(1, -1, 1, 1, 1)
    mean = jnp.mean(res, axis=(0, 2, 3, 4), keepdims=True)
    var = jnp.mean((res - mean) ** 2, axis=(0, 2, 3, 4), keepdims=True)
    res = (res - mean) * jax.lax.rsqrt(var + EPS)
    res = res * bn_gamma.reshape(1, -1, 1, 1, 1) + bn_beta.reshape(1, -1, 1, 1, 1)
    return jnp.maximum(x_ncdhw + res, 0.0)


if __name__ == "__main__":
    key = jax.random.PRNGKey(0)
    k_x, k_w, k_b, k_g, k_bt = jax.random.split(key, 5)

    N, C, D, H, W = 2, 8, 8, 8, 8  # filters_out = 8
    x = jax.random.normal(k_x, (N, C, D, H, W), dtype=jnp.float32)

    # Deterministic synthetic parameters (shapes from nn.Conv3d / nn.BatchNorm3d).
    fan_in = C * 3 * 3 * 3
    bound = 1.0 / (fan_in ** 0.5)
    conv_w = jax.random.uniform(k_w, (C, C, 3, 3, 3), jnp.float32, -bound, bound)
    conv_b = jax.random.uniform(k_b, (C,), jnp.float32, -bound, bound)
    bn_gamma = 1.0 + 0.1 * jax.random.normal(k_g, (C,), jnp.float32)
    bn_beta = 0.1 * jax.random.normal(k_bt, (C,), jnp.float32)

    out = residual_block(x, conv_w, conv_b, bn_gamma, bn_beta)
    out = jax.block_until_ready(out)

    ref = residual_block_reference(x, conv_w, conv_b, bn_gamma, bn_beta)
    max_err = float(jnp.max(jnp.abs(out - ref)))
    assert out.shape == (N, C, D, H, W)
    assert max_err < 5e-3, f"max abs error {max_err}"

    print("KERNEL_OK")
</pallas_src>

<mosaic_0001>
module attributes {stable_mosaic.version = 11 : i64} {
  func.func @_residual_block_kernel(%arg0: memref<8x1280xf32, #tpu.memory_space<vmem>>, %arg1: memref<27x1024xf32, #tpu.memory_space<vmem>>, %arg2: memref<27x8x8xf32, #tpu.memory_space<vmem>>, %arg3: memref<8x1xf32, #tpu.memory_space<vmem>>, %arg4: memref<8x1xf32, #tpu.memory_space<vmem>>, %arg5: memref<8x1xf32, #tpu.memory_space<vmem>>, %arg6: memref<8x1024xf32, #tpu.memory_space<vmem>>) attributes {dimension_semantics = [], scalar_prefetch = 0 : i64, scratch_operands = 0 : i64, tpu.core_type = #tpu.core_type<tc>} {
    %cst = arith.constant 0.000000e+00 : f32
    %0 = vector.broadcast %cst : f32 to vector<8x1024xf32>
    %c0 = arith.constant 0 : index
    %c55 = arith.constant 55 : index
    %1 = vector.load %arg0[%c0, %c55] : memref<8x1280xf32, #tpu.memory_space<vmem>>, vector<8x1024xf32>
    %c0_0 = arith.constant 0 : index
    %c0_1 = arith.constant 0 : index
    %2 = vector.load %arg1[%c0_0, %c0_1] : memref<27x1024xf32, #tpu.memory_space<vmem>>, vector<1x1024xf32>
    %3 = vector.broadcast %2 : vector<1x1024xf32> to vector<8x1024xf32>
    %4 = arith.mulf %1, %3 : vector<8x1024xf32>
    %c0_2 = arith.constant 0 : index
    %c0_3 = arith.constant 0 : index
    %c0_4 = arith.constant 0 : index
    %5 = vector.load %arg2[%c0_2, %c0_3, %c0_4] : memref<27x8x8xf32, #tpu.memory_space<vmem>>, vector<1x8x8xf32>
    %6 = vector.shape_cast %5 : vector<1x8x8xf32> to vector<8x8xf32>
    %cst_5 = arith.constant dense<0.000000e+00> : vector<8x1024xf32>
    %7 = tpu.matmul %6, %4, %cst_5 {dimension_numbers = #tpu.dot_dimension_numbers<[1], [0], [0], [1], [0, 0, 1, 1], [], []>} : vector<8x8xf32>, vector<8x1024xf32>, vector<8x1024xf32> -> vector<8x1024xf32>
    %8 = arith.addf %0, %7 : vector<8x1024xf32>
    %c0_6 = arith.constant 0 : index
    %c56 = arith.constant 56 : index
    %9 = vector.load %arg0[%c0_6, %c56] : memref<8x1280xf32, #tpu.memory_space<vmem>>, vector<8x1024xf32>
    %c1 = arith.constant 1 : index
    %c0_7 = arith.constant 0 : index
    %10 = vector.load %arg1[%c1, %c0_7] : memref<27x1024xf32, #tpu.memory_space<vmem>>, vector<1x1024xf32>
    %11 = vector.broadcast %10 : vector<1x1024xf32> to vector<8x1024xf32>
    %12 = arith.mulf %9, %11 : vector<8x1024xf32>
    %c1_8 = arith.constant 1 : index
    %c0_9 = arith.constant 0 : index
    %c0_10 = arith.constant 0 : index
    %13 = vector.load %arg2[%c1_8, %c0_9, %c0_10] : memref<27x8x8xf32, #tpu.memory_space<vmem>>, vector<1x8x8xf32>
    %14 = vector.shape_cast %13 : vector<1x8x8xf32> to vector<8x8xf32>
    %cst_11 = arith.constant dense<0.000000e+00> : vector<8x1024xf32>
    %15 = tpu.matmul %14, %12, %cst_11 {dimension_numbers = #tpu.dot_dimension_numbers<[1], [0], [0], [1], [0, 0, 1, 1], [], []>} : vector<8x8xf32>, vector<8x1024xf32>, vector<8x1024xf32> -> vector<8x1024xf32>
    %16 = arith.addf %8, %15 : vector<8x1024xf32>
    %c0_12 = arith.constant 0 : index
    %c57 = arith.constant 57 : index
    %17 = vector.load %arg0[%c0_12, %c57] : memref<8x1280xf32, #tpu.memory_space<vmem>>, vector<8x1024xf32>
    %c2 = arith.constant 2 : index
    %c0_13 = arith.constant 0 : index
    %18 = vector.load %arg1[%c2, %c0_13] : memref<27x1024xf32, #tpu.memory_space<vmem>>, vector<1x1024xf32>
    %19 = vector.broadcast %18 : vector<1x1024xf32> to vector<8x1024xf32>
    %20 = arith.mulf %17, %19 : vector<8x1024xf32>
    %c2_14 = arith.constant 2 : index
    %c0_15 = arith.constant 0 : index
    %c0_16 = arith.constant 0 : index
    %21 = vector.load %arg2[%c2_14, %c0_15, %c0_16] : memref<27x8x8xf32, #tpu.memory_space<vmem>>, vector<1x8x8xf32>
    %22 = vector.shape_cast %21 : vector<1x8x8xf32> to vector<8x8xf32>
    %cst_17 = arith.constant dense<0.000000e+00> : vector<8x1024xf32>
    %23 = tpu.matmul %22, %20, %cst_17 {dimension_numbers = #tpu.dot_dimension_numbers<[1], [0], [0], [1], [0, 0, 1, 1], [], []>} : vector<8x8xf32>, vector<8x1024xf32>, vector<8x1024xf32> -> vector<8x1024xf32>
    %24 = arith.addf %16, %23 : vector<8x1024xf32>
    %c0_18 = arith.constant 0 : index
    %c63 = arith.constant 63 : index
    %25 = vector.load %arg0[%c0_18, %c63] : memref<8x1280xf32, #tpu.memory_space<vmem>>, vector<8x1024xf32>
    %c3 = arith.constant 3 : index
    %c0_19 = arith.constant 0 : index
    %26 = vector.load %arg1[%c3, %c0_19] : memref<27x1024xf32, #tpu.memory_space<vmem>>, vector<1x1024xf32>
    %27 = vector.broadcast %26 : vector<1x1024xf32> to vector<8x1024xf32>
    %28 = arith.mulf %25, %27 : vector<8x1024xf32>
    %c3_20 = arith.constant 3 : index
    %c0_21 = arith.constant 0 : index
    %c0_22 = arith.constant 0 : index
    %29 = vector.load %arg2[%c3_20, %c0_21, %c0_22] : memref<27x8x8xf32, #tpu.memory_space<vmem>>, vector<1x8x8xf32>
    %30 = vector.shape_cast %29 : vector<1x8x8xf32> to vector<8x8xf32>
    %cst_23 = arith.constant dense<0.000000e+00> : vector<8x1024xf32>
    %31 = tpu.matmul %30, %28, %cst_23 {dimension_numbers = #tpu.dot_dimension_numbers<[1], [0], [0], [1], [0, 0, 1, 1], [], []>} : vector<8x8xf32>, vector<8x1024xf32>, vector<8x1024xf32> -> vector<8x1024xf32>
    %32 = arith.addf %24, %31 : vector<8x1024xf32>
    %c0_24 = arith.constant 0 : index
    %c64 = arith.constant 64 : index
    %33 = vector.load %arg0[%c0_24, %c64] : memref<8x1280xf32, #tpu.memory_space<vmem>>, vector<8x1024xf32>
    %c4 = arith.constant 4 : index
    %c0_25 = arith.constant 0 : index
    %34 = vector.load %arg1[%c4, %c0_25] : memref<27x1024xf32, #tpu.memory_space<vmem>>, vector<1x1024xf32>
    %35 = vector.broadcast %34 : vector<1x1024xf32> to vector<8x1024xf32>
    %36 = arith.mulf %33, %35 : vector<8x1024xf32>
    %c4_26 = arith.constant 4 : index
    %c0_27 = arith.constant 0 : index
    %c0_28 = arith.constant 0 : index
    %37 = vector.load %arg2[%c4_26, %c0_27, %c0_28] : memref<27x8x8xf32, #tpu.memory_space<vmem>>, vector<1x8x8xf32>
    %38 = vector.shape_cast %37 : vector<1x8x8xf32> to vector<8x8xf32>
    %cst_29 = arith.constant dense<0.000000e+00> : vector<8x1024xf32>
    %39 = tpu.matmul %38, %36, %cst_29 {dimension_numbers = #tpu.dot_dimension_numbers<[1], [0], [0], [1], [0, 0, 1, 1], [], []>} : vector<8x8xf32>, vector<8x1024xf32>, vector<8x1024xf32> -> vector<8x1024xf32>
    %40 = arith.addf %32, %39 : vector<8x1024xf32>
    %c0_30 = arith.constant 0 : index
    %c65 = arith.constant 65 : index
    %41 = vector.load %arg0[%c0_30, %c65] : memref<8x1280xf32, #tpu.memory_space<vmem>>, vector<8x1024xf32>
    %c5 = arith.constant 5 : index
    %c0_31 = arith.constant 0 : index
    %42 = vector.load %arg1[%c5, %c0_31] : memref<27x1024xf32, #tpu.memory_space<vmem>>, vector<1x1024xf32>
    %43 = vector.broadcast %42 : vector<1x1024xf32> to vector<8x1024xf32>
    %44 = arith.mulf %41, %43 : vector<8x1024xf32>
    %c5_32 = arith.constant 5 : index
    %c0_33 = arith.constant 0 : index
    %c0_34 = arith.constant 0 : index
    %45 = vector.load %arg2[%c5_32, %c0_33, %c0_34] : memref<27x8x8xf32, #tpu.memory_space<vmem>>, vector<1x8x8xf32>
    %46 = vector.shape_cast %45 : vector<1x8x8xf32> to vector<8x8xf32>
    %cst_35 = arith.constant dense<0.000000e+00> : vector<8x1024xf32>
    %47 = tpu.matmul %46, %44, %cst_35 {dimension_numbers = #tpu.dot_dimension_numbers<[1], [0], [0], [1], [0, 0, 1, 1], [], []>} : vector<8x8xf32>, vector<8x1024xf32>, vector<8x1024xf32> -> vector<8x1024xf32>
    %48 = arith.addf %40, %47 : vector<8x1024xf32>
    %c0_36 = arith.constant 0 : index
    %c71 = arith.constant 71 : index
    %49 = vector.load %arg0[%c0_36, %c71] : memref<8x1280xf32, #tpu.memory_space<vmem>>, vector<8x1024xf32>
    %c6 = arith.constant 6 : index
    %c0_37 = arith.constant 0 : index
    %50 = vector.load %arg1[%c6, %c0_37] : memref<27x1024xf32, #tpu.memory_space<vmem>>, vector<1x1024xf32>
    %51 = vector.broadcast %50 : vector<1x1024xf32> to vector<8x1024xf32>
    %52 = arith.mulf %49, %51 : vector<8x1024xf32>
    %c6_38 = arith.constant 6 : index
    %c0_39 = arith.constant 0 : index
    %c0_40 = arith.constant 0 : index
    %53 = vector.load %arg2[%c6_38, %c0_39, %c0_40] : memref<27x8x8xf32, #tpu.memory_space<vmem>>, vector<1x8x8xf32>
    %54 = vector.shape_cast %53 : vector<1x8x8xf32> to vector<8x8xf32>
    %cst_41 = arith.constant dense<0.000000e+00> : vector<8x1024xf32>
    %55 = tpu.matmul %54, %52, %cst_41 {dimension_numbers = #tpu.dot_dimension_numbers<[1], [0], [0], [1], [0, 0, 1, 1], [], []>} : vector<8x8xf32>, vector<8x1024xf32>, vector<8x1024xf32> -> vector<8x1024xf32>
    %56 = arith.addf %48, %55 : vector<8x1024xf32>
    %c0_42 = arith.constant 0 : index
    %c72 = arith.constant 72 : index
    %57 = vector.load %arg0[%c0_42, %c72] : memref<8x1280xf32, #tpu.memory_space<vmem>>, vector<8x1024xf32>
    %c7 = arith.constant 7 : index
    %c0_43 = arith.constant 0 : index
    %58 = vector.load %arg1[%c7, %c0_43] : memref<27x1024xf32, #tpu.memory_space<vmem>>, vector<1x1024xf32>
    %59 = vector.broadcast %58 : vector<1x1024xf32> to vector<8x1024xf32>
    %60 = arith.mulf %57, %59 : vector<8x1024xf32>
    %c7_44 = arith.constant 7 : index
    %c0_45 = arith.constant 0 : index
    %c0_46 = arith.constant 0 : index
    %61 = vector.load %arg2[%c7_44, %c0_45, %c0_46] : memref<27x8x8xf32, #tpu.memory_space<vmem>>, vector<1x8x8xf32>
    %62 = vector.shape_cast %61 : vector<1x8x8xf32> to vector<8x8xf32>
    %cst_47 = arith.constant dense<0.000000e+00> : vector<8x1024xf32>
    %63 = tpu.matmul %62, %60, %cst_47 {dimension_numbers = #tpu.dot_dimension_numbers<[1], [0], [0], [1], [0, 0, 1, 1], [], []>} : vector<8x8xf32>, vector<8x1024xf32>, vector<8x1024xf32> -> vector<8x1024xf32>
    %64 = arith.addf %56, %63 : vector<8x1024xf32>
    %c0_48 = arith.constant 0 : index
    %c73 = arith.constant 73 : index
    %65 = vector.load %arg0[%c0_48, %c73] : memref<8x1280xf32, #tpu.memory_space<vmem>>, vector<8x1024xf32>
    %c8 = arith.constant 8 : index
    %c0_49 = arith.constant 0 : index
    %66 = vector.load %arg1[%c8, %c0_49] : memref<27x1024xf32, #tpu.memory_space<vmem>>, vector<1x1024xf32>
    %67 = vector.broadcast %66 : vector<1x1024xf32> to vector<8x1024xf32>
    %68 = arith.mulf %65, %67 : vector<8x1024xf32>
    %c8_50 = arith.constant 8 : index
    %c0_51 = arith.constant 0 : index
    %c0_52 = arith.constant 0 : index
    %69 = vector.load %arg2[%c8_50, %c0_51, %c0_52] : memref<27x8x8xf32, #tpu.memory_space<vmem>>, vector<1x8x8xf32>
    %70 = vector.shape_cast %69 : vector<1x8x8xf32> to vector<8x8xf32>
    %cst_53 = arith.constant dense<0.000000e+00> : vector<8x1024xf32>
    %71 = tpu.matmul %70, %68, %cst_53 {dimension_numbers = #tpu.dot_dimension_numbers<[1], [0], [0], [1], [0, 0, 1, 1], [], []>} : vector<8x8xf32>, vector<8x1024xf32>, vector<8x1024xf32> -> vector<8x1024xf32>
    %72 = arith.addf %64, %71 : vector<8x1024xf32>
    %c0_54 = arith.constant 0 : index
    %c119 = arith.constant 119 : index
    %73 = vector.load %arg0[%c0_54, %c119] : memref<8x1280xf32, #tpu.memory_space<vmem>>, vector<8x1024xf32>
    %c9 = arith.constant 9 : index
    %c0_55 = arith.constant 0 : index
    %74 = vector.load %arg1[%c9, %c0_55] : memref<27x1024xf32, #tpu.memory_space<vmem>>, vector<1x1024xf32>
    %75 = vector.broadcast %74 : vector<1x1024xf32> to vector<8x1024xf32>
    %76 = arith.mulf %73, %75 : vector<8x1024xf32>
    %c9_56 = arith.constant 9 : index
    %c0_57 = arith.constant 0 : index
    %c0_58 = arith.constant 0 : index
    %77 = vector.load %arg2[%c9_56, %c0_57, %c0_58] : memref<27x8x8xf32, #tpu.memory_space<vmem>>, vector<1x8x8xf32>
    %78 = vector.shape_cast %77 : vector<1x8x8xf32> to vector<8x8xf32>
    %cst_59 = arith.constant dense<0.000000e+00> : vector<8x1024xf32>
    %79 = tpu.matmul %78, %76, %cst_59 {dimension_numbers = #tpu.dot_dimension_numbers<[1], [0], [0], [1], [0, 0, 1, 1], [], []>} : vector<8x8xf32>, vector<8x1024xf32>, vector<8x1024xf32> -> vector<8x1024xf32>
    %80 = arith.addf %72, %79 : vector<8x1024xf32>
    %c0_60 = arith.constant 0 : index
    %c120 = arith.constant 120 : index
    %81 = vector.load %arg0[%c0_60, %c120] : memref<8x1280xf32, #tpu.memory_space<vmem>>, vector<8x1024xf32>
    %c10 = arith.constant 10 : index
    %c0_61 = arith.constant 0 : index
    %82 = vector.load %arg1[%c10, %c0_61] : memref<27x1024xf32, #tpu.memory_space<vmem>>, vector<1x1024xf32>
    %83 = vector.broadcast %82 : vector<1x1024xf32> to vector<8x1024xf32>
    %84 = arith.mulf %81, %83 : vector<8x1024xf32>
    %c10_62 = arith.constant 10 : index
    %c0_63 = arith.constant 0 : index
    %c0_64 = arith.constant 0 : index
    %85 = vector.load %arg2[%c10_62, %c0_63, %c0_64] : memref<27x8x8xf32, #tpu.memory_space<vmem>>, vector<1x8x8xf32>
    %86 = vector.shape_cast %85 : vector<1x8x8xf32> to vector<8x8xf32>
    %cst_65 = arith.constant dense<0.000000e+00> : vector<8x1024xf32>
    %87 = tpu.matmul %86, %84, %cst_65 {dimension_numbers = #tpu.dot_dimension_numbers<[1], [0], [0], [1], [0, 0, 1, 1], [], []>} : vector<8x8xf32>, vector<8x1024xf32>, vector<8x1024xf32> -> vector<8x1024xf32>
    %88 = arith.addf %80, %87 : vector<8x1024xf32>
    %c0_66 = arith.constant 0 : index
    %c121 = arith.constant 121 : index
    %89 = vector.load %arg0[%c0_66, %c121] : memref<8x1280xf32, #tpu.memory_space<vmem>>, vector<8x1024xf32>
    %c11 = arith.constant 11 : index
    %c0_67 = arith.constant 0 : index
    %90 = vector.load %arg1[%c11, %c0_67] : memref<27x1024xf32, #tpu.memory_space<vmem>>, vector<1x1024xf32>
    %91 = vector.broadcast %90 : vector<1x1024xf32> to vector<8x1024xf32>
    %92 = arith.mulf %89, %91 : vector<8x1024xf32>
    %c11_68 = arith.constant 11 : index
    %c0_69 = arith.constant 0 : index
    %c0_70 = arith.constant 0 : index
    %93 = vector.load %arg2[%c11_68, %c0_69, %c0_70] : memref<27x8x8xf32, #tpu.memory_space<vmem>>, vector<1x8x8xf32>
    %94 = vector.shape_cast %93 : vector<1x8x8xf32> to vector<8x8xf32>
    %cst_71 = arith.constant dense<0.000000e+00> : vector<8x1024xf32>
    %95 = tpu.matmul %94, %92, %cst_71 {dimension_numbers = #tpu.dot_dimension_numbers<[1], [0], [0], [1], [0, 0, 1, 1], [], []>} : vector<8x8xf32>, vector<8x1024xf32>, vector<8x1024xf32> -> vector<8x1024xf32>
    %96 = arith.addf %88, %95 : vector<8x1024xf32>
    %c0_72 = arith.constant 0 : index
    %c127 = arith.constant 127 : index
    %97 = vector.load %arg0[%c0_72, %c127] : memref<8x1280xf32, #tpu.memory_space<vmem>>, vector<8x1024xf32>
    %c12 = arith.constant 12 : index
    %c0_73 = arith.constant 0 : index
    %98 = vector.load %arg1[%c12, %c0_73] : memref<27x1024xf32, #tpu.memory_space<vmem>>, vector<1x1024xf32>
    %99 = vector.broadcast %98 : vector<1x1024xf32> to vector<8x1024xf32>
    %100 = arith.mulf %97, %99 : vector<8x1024xf32>
    %c12_74 = arith.constant 12 : index
    %c0_75 = arith.constant 0 : index
    %c0_76 = arith.constant 0 : index
    %101 = vector.load %arg2[%c12_74, %c0_75, %c0_76] : memref<27x8x8xf32, #tpu.memory_space<vmem>>, vector<1x8x8xf32>
    %102 = vector.shape_cast %101 : vector<1x8x8xf32> to vector<8x8xf32>
    %cst_77 = arith.constant dense<0.000000e+00> : vector<8x1024xf32>
    %103 = tpu.matmul %102, %100, %cst_77 {dimension_numbers = #tpu.dot_dimension_numbers<[1], [0], [0], [1], [0, 0, 1, 1], [], []>} : vector<8x8xf32>, vector<8x1024xf32>, vector<8x1024xf32> -> vector<8x1024xf32>
    %104 = arith.addf %96, %103 : vector<8x1024xf32>
    %c0_78 = arith.constant 0 : index
    %c128 = arith.constant 128 : index
    %105 = vector.load %arg0[%c0_78, %c128] : memref<8x1280xf32, #tpu.memory_space<vmem>>, vector<8x1024xf32>
    %c13 = arith.constant 13 : index
    %c0_79 = arith.constant 0 : index
    %106 = vector.load %arg1[%c13, %c0_79] : memref<27x1024xf32, #tpu.memory_space<vmem>>, vector<1x1024xf32>
    %107 = vector.broadcast %106 : vector<1x1024xf32> to vector<8x1024xf32>
    %108 = arith.mulf %105, %107 : vector<8x1024xf32>
    %c13_80 = arith.constant 13 : index
    %c0_81 = arith.constant 0 : index
    %c0_82 = arith.constant 0 : index
    %109 = vector.load %arg2[%c13_80, %c0_81, %c0_82] : memref<27x8x8xf32, #tpu.memory_space<vmem>>, vector<1x8x8xf32>
    %110 = vector.shape_cast %109 : vector<1x8x8xf32> to vector<8x8xf32>
    %cst_83 = arith.constant dense<0.000000e+00> : vector<8x1024xf32>
    %111 = tpu.matmul %110, %108, %cst_83 {dimension_numbers = #tpu.dot_dimension_numbers<[1], [0], [0], [1], [0, 0, 1, 1], [], []>} : vector<8x8xf32>, vector<8x1024xf32>, vector<8x1024xf32> -> vector<8x1024xf32>
    %112 = arith.addf %104, %111 : vector<8x1024xf32>
    %c0_84 = arith.constant 0 : index
    %c129 = arith.constant 129 : index
    %113 = vector.load %arg0[%c0_84, %c129] : memref<8x1280xf32, #tpu.memory_space<vmem>>, vector<8x1024xf32>
    %c14 = arith.constant 14 : index
    %c0_85 = arith.constant 0 : index
    %114 = vector.load %arg1[%c14, %c0_85] : memref<27x1024xf32, #tpu.memory_space<vmem>>, vector<1x1024xf32>
    %115 = vector.broadcast %114 : vector<1x1024xf32> to vector<8x1024xf32>
    %116 = arith.mulf %113, %115 : vector<8x1024xf32>
    %c14_86 = arith.constant 14 : index
    %c0_87 = arith.constant 0 : index
    %c0_88 = arith.constant 0 : index
    %117 = vector.load %arg2[%c14_86, %c0_87, %c0_88] : memref<27x8x8xf32, #tpu.memory_space<vmem>>, vector<1x8x8xf32>
    %118 = vector.shape_cast %117 : vector<1x8x8xf32> to vector<8x8xf32>
    %cst_89 = arith.constant dense<0.000000e+00> : vector<8x1024xf32>
    %119 = tpu.matmul %118, %116, %cst_89 {dimension_numbers = #tpu.dot_dimension_numbers<[1], [0], [0], [1], [0, 0, 1, 1], [], []>} : vector<8x8xf32>, vector<8x1024xf32>, vector<8x1024xf32> -> vector<8x1024xf32>
    %120 = arith.addf %112, %119 : vector<8x1024xf32>
    %c0_90 = arith.constant 0 : index
    %c135 = arith.constant 135 : index
    %121 = vector.load %arg0[%c0_90, %c135] : memref<8x1280xf32, #tpu.memory_space<vmem>>, vector<8x1024xf32>
    %c15 = arith.constant 15 : index
    %c0_91 = arith.constant 0 : index
    %122 = vector.load %arg1[%c15, %c0_91] : memref<27x1024xf32, #tpu.memory_space<vmem>>, vector<1x1024xf32>
    %123 = vector.broadcast %122 : vector<1x1024xf32> to vector<8x1024xf32>
    %124 = arith.mulf %121, %123 : vector<8x1024xf32>
    %c15_92 = arith.constant 15 : index
    %c0_93 = arith.constant 0 : index
    %c0_94 = arith.constant 0 : index
    %125 = vector.load %arg2[%c15_92, %c0_93, %c0_94] : memref<27x8x8xf32, #tpu.memory_space<vmem>>, vector<1x8x8xf32>
    %126 = vector.shape_cast %125 : vector<1x8x8xf32> to vector<8x8xf32>
    %cst_95 = arith.constant dense<0.000000e+00> : vector<8x1024xf32>
    %127 = tpu.matmul %126, %124, %cst_95 {dimension_numbers = #tpu.dot_dimension_numbers<[1], [0], [0], [1], [0, 0, 1, 1], [], []>} : vector<8x8xf32>, vector<8x1024xf32>, vector<8x1024xf32> -> vector<8x1024xf32>
    %128 = arith.addf %120, %127 : vector<8x1024xf32>
    %c0_96 = arith.constant 0 : index
    %c136 = arith.constant 136 : index
    %129 = vector.load %arg0[%c0_96, %c136] : memref<8x1280xf32, #tpu.memory_space<vmem>>, vector<8x1024xf32>
    %c16 = arith.constant 16 : index
    %c0_97 = arith.constant 0 : index
    %130 = vector.load %arg1[%c16, %c0_97] : memref<27x1024xf32, #tpu.memory_space<vmem>>, vector<1x1024xf32>
    %131 = vector.broadcast %130 : vector<1x1024xf32> to vector<8x1024xf32>
    %132 = arith.mulf %129, %131 : vector<8x1024xf32>
    %c16_98 = arith.constant 16 : index
    %c0_99 = arith.constant 0 : index
    %c0_100 = arith.constant 0 : index
    %133 = vector.load %arg2[%c16_98, %c0_99, %c0_100] : memref<27x8x8xf32, #tpu.memory_space<vmem>>, vector<1x8x8xf32>
    %134 = vector.shape_cast %133 : vector<1x8x8xf32> to vector<8x8xf32>
    %cst_101 = arith.constant dense<0.000000e+00> : vector<8x1024xf32>
    %135 = tpu.matmul %134, %132, %cst_101 {dimension_numbers = #tpu.dot_dimension_numbers<[1], [0], [0], [1], [0, 0, 1, 1], [], []>} : vector<8x8xf32>, vector<8x1024xf32>, vector<8x1024xf32> -> vector<8x1024xf32>
    %136 = arith.addf %128, %135 : vector<8x1024xf32>
    %c0_102 = arith.constant 0 : index
    %c137 = arith.constant 137 : index
    %137 = vector.load %arg0[%c0_102, %c137] : memref<8x1280xf32, #tpu.memory_space<vmem>>, vector<8x1024xf32>
    %c17 = arith.constant 17 : index
    %c0_103 = arith.constant 0 : index
    %138 = vector.load %arg1[%c17, %c0_103] : memref<27x1024xf32, #tpu.memory_space<vmem>>, vector<1x1024xf32>
    %139 = vector.broadcast %138 : vector<1x1024xf32> to vector<8x1024xf32>
    %140 = arith.mulf %137, %139 : vector<8x1024xf32>
    %c17_104 = arith.constant 17 : index
    %c0_105 = arith.constant 0 : index
    %c0_106 = arith.constant 0 : index
    %141 = vector.load %arg2[%c17_104, %c0_105, %c0_106] : memref<27x8x8xf32, #tpu.memory_space<vmem>>, vector<1x8x8xf32>
    %142 = vector.shape_cast %141 : vector<1x8x8xf32> to vector<8x8xf32>
    %cst_107 = arith.constant dense<0.000000e+00> : vector<8x1024xf32>
    %143 = tpu.matmul %142, %140, %cst_107 {dimension_numbers = #tpu.dot_dimension_numbers<[1], [0], [0], [1], [0, 0, 1, 1], [], []>} : vector<8x8xf32>, vector<8x1024xf32>, vector<8x1024xf32> -> vector<8x1024xf32>
    %144 = arith.addf %136, %143 : vector<8x1024xf32>
    %c0_108 = arith.constant 0 : index
    %c183 = arith.constant 183 : index
    %145 = vector.load %arg0[%c0_108, %c183] : memref<8x1280xf32, #tpu.memory_space<vmem>>, vector<8x1024xf32>
    %c18 = arith.constant 18 : index
    %c0_109 = arith.constant 0 : index
    %146 = vector.load %arg1[%c18, %c0_109] : memref<27x1024xf32, #tpu.memory_space<vmem>>, vector<1x1024xf32>
    %147 = vector.broadcast %146 : vector<1x1024xf32> to vector<8x1024xf32>
    %148 = arith.mulf %145, %147 : vector<8x1024xf32>
    %c18_110 = arith.constant 18 : index
    %c0_111 = arith.constant 0 : index
    %c0_112 = arith.constant 0 : index
    %149 = vector.load %arg2[%c18_110, %c0_111, %c0_112] : memref<27x8x8xf32, #tpu.memory_space<vmem>>, vector<1x8x8xf32>
    %150 = vector.shape_cast %149 : vector<1x8x8xf32> to vector<8x8xf32>
    %cst_113 = arith.constant dense<0.000000e+00> : vector<8x1024xf32>
    %151 = tpu.matmul %150, %148, %cst_113 {dimension_numbers = #tpu.dot_dimension_numbers<[1], [0], [0], [1], [0, 0, 1, 1], [], []>} : vector<8x8xf32>, vector<8x1024xf32>, vector<8x1024xf32> -> vector<8x1024xf32>
    %152 = arith.addf %144, %151 : vector<8x1024xf32>
    %c0_114 = arith.constant 0 : index
    %c184 = arith.constant 184 : index
    %153 = vector.load %arg0[%c0_114, %c184] : memref<8x1280xf32, #tpu.memory_space<vmem>>, vector<8x1024xf32>
    %c19 = arith.constant 19 : index
    %c0_115 = arith.constant 0 : index
    %154 = vector.load %arg1[%c19, %c0_115] : memref<27x1024xf32, #tpu.memory_space<vmem>>, vector<1x1024xf32>
    %155 = vector.broadcast %154 : vector<1x1024xf32> to vector<8x1024xf32>
    %156 = arith.mulf %153, %155 : vector<8x1024xf32>
    %c19_116 = arith.constant 19 : index
    %c0_117 = arith.constant 0 : index
    %c0_118 = arith.constant 0 : index
    %157 = vector.load %arg2[%c19_116, %c0_117, %c0_118] : memref<27x8x8xf32, #tpu.memory_space<vmem>>, vector<1x8x8xf32>
    %158 = vector.shape_cast %157 : vector<1x8x8xf32> to vector<8x8xf32>
    %cst_119 = arith.constant dense<0.000000e+00> : vector<8x1024xf32>
    %159 = tpu.matmul %158, %156, %cst_119 {dimension_numbers = #tpu.dot_dimension_numbers<[1], [0], [0], [1], [0, 0, 1, 1], [], []>} : vector<8x8xf32>, vector<8x1024xf32>, vector<8x1024xf32> -> vector<8x1024xf32>
    %160 = arith.addf %152, %159 : vector<8x1024xf32>
    %c0_120 = arith.constant 0 : index
    %c185 = arith.constant 185 : index
    %161 = vector.load %arg0[%c0_120, %c185] : memref<8x1280xf32, #tpu.memory_space<vmem>>, vector<8x1024xf32>
    %c20 = arith.constant 20 : index
    %c0_121 = arith.constant 0 : index
    %162 = vector.load %arg1[%c20, %c0_121] : memref<27x1024xf32, #tpu.memory_space<vmem>>, vector<1x1024xf32>
    %163 = vector.broadcast %162 : vector<1x1024xf32> to vector<8x1024xf32>
    %164 = arith.mulf %161, %163 : vector<8x1024xf32>
    %c20_122 = arith.constant 20 : index
    %c0_123 = arith.constant 0 : index
    %c0_124 = arith.constant 0 : index
    %165 = vector.load %arg2[%c20_122, %c0_123, %c0_124] : memref<27x8x8xf32, #tpu.memory_space<vmem>>, vector<1x8x8xf32>
    %166 = vector.shape_cast %165 : vector<1x8x8xf32> to vector<8x8xf32>
    %cst_125 = arith.constant dense<0.000000e+00> : vector<8x1024xf32>
    %167 = tpu.matmul %166, %164, %cst_125 {dimension_numbers = #tpu.dot_dimension_numbers<[1], [0], [0], [1], [0, 0, 1, 1], [], []>} : vector<8x8xf32>, vector<8x1024xf32>, vector<8x1024xf32> -> vector<8x1024xf32>
    %168 = arith.addf %160, %167 : vector<8x1024xf32>
    %c0_126 = arith.constant 0 : index
    %c191 = arith.constant 191 : index
    %169 = vector.load %arg0[%c0_126, %c191] : memref<8x1280xf32, #tpu.memory_space<vmem>>, vector<8x1024xf32>
    %c21 = arith.constant 21 : index
    %c0_127 = arith.constant 0 : index
    %170 = vector.load %arg1[%c21, %c0_127] : memref<27x1024xf32, #tpu.memory_space<vmem>>, vector<1x1024xf32>
    %171 = vector.broadcast %170 : vector<1x1024xf32> to vector<8x1024xf32>
    %172 = arith.mulf %169, %171 : vector<8x1024xf32>
    %c21_128 = arith.constant 21 : index
    %c0_129 = arith.constant 0 : index
    %c0_130 = arith.constant 0 : index
    %173 = vector.load %arg2[%c21_128, %c0_129, %c0_130] : memref<27x8x8xf32, #tpu.memory_space<vmem>>, vector<1x8x8xf32>
    %174 = vector.shape_cast %173 : vector<1x8x8xf32> to vector<8x8xf32>
    %cst_131 = arith.constant dense<0.000000e+00> : vector<8x1024xf32>
    %175 = tpu.matmul %174, %172, %cst_131 {dimension_numbers = #tpu.dot_dimension_numbers<[1], [0], [0], [1], [0, 0, 1, 1], [], []>} : vector<8x8xf32>, vector<8x1024xf32>, vector<8x1024xf32> -> vector<8x1024xf32>
    %176 = arith.addf %168, %175 : vector<8x1024xf32>
    %c0_132 = arith.constant 0 : index
    %c192 = arith.constant 192 : index
    %177 = vector.load %arg0[%c0_132, %c192] : memref<8x1280xf32, #tpu.memory_space<vmem>>, vector<8x1024xf32>
    %c22 = arith.constant 22 : index
    %c0_133 = arith.constant 0 : index
    %178 = vector.load %arg1[%c22, %c0_133] : memref<27x1024xf32, #tpu.memory_space<vmem>>, vector<1x1024xf32>
    %179 = vector.broadcast %178 : vector<1x1024xf32> to vector<8x1024xf32>
    %180 = arith.mulf %177, %179 : vector<8x1024xf32>
    %c22_134 = arith.constant 22 : index
    %c0_135 = arith.constant 0 : index
    %c0_136 = arith.constant 0 : index
    %181 = vector.load %arg2[%c22_134, %c0_135, %c0_136] : memref<27x8x8xf32, #tpu.memory_space<vmem>>, vector<1x8x8xf32>
    %182 = vector.shape_cast %181 : vector<1x8x8xf32> to vector<8x8xf32>
    %cst_137 = arith.constant dense<0.000000e+00> : vector<8x1024xf32>
    %183 = tpu.matmul %182, %180, %cst_137 {dimension_numbers = #tpu.dot_dimension_numbers<[1], [0], [0], [1], [0, 0, 1, 1], [], []>} : vector<8x8xf32>, vector<8x1024xf32>, vector<8x1024xf32> -> vector<8x1024xf32>
    %184 = arith.addf %176, %183 : vector<8x1024xf32>
    %c0_138 = arith.constant 0 : index
    %c193 = arith.constant 193 : index
    %185 = vector.load %arg0[%c0_138, %c193] : memref<8x1280xf32, #tpu.memory_space<vmem>>, vector<8x1024xf32>
    %c23 = arith.constant 23 : index
    %c0_139 = arith.constant 0 : index
    %186 = vector.load %arg1[%c23, %c0_139] : memref<27x1024xf32, #tpu.memory_space<vmem>>, vector<1x1024xf32>
    %187 = vector.broadcast %186 : vector<1x1024xf32> to vector<8x1024xf32>
    %188 = arith.mulf %185, %187 : vector<8x1024xf32>
    %c23_140 = arith.constant 23 : index
    %c0_141 = arith.constant 0 : index
    %c0_142 = arith.constant 0 : index
    %189 = vector.load %arg2[%c23_140, %c0_141, %c0_142] : memref<27x8x8xf32, #tpu.memory_space<vmem>>, vector<1x8x8xf32>
    %190 = vector.shape_cast %189 : vector<1x8x8xf32> to vector<8x8xf32>
    %cst_143 = arith.constant dense<0.000000e+00> : vector<8x1024xf32>
    %191 = tpu.matmul %190, %188, %cst_143 {dimension_numbers = #tpu.dot_dimension_numbers<[1], [0], [0], [1], [0, 0, 1, 1], [], []>} : vector<8x8xf32>, vector<8x1024xf32>, vector<8x1024xf32> -> vector<8x1024xf32>
    %192 = arith.addf %184, %191 : vector<8x1024xf32>
    %c0_144 = arith.constant 0 : index
    %c199 = arith.constant 199 : index
    %193 = vector.load %arg0[%c0_144, %c199] : memref<8x1280xf32, #tpu.memory_space<vmem>>, vector<8x1024xf32>
    %c24 = arith.constant 24 : index
    %c0_145 = arith.constant 0 : index
    %194 = vector.load %arg1[%c24, %c0_145] : memref<27x1024xf32, #tpu.memory_space<vmem>>, vector<1x1024xf32>
    %195 = vector.broadcast %194 : vector<1x1024xf32> to vector<8x1024xf32>
    %196 = arith.mulf %193, %195 : vector<8x1024xf32>
    %c24_146 = arith.constant 24 : index
    %c0_147 = arith.constant 0 : index
    %c0_148 = arith.constant 0 : index
    %197 = vector.load %arg2[%c24_146, %c0_147, %c0_148] : memref<27x8x8xf32, #tpu.memory_space<vmem>>, vector<1x8x8xf32>
    %198 = vector.shape_cast %197 : vector<1x8x8xf32> to vector<8x8xf32>
    %cst_149 = arith.constant dense<0.000000e+00> : vector<8x1024xf32>
    %199 = tpu.matmul %198, %196, %cst_149 {dimension_numbers = #tpu.dot_dimension_numbers<[1], [0], [0], [1], [0, 0, 1, 1], [], []>} : vector<8x8xf32>, vector<8x1024xf32>, vector<8x1024xf32> -> vector<8x1024xf32>
    %200 = arith.addf %192, %199 : vector<8x1024xf32>
    %c0_150 = arith.constant 0 : index
    %c200 = arith.constant 200 : index
    %201 = vector.load %arg0[%c0_150, %c200] : memref<8x1280xf32, #tpu.memory_space<vmem>>, vector<8x1024xf32>
    %c25 = arith.constant 25 : index
    %c0_151 = arith.constant 0 : index
    %202 = vector.load %arg1[%c25, %c0_151] : memref<27x1024xf32, #tpu.memory_space<vmem>>, vector<1x1024xf32>
    %203 = vector.broadcast %202 : vector<1x1024xf32> to vector<8x1024xf32>
    %204 = arith.mulf %201, %203 : vector<8x1024xf32>
    %c25_152 = arith.constant 25 : index
    %c0_153 = arith.constant 0 : index
    %c0_154 = arith.constant 0 : index
    %205 = vector.load %arg2[%c25_152, %c0_153, %c0_154] : memref<27x8x8xf32, #tpu.memory_space<vmem>>, vector<1x8x8xf32>
    %206 = vector.shape_cast %205 : vector<1x8x8xf32> to vector<8x8xf32>
    %cst_155 = arith.constant dense<0.000000e+00> : vector<8x1024xf32>
    %207 = tpu.matmul %206, %204, %cst_155 {dimension_numbers = #tpu.dot_dimension_numbers<[1], [0], [0], [1], [0, 0, 1, 1], [], []>} : vector<8x8xf32>, vector<8x1024xf32>, vector<8x1024xf32> -> vector<8x1024xf32>
    %208 = arith.addf %200, %207 : vector<8x1024xf32>
    %c0_156 = arith.constant 0 : index
    %c201 = arith.constant 201 : index
    %209 = vector.load %arg0[%c0_156, %c201] : memref<8x1280xf32, #tpu.memory_space<vmem>>, vector<8x1024xf32>
    %c26 = arith.constant 26 : index
    %c0_157 = arith.constant 0 : index
    %210 = vector.load %arg1[%c26, %c0_157] : memref<27x1024xf32, #tpu.memory_space<vmem>>, vector<1x1024xf32>
    %211 = vector.broadcast %210 : vector<1x1024xf32> to vector<8x1024xf32>
    %212 = arith.mulf %209, %211 : vector<8x1024xf32>
    %c26_158 = arith.constant 26 : index
    %c0_159 = arith.constant 0 : index
    %c0_160 = arith.constant 0 : index
    %213 = vector.load %arg2[%c26_158, %c0_159, %c0_160] : memref<27x8x8xf32, #tpu.memory_space<vmem>>, vector<1x8x8xf32>
    %214 = vector.shape_cast %213 : vector<1x8x8xf32> to vector<8x8xf32>
    %cst_161 = arith.constant dense<0.000000e+00> : vector<8x1024xf32>
    %215 = tpu.matmul %214, %212, %cst_161 {dimension_numbers = #tpu.dot_dimension_numbers<[1], [0], [0], [1], [0, 0, 1, 1], [], []>} : vector<8x8xf32>, vector<8x1024xf32>, vector<8x1024xf32> -> vector<8x1024xf32>
    %216 = arith.addf %208, %215 : vector<8x1024xf32>
    %c0_162 = arith.constant 0 : index
    %c0_163 = arith.constant 0 : index
    %217 = vector.load %arg3[%c0_162, %c0_163] : memref<8x1xf32, #tpu.memory_space<vmem>>, vector<8x1xf32>
    %218 = vector.broadcast %217 : vector<8x1xf32> to vector<8x1024xf32>
    %219 = arith.addf %216, %218 : vector<8x1024xf32>
    %cst_164 = arith.constant dense<0.000000e+00> : vector<8xf32>
    %220 = vector.multi_reduction <add>, %219, %cst_164 [1] : vector<8x1024xf32> to vector<8xf32>
    %221 = vector.shape_cast %220 : vector<8xf32> to vector<8x1xf32>
    %cst_165 = arith.constant 1.024000e+03 : f32
    %222 = vector.broadcast %cst_165 : f32 to vector<8x1xf32>
    %223 = arith.divf %221, %222 : vector<8x1xf32>
    %224 = vector.broadcast %223 : vector<8x1xf32> to vector<8x1024xf32>
    %225 = arith.subf %219, %224 : vector<8x1024xf32>
    %226 = arith.mulf %225, %225 : vector<8x1024xf32>
    %cst_166 = arith.constant dense<0.000000e+00> : vector<8xf32>
    %227 = vector.multi_reduction <add>, %226, %cst_166 [1] : vector<8x1024xf32> to vector<8xf32>
    %228 = vector.shape_cast %227 : vector<8xf32> to vector<8x1xf32>
    %cst_167 = arith.constant 1.024000e+03 : f32
    %229 = vector.broadcast %cst_167 : f32 to vector<8x1xf32>
    %230 = arith.divf %228, %229 : vector<8x1xf32>
    %c0_168 = arith.constant 0 : index
    %c0_169 = arith.constant 0 : index
    %231 = vector.load %arg4[%c0_168, %c0_169] : memref<8x1xf32, #tpu.memory_space<vmem>>, vector<8x1xf32>
    %cst_170 = arith.constant 9.99999974E-6 : f32
    %232 = vector.broadcast %cst_170 : f32 to vector<8x1xf32>
    %233 = arith.addf %230, %232 : vector<8x1xf32>
    %234 = math.rsqrt %233 : vector<8x1xf32>
    %235 = arith.mulf %231, %234 : vector<8x1xf32>
    %236 = vector.broadcast %235 : vector<8x1xf32> to vector<8x1024xf32>
    %237 = arith.mulf %225, %236 : vector<8x1024xf32>
    %c0_171 = arith.constant 0 : index
    %c0_172 = arith.constant 0 : index
    %238 = vector.load %arg5[%c0_171, %c0_172] : memref<8x1xf32, #tpu.memory_space<vmem>>, vector<8x1xf32>
    %239 = vector.broadcast %238 : vector<8x1xf32> to vector<8x1024xf32>
    %240 = arith.addf %237, %239 : vector<8x1024xf32>
    %c0_173 = arith.constant 0 : index
    %c128_174 = arith.constant 128 : index
    %241 = vector.load %arg0[%c0_173, %c128_174] : memref<8x1280xf32, #tpu.memory_space<vmem>>, vector<8x1024xf32>
    %242 = arith.addf %241, %240 : vector<8x1024xf32>
    %cst_175 = arith.constant 0.000000e+00 : f32
    %243 = vector.broadcast %cst_175 : f32 to vector<8x1024xf32>
    %244 = arith.maximumf %242, %243 : vector<8x1024xf32>
    %c0_176 = arith.constant 0 : index
    %c0_177 = arith.constant 0 : index
    %245 = vector.load %arg6[%c0_176, %c0_177] : memref<8x1024xf32, #tpu.memory_space<vmem>>, vector<8x1024xf32>
    tpu.vector_store %arg6[%c0_176, %c0_177], %244 {strides = array<i32>} : memref<8x1024xf32, #tpu.memory_space<vmem>>, vector<8x1024xf32>,
    return
  }
}

</mosaic_0001>

<bundles_post_ra>
// kernel: tpu_custom_call.1
= control target key start
LH: loop header
LB: loop body
LE: loop exit
PB: predicated region body
PF: predicated region fallthrough
CT: control target
= control target key end

     0   :  { %11 = vsyncpa [#allocation3], 0  ;;  %s14729_s0 = inlined_call_operand.hbm [shape: f32[8,1280], index: 0, kind: input, shape index: {}]   ;;  %s14730_s1 = inlined_call_operand.vmem [shape: f32[27,1024], index: 1, kind: input, shape index: {}]   ;;  %s14731_s2 = inlined_call_operand.vmem [shape: f32[27,8,8], index: 2, kind: input, shape index: {}]   ;;  %s14732_s3 = inlined_call_operand.vmem [shape: f32[8,1], index: 3, kind: input, shape index: {}]   ;;  %s14733_s4 = inlined_call_operand.vmem [shape: f32[8,1], index: 4, kind: input, shape index: {}]   ;;  %s14734_s5 = inlined_call_operand.vmem [shape: f32[8,1], index: 5, kind: input, shape index: {}]   ;;  %s14735_s6 = inlined_call_operand.hbm [shape: f32[8,1024], index: 6, kind: output, shape index: {}]  }
   0x1   :  { %12 = vsyncpa [#allocation4], 0  ;;  %s11894_s21 = smov [#allocation2]   ;;  %s11846_s25 = scalar_lea.hbm %s14729_s0, 1280 }
   0x2   :  { %s19_s22 = sshll.u32 %s11894_s21, 4  ;;  %p11847_p0 = scmp.ne.s32.totalorder %s14729_s0, %s11846_s25  ;;  %s20_s22 = int_to_ptr.vmem [resolvable:$true] %s19_s22 }
   0x3   :  { %p11850_p1 = scmp.lt.u32.totalorder %s11846_s25, %s14729_s0 }
   0x5   :  { %p11852_p2 = pnand %p11850_p1, %p11847_p0 }
   0x7   :  { %11855 = shalt.err (!%p11852_p2)
}
   0x8   :  { %s11856_s30 = scalar_lea.vmem %s20_s22, 1280  ;;  %p11861_p4 = scmp.lt.s32.totalorder %s20_s22, %s20_s22 }
   0x9   :  { %p11857_p3 = scmp.ne.s32.totalorder %s20_s22, %s11856_s30  ;;  %p11862_p5 = scmp.lt.s32.totalorder %s11856_s30, %s11856_s30 }
   0xb   :  { %p11863_p6 = por %p11862_p5, %p11861_p4 }
   0xd   :  { %p11864_p7 = pnand %p11863_p6, %p11857_p3 }
   0xf   :  { %11867 = shalt.err (!%p11864_p7)
}
  0x10   :  { %22 = dma.hbm_to_vmem [thread:$0]  %s14729_s0, 1280, %s20_s22, [#allocation3]  }
  0x11   :  { %11890 = dma.done.wait [#allocation3], 1280  }
  0x12   :  { %11891 = vsyncadd [#allocation3], 4294966016  ;;  %v49_v0 = vlaneseq  ;;  %v45_v4 = vld [vmem:[%s14730_s1] ss:$8 sm:$0xf]  ;;  %s11895_s0 = smov 55  }
  0x13   :  { %v46_v5 = vld [vmem:[%s14730_s1] ss:$8 sm:$0xf0]  ;;  %v11392_v19 = vld [vmem:[%s14730_s1 + $0x1] ss:$8 sm:$0xf] }
  0x14   :  { %v50_v1 = vshrl.u32 %v49_v0, 7  ;;  %v47_v6 = vor.u32 %v46_v5, %v45_v4  ;;  %v11393_v20 = vld [vmem:[%s14730_s1 + $0x1] ss:$8 sm:$0xf0]  ;;  %s11896_s17 = smov 56   ;;  %s11897_s22 = smov 57  }
  0x15   :  { %v127_v23 = vor.u32 %v11393_v20, %v11392_v19  ;;  %v11403_v30 = vld [vmem:[%s14730_s1 + $0x2] ss:$8 sm:$0xf]  ;;  %v11410_v41 = vld [vmem:[%s14730_s1 + $0x3] ss:$8 sm:$0xf] }
  0x16   :  { %v11962_v2 = vsub.s32 2, %v50_v1  ;;  %v11964_v3 = vsub.s32 0, %v50_v1  ;;  %v11972_v7 = vsub.s32 3, %v50_v1  ;;  %v11974_v8 = vsub.s32 1, %v50_v1  ;;  %s11898_s27 = smov 63   ;;  %v12066_v54 = vld [vmem:[#allocation2] sm:$0xff] }
  0x17   :  { %v11982_v13 = vsub.s32 5, %v50_v1  ;;  %v11984_v14 = vsub.s32 4, %v50_v1  ;;  %v11990_v17 = vsub.s32 7, %v50_v1  ;;  %v11992_v18 = vsub.s32 6, %v50_v1  ;;  %s11899_s28 = smov 73   ;;  %v12083_v62 = vld [vmem:[#allocation2 + $0x40] sm:$0xff] }
  0x18   :  { %v60_v9 = vrot.slane %v47_v6, %v11962_v2  ;;  %v52_v10 = vrot.slane %v47_v6, %v11964_v3  ;;  %v64_v11 = vrot.slane %v47_v6, %v11972_v7  ;;  %v56_v12 = vrot.slane %v47_v6, %v11974_v8  ;;  %v11404_v31 = vld [vmem:[%s14730_s1 + $0x2] ss:$8 sm:$0xf0]  ;;  %v11411_v42 = vld [vmem:[%s14730_s1 + $0x3] ss:$8 sm:$0xf0] }
  0x19   :  { %v72_v15 = vrot.slane %v47_v6, %v11982_v13  ;;  %v68_v16 = vrot.slane %v47_v6, %v11984_v14  ;;  %v80_v21 = vrot.slane %v47_v6, %v11990_v17  ;;  %v76_v22 = vrot.slane %v47_v6, %v11992_v18  ;;  %s11900_s29 = smov 72   ;;  %s11901_s30 = smov 71  }
  0x1a   :  { %85 = vrot.lane.b32.xlu1 %v60_v9, %s11895_s0  ;;  %81 = vrot.lane.b32.xlu0 %v52_v10, %s11895_s0  ;;  %v136_v24 = vrot.slane %v127_v23, %v11974_v8  ;;  %v132_v25 = vrot.slane %v127_v23, %v11964_v3  ;;  %v144_v26 = vrot.slane %v127_v23, %v11972_v7  ;;  %vm177_vm0 = vcmask 457728   ;;  %s11903_s7 = smov 65   ;;  %s11904_s12 = smov 64  }
  0x1b   :  { %v140_v27 = vrot.slane %v127_v23, %v11962_v2  ;;  %v152_v28 = vrot.slane %v127_v23, %v11982_v13  ;;  %v148_v29 = vrot.slane %v127_v23, %v11984_v14  ;;  %v160_v32 = vrot.slane %v127_v23, %v11990_v17  ;;  %s11905_s8 = smov 119   ;;  %s11906_s14 = smov 120  }
  0x1c   :  { %v156_v33 = vrot.slane %v127_v23, %v11992_v18  ;;  %v871_v34 = vor.u32 %v11404_v31, %v11403_v30  ;;  %v1291_v45 = vor.u32 %v11411_v42, %v11410_v41  ;;  %v12136_v41 = vld [vmem:[#allocation2 + $0x30] sm:$0xff]  ;;  %v12138_v42 = vld [vmem:[#allocation2 + $0x18] sm:$0xff]  ;;  %vm97_vm1 = vcmask 449536   ;;  %s11907_s20 = smov 121   ;;  %s11908_s10 = smov 127  }
  0x1d   :  { %vm921_vm2 = vcmask 465920   ;;  %vm1341_vm3 = vcmask 515072   ;;  %vm14736_vm4 = vcmask 588800   ;;  %vm249_vm5 = vcmask 64512   ;;  %s11909_s18 = smov 1   ;;  %s11910_s25 = smov 7  }
  0x1e   :  { %87 = vrot.lane.b32.xlu1 %v64_v11, %s11895_s0  ;;  %83 = vrot.lane.b32.xlu0 %v56_v12, %s11895_s0  ;;  %v880_v35 = vrot.slane %v871_v34, %v11974_v8  ;;  %v876_v36 = vrot.slane %v871_v34, %v11964_v3  ;;  %v888_v37 = vrot.slane %v871_v34, %v11972_v7  ;;  %vm564_vm6 = vcmask 596992   ;;  %s11911_s15 = smov 8   ;;  %s11912_s16 = smov 9  }
  0x1f   :  { %v884_v38 = vrot.slane %v871_v34, %v11962_v2  ;;  %v896_v39 = vrot.slane %v871_v34, %v11982_v13  ;;  %v892_v40 = vrot.slane %v871_v34, %v11984_v14  ;;  %v904_v43 = vrot.slane %v871_v34, %v11990_v17 }
  0x20   :  { %v900_v44 = vrot.slane %v871_v34, %v11992_v18  ;;  %v1296_v46 = vrot.slane %v1291_v45, %v11964_v3  ;;  %v1300_v47 = vrot.slane %v1291_v45, %v11974_v8  ;;  %v1304_v48 = vrot.slane %v1291_v45, %v11962_v2  ;;  %v12122_v34 = vld [vmem:[#allocation2 + $0x8] sm:$0xff] }
  0x21   :  { %v1308_v49 = vrot.slane %v1291_v45, %v11972_v7  ;;  %v1312_v50 = vrot.slane %v1291_v45, %v11984_v14  ;;  %v1316_v51 = vrot.slane %v1291_v45, %v11982_v13  ;;  %v1320_v52 = vrot.slane %v1291_v45, %v11992_v18 }
  0x22   :  { %91 = vrot.lane.b32.xlu1 %v72_v15, %s11895_s0  ;;  %89 = vrot.lane.b32.xlu0 %v68_v16, %s11895_s0  ;;  %v1324_v53 = vrot.slane %v1291_v45, %v11990_v17  ;;  %vm976_vm7 = vcmask 580608   ;;  %vm1396_vm8 = vcmask 531456   ;;  %vm1761_vm9 = vcmask 523264  }
  0x23   :  { %vm3852_vm10 = vcmask 973824   ;;  %vm4272_vm11 = vcmask 982016   ;;  %vm4691_vm12 = vcmask 990208   ;;  %vm5111_vm13 = vcmask 1039360  }
  0x24   :  { %vm3907_vm14 = vcmask 72704   ;;  %vm5166_vm15 = vcmask 7168  }
  0x26   :  { %95 = vrot.lane.b32.xlu1 %v80_v21, %s11895_s0  ;;  %93 = vrot.lane.b32.xlu0 %v76_v22, %s11895_s0 }
  0x2a   :  { %163 = vrot.lane.b32.xlu1 %v136_v24, %s11896_s17  ;;  %161 = vrot.lane.b32.xlu0 %v132_v25, %s11896_s17 }
  0x2e   :  { %167 = vrot.lane.b32.xlu1 %v144_v26, %s11896_s17  ;;  %165 = vrot.lane.b32.xlu0 %v140_v27, %s11896_s17 }
  0x32   :  { %171 = vrot.lane.b32.xlu1 %v152_v28, %s11896_s17  ;;  %169 = vrot.lane.b32.xlu0 %v148_v29, %s11896_s17  ;;  %v12115_v29 = vld [vmem:[#allocation2 + $0x10] sm:$0xff] }
  0x36   :  { %175 = vrot.lane.b32.xlu1 %v160_v32, %s11896_s17  ;;  %173 = vrot.lane.b32.xlu0 %v156_v33, %s11896_s17 }
  0x3a   :  { %907 = vrot.lane.b32.xlu1 %v880_v35, %s11897_s22  ;;  %905 = vrot.lane.b32.xlu0 %v876_v36, %s11897_s22  ;;  %v14737_v35 = vmov 0.0   ;;  %v12128_v36 = vld [vmem:[#allocation2 + $0x20] sm:$0xff] }
  0x3b   :  { %317 = vmatprep.mubr.f32.mxu0 %v14737_v35  ;;  %388 = vmatprep.mubr.f32.mxu1 %v14737_v35 }
  0x3e   :  { %911 = vrot.lane.b32.xlu1 %v888_v37, %s11897_s22  ;;  %909 = vrot.lane.b32.xlu0 %v884_v38, %s11897_s22 }
  0x42   :  { %915 = vrot.lane.b32.xlu1 %v896_v39, %s11897_s22  ;;  %913 = vrot.lane.b32.xlu0 %v892_v40, %s11897_s22 }
  0x46   :  { %919 = vrot.lane.b32.xlu1 %v904_v43, %s11897_s22  ;;  %917 = vrot.lane.b32.xlu0 %v900_v44, %s11897_s22 }
  0x4a   :  { %1325 = vrot.lane.b32.xlu1 %v1296_v46, %s11898_s27  ;;  %1327 = vrot.lane.b32.xlu0 %v1300_v47, %s11898_s27 }
  0x4e   :  { %1329 = vrot.lane.b32.xlu1 %v1304_v48, %s11898_s27  ;;  %1331 = vrot.lane.b32.xlu0 %v1308_v49, %s11898_s27  ;;  %v12148_v48 = vld [vmem:[#allocation2 + $0x28] sm:$0xff] }
  0x52   :  { %1333 = vrot.lane.b32.xlu1 %v1312_v50, %s11898_s27  ;;  %1335 = vrot.lane.b32.xlu0 %v1316_v51, %s11898_s27 }
  0x56   :  { %1337 = vrot.lane.b32.xlu1 %v1320_v52, %s11898_s27  ;;  %1339 = vrot.lane.b32.xlu0 %v1324_v53, %s11898_s27  ;;  %v12158_v53 = vld [vmem:[#allocation2 + $0x38] sm:$0xff] }
  0x8c   :  { %v12068_v55 = vpop.permute.xlu1 %85  ;;  %v12070_v56 = vpop.permute.xlu0 %81 }
  0x8d   :  { %v114_v57 = vmul.f32 %v12070_v56, %v12066_v54 }
  0x8f   :  { %546 = vrot.lane.b32.xlu1 %v114_v57, %s11899_s28 }
  0x90   :  { %v12075_v58 = vpop.permute.xlu1 %87  ;;  %v12077_v59 = vpop.permute.xlu0 %83 }
  0x91   :  { %v98_v45 = vsel %vm97_vm1, %v12070_v56, %v12077_v59  ;;  %v100_v51 = vsel %vm97_vm1, %v12068_v55, %v12075_v58 }
  0x92   :  { %v115_v49 = vmul.f32 %v98_v45, %v12122_v34  ;;  %v117_v57 = vmul.f32 %v100_v51, %v12138_v42 }
  0x94   :  { %v12079_v60 = vpop.permute.xlu1 %91  ;;  %v12081_v61 = vpop.permute.xlu0 %89 }
  0x98   :  { %v12085_v63 = vpop.permute.xlu1 %95  ;;  %v12087_v0 = vpop.permute.xlu0 %93 }
  0x99   :  { %v122_v1 = vmul.f32 %v12085_v63, %v12083_v62 }
  0x9b   :  { %562 = vrot.lane.b32.xlu1 %v122_v1, %s11899_s28 }
  0x9c   :  { %v164_v4 = vpop.permute.xlu1 %163  ;;  %v162_v5 = vpop.permute.xlu0 %161 }
  0x9d   :  { %v194_v6 = vmul.f32 %v162_v5, %v12066_v54  ;;  %v178_v32 = vsel %vm177_vm0, %v162_v5, %v164_v4  ;;  %v102_v5 = vsel %vm97_vm1, %v12081_v61, %v12079_v60 }
  0x9e   :  { %v195_v38 = vmul.f32 %v178_v32, %v12122_v34 }
  0x9f   :  { %214 = vrot.lane.b32.xlu0 %v194_v6, %s11900_s29  ;;  %v119_v6 = vmul.f32 %v102_v5, %v12148_v48 }
  0xa0   :  { %v168_v9 = vpop.permute.xlu1 %167  ;;  %v166_v10 = vpop.permute.xlu0 %165 }
  0xa1   :  { %v179_v27 = vsel %vm177_vm0, %v164_v4, %v166_v10  ;;  %v180_v39 = vsel %vm177_vm0, %v166_v10, %v168_v9  ;;  %v99_v4 = vsel %vm97_vm1, %v12077_v59, %v12068_v55  ;;  %v101_v10 = vsel %vm97_vm1, %v12075_v58, %v12081_v61 }
  0xa2   :  { %v196_v31 = vmul.f32 %v179_v27, %v12115_v29  ;;  %v197_v44 = vmul.f32 %v180_v39, %v12138_v42  ;;  %v104_v55 = vsel %vm97_vm1, %v12087_v0, %v12085_v63 }
  0xa4   :  { %v172_v11 = vpop.permute.xlu1 %171  ;;  %v170_v12 = vpop.permute.xlu0 %169 }
  0xa5   :  { %v181_v33 = vsel %vm177_vm0, %v168_v9, %v170_v12  ;;  %v182_v46 = vsel %vm177_vm0, %v170_v12, %v172_v11  ;;  %v116_v9 = vmul.f32 %v99_v4, %v12115_v29  ;;  %v118_v12 = vmul.f32 %v101_v10, %v12128_v36 }
  0xa6   :  { %v198_v37 = vmul.f32 %v181_v33, %v12128_v36  ;;  %v199_v50 = vmul.f32 %v182_v46, %v12148_v48 }
  0xa8   :  { %v176_v15 = vpop.permute.xlu1 %175  ;;  %v174_v16 = vpop.permute.xlu0 %173 }
  0xa9   :  { %v202_v19 = vmul.f32 %v176_v15, %v12083_v62  ;;  %v183_v40 = vsel %vm177_vm0, %v172_v11, %v174_v16  ;;  %v184_v52 = vsel %vm177_vm0, %v174_v16, %v176_v15  ;;  %v121_v11 = vmul.f32 %v104_v55, %v12158_v53 }
  0xaa   :  { %v200_v43 = vmul.f32 %v183_v40, %v12136_v41  ;;  %v201_v1 = vmul.f32 %v184_v52, %v12158_v53  ;;  %v103_v15 = vsel %vm97_vm1, %v12079_v60, %v12087_v0  ;;  %v11417_v52 = vld [vmem:[%s14730_s1 + $0x4] ss:$8 sm:$0xf] }
  0xab   :  { %230 = vrot.lane.b32.xlu0 %v202_v19, %s11900_s29  ;;  %v120_v16 = vmul.f32 %v103_v15, %v12136_v41 }
  0xac   :  { %v12096_v20 = vpop.permute.xlu1 %907  ;;  %v12098_v21 = vpop.permute.xlu0 %905 }
  0xad   :  { %v938_v22 = vmul.f32 %v12098_v21, %v12066_v54  ;;  %v922_v19 = vsel %vm921_vm2, %v12098_v21, %v12096_v20 }
  0xae   :  { %v939_v0 = vmul.f32 %v922_v19, %v12122_v34 }
  0xaf   :  { %958 = vrot.lane.b32.xlu0 %v938_v22, %s11901_s30 }
  0xb0   :  { %v12103_v23 = vpop.permute.xlu1 %911  ;;  %v910_v47 = vpop.permute.xlu0 %909 }
  0xb1   :  { %v923_v58 = vsel %vm921_vm2, %v12096_v20, %v910_v47 }
  0xb2   :  { %v940_v63 = vmul.f32 %v923_v58, %v12115_v29 }
  0xb4   :  { %v12105_v24 = vpop.permute.xlu1 %915  ;;  %v914_v56 = vpop.permute.xlu0 %913 }
  0xb5   :  { %v925_v22 = vsel %vm921_vm2, %v12103_v23, %v914_v56  ;;  %v926_v32 = vsel %vm921_vm2, %v914_v56, %v12105_v24  ;;  %v11418_v56 = vld [vmem:[%s14730_s1 + $0x4] ss:$8 sm:$0xf0] }
  0xb6   :  { %v942_v60 = vmul.f32 %v925_v22, %v12128_v36  ;;  %v943_v40 = vmul.f32 %v926_v32, %v12148_v48  ;;  %v1711_v4 = vor.u32 %v11418_v56, %v11417_v52  ;;  %v11394_v32 = vld [vmem:[%s14731_s2 + $0x8] sm:$0xff] }
  0xb8   :  { %v12107_v25 = vpop.permute.xlu1 %919  ;;  %v918_v59 = vpop.permute.xlu0 %917  ;;  %v1724_v55 = vrot.slane %v1711_v4, %v11962_v2  ;;  %v1740_v15 = vrot.slane %v1711_v4, %v11992_v18  ;;  %v1736_v58 = vrot.slane %v1711_v4, %v11982_v13 }
  0xb9   :  { %v946_v26 = vmul.f32 %v12107_v25, %v12083_v62 }
  0xbb   :  { %974 = vrot.lane.b32.xlu0 %v946_v26, %s11901_s30 }
  0xbc   :  { %v12113_v28 = vpop.permute.xlu1 %1325  ;;  %v1328_v61 = vpop.permute.xlu0 %1327 }
  0xbd   :  { %v1358_v30 = vmul.f32 %v12113_v28, %v12066_v54  ;;  %v1342_v33 = vsel %vm1341_vm3, %v12113_v28, %v1328_v61 }
  0xbe   :  { %v1359_v39 = vmul.f32 %v1342_v33, %v12122_v34 }
  0xbf   :  { %218 = vrot.lane.b32.xlu0 %v196_v31, %s11900_s29  ;;  %1378 = vrot.lane.b32.xlu1 %v1358_v30, %s11903_s7  ;;  %v924_v30 = vsel %vm921_vm2, %v910_v47, %v12103_v23  ;;  %v927_v31 = vsel %vm921_vm2, %v12105_v24, %v918_v59 }
  0xc0   :  { %v1330_v26 = vpop.permute.xlu1 %1329  ;;  %v1332_v27 = vpop.permute.xlu0 %1331  ;;  %v944_v20 = vmul.f32 %v927_v31, %v12136_v41  ;;  %v941_v21 = vmul.f32 %v924_v30, %v12138_v42 }
  0xc1   :  { %v1343_v28 = vsel %vm1341_vm3, %v1328_v61, %v1330_v26  ;;  %v1744_v61 = vrot.slane %v1711_v4, %v11990_v17 }
  0xc3   :  { %222 = vrot.lane.b32.xlu0 %v198_v37, %s11900_s29  ;;  %216 = vrot.lane.b32.xlu1 %v195_v38, %s11900_s29  ;;  %v1344_v38 = vsel %vm1341_vm3, %v1330_v26, %v1332_v27 }
  0xc4   :  { %v1334_v23 = vpop.permute.xlu1 %1333  ;;  %v1336_v37 = vpop.permute.xlu0 %1335  ;;  %v1361_v24 = vmul.f32 %v1344_v38, %v12138_v42 }
  0xc7   :  { %226 = vrot.lane.b32.xlu0 %v200_v43, %s11900_s29  ;;  %220 = vrot.lane.b32.xlu1 %v197_v44, %s11900_s29  ;;  %v928_v43 = vsel %vm921_vm2, %v918_v59, %v12107_v25  ;;  %v1346_v44 = vsel %vm1341_vm3, %v1334_v23, %v1336_v37  ;;  %v1360_v25 = vmul.f32 %v1343_v28, %v12115_v29 }
  0xc8   :  { %v945_v45 = vmul.f32 %v928_v43, %v12158_v53  ;;  %v1338_v46 = vpop.permute.xlu1 %1337  ;;  %v1340_v47 = vpop.permute.xlu0 %1339  ;;  %v1720_v59 = vrot.slane %v1711_v4, %v11974_v8 }
  0xc9   :  { %v1348_v51 = vsel %vm1341_vm3, %v1338_v46, %v1340_v47  ;;  %v1347_v5 = vsel %vm1341_vm3, %v1336_v37, %v1338_v46  ;;  %v1366_v10 = vmul.f32 %v1340_v47, %v12083_v62 }
  0xcb   :  { %548 = vrot.lane.b32.xlu0 %v115_v49, %s11899_s28  ;;  %224 = vrot.lane.b32.xlu1 %v199_v50, %s11900_s29  ;;  %v1363_v49 = vmul.f32 %v1346_v44, %v12148_v48  ;;  %v1345_v50 = vsel %vm1341_vm3, %v1332_v27, %v1334_v23 }
  0xcf   :  { %552 = vrot.lane.b32.xlu0 %v117_v57, %s11899_s28  ;;  %228 = vrot.lane.b32.xlu1 %v201_v1, %s11900_s29  ;;  %v1362_v57 = vmul.f32 %v1345_v50, %v12128_v36  ;;  %v1365_v1 = vmul.f32 %v1348_v51, %v12158_v53  ;;  %v123_v50 = vld [vmem:[%s14731_s2] sm:$0xff] }
  0xd3   :  { %556 = vrot.lane.b32.xlu0 %v119_v6, %s11899_s28  ;;  %550 = vrot.lane.b32.xlu1 %v116_v9, %s11899_s28  ;;  %v1364_v6 = vmul.f32 %v1347_v5, %v12136_v41  ;;  %v1716_v9 = vrot.slane %v1711_v4, %v11964_v3 }
  0xd7   :  { %560 = vrot.lane.b32.xlu0 %v121_v11, %s11899_s28  ;;  %554 = vrot.lane.b32.xlu1 %v118_v12, %s11899_s28  ;;  %v1732_v11 = vrot.slane %v1711_v4, %v11984_v14  ;;  %v1728_v12 = vrot.slane %v1711_v4, %v11972_v7 }
  0xdb   :  { %962 = vrot.lane.b32.xlu0 %v940_v63, %s11901_s30  ;;  %558 = vrot.lane.b32.xlu1 %v120_v16, %s11899_s28 }
  0xdf   :  { %966 = vrot.lane.b32.xlu0 %v942_v60, %s11901_s30  ;;  %960 = vrot.lane.b32.xlu1 %v939_v0, %s11901_s30 }
  0xe3   :  { %970 = vrot.lane.b32.xlu0 %v944_v20, %s11901_s30  ;;  %964 = vrot.lane.b32.xlu1 %v941_v21, %s11901_s30 }
  0xe7   :  { %1380 = vrot.lane.b32.xlu0 %v1359_v39, %s11903_s7  ;;  %968 = vrot.lane.b32.xlu1 %v943_v40, %s11901_s30 }
  0xeb   :  { %972 = vrot.lane.b32.xlu1 %v945_v45, %s11901_s30  ;;  %1384 = vrot.lane.b32.xlu0 %v1361_v24, %s11903_s7 }
  0xef   :  { %1382 = vrot.lane.b32.xlu1 %v1360_v25, %s11903_s7  ;;  %1388 = vrot.lane.b32.xlu0 %v1363_v49, %s11903_s7 }
  0xf3   :  { %1386 = vrot.lane.b32.xlu1 %v1362_v57, %s11903_s7  ;;  %1392 = vrot.lane.b32.xlu0 %v1365_v1, %s11903_s7 }
  0xf7   :  { %1390 = vrot.lane.b32.xlu1 %v1364_v6, %s11903_s7  ;;  %1745 = vrot.lane.b32.xlu0 %v1716_v9, %s11904_s12 }
  0xfb   :  { %1394 = vrot.lane.b32.xlu1 %v1366_v10, %s11903_s7  ;;  %1749 = vrot.lane.b32.xlu0 %v1724_v55, %s11904_s12 }
  0xff   :  { %1747 = vrot.lane.b32.xlu1 %v1720_v59, %s11904_s12  ;;  %1753 = vrot.lane.b32.xlu0 %v1732_v11, %s11904_s12 }
 0x101   :  { %v547_v19 = vpop.permute.xlu1 %546 }
 0x103   :  { %1751 = vrot.lane.b32.xlu1 %v1728_v12, %s11904_s12  ;;  %1757 = vrot.lane.b32.xlu0 %v1740_v15, %s11904_s12 }
 0x107   :  { %1755 = vrot.lane.b32.xlu1 %v1736_v58, %s11904_s12  ;;  %v11405_v58 = vld [vmem:[%s14731_s2 + $0x10] sm:$0xff] }
 0x10b   :  { %1759 = vrot.lane.b32.xlu1 %v1744_v61, %s11904_s12 }
 0x10d   :  { %v563_v60 = vpop.permute.xlu1 %562 }
 0x111   :  { %v215_v63 = vpop.permute.xlu0 %214 }
 0x11d   :  { %v231_v16 = vpop.permute.xlu0 %230 }
 0x121   :  { %v12264_v22 = vpop.permute.xlu0 %958 }
 0x12d   :  { %v12266_v0 = vpop.permute.xlu0 %974 }
 0x131   :  { %v219_v26 = vpop.permute.xlu0 %218  ;;  %v12268_v27 = vpop.permute.xlu1 %1378 }
 0x135   :  { %v223_v30 = vpop.permute.xlu0 %222  ;;  %v217_v31 = vpop.permute.xlu1 %216 }
 0x136   :  { %v234_v20 = vsel %vm14736_vm4, %v217_v31, %v219_v26  ;;  %v233_v21 = vsel %vm14736_vm4, %v215_v63, %v217_v31 }
 0x137   :  { %253 = vmatprep.subr.mxu0 %v234_v20 }
 0x138   :  { %254 = vmatpush1.msra.mxu0 %v233_v21 }
 0x139   :  { %v227_v33 = vpop.permute.xlu0 %226  ;;  %v221_v23 = vpop.permute.xlu1 %220  ;;  %11395 = vmatmul.mubr.msk.f32.vlgmr.msra.gmra.mrb[0].mxu0 %vm249_vm5, %v11394_v32 }
 0x13a   :  { %v236_v37 = vsel %vm14736_vm4, %v221_v23, %v223_v30  ;;  %v235_v38 = vsel %vm14736_vm4, %v219_v26, %v221_v23  ;;  %459 = vmatprep.mubr.f32.mxu0 %v14737_v35 }
 0x13b   :  { %324 = vmatprep.subr.mxu1 %v236_v37 }
 0x13c   :  { %325 = vmatpush1.msra.mxu1 %v235_v38  ;;  %v11412_v38 = vld [vmem:[%s14731_s2 + $0x18] sm:$0xff] }
 0x13d   :  { %v549_v39 = vpop.permute.xlu0 %548  ;;  %v225_v40 = vpop.permute.xlu1 %224  ;;  %11396 = vmatmul.mubr.msk.f32.vlgmr.msra.gmra.mrb[0].mxu1 %vm249_vm5, %v11394_v32 }
 0x13e   :  { %v238_v43 = vsel %vm14736_vm4, %v225_v40, %v227_v33  ;;  %v237_v24 = vsel %vm14736_vm4, %v223_v30, %v225_v40  ;;  %530 = vmatprep.mubr.f32.mxu1 %v14737_v35  ;;  %v565_v51 = vsel %vm564_vm6, %v547_v19, %v549_v39 }
 0x13f   :  { %395 = vmatprep.subr.mxu0 %v238_v43 }
 0x140   :  { %396 = vmatpush1.msra.mxu0 %v237_v24 }
 0x141   :  { %v553_v28 = vpop.permute.xlu0 %552  ;;  %v229_v44 = vpop.permute.xlu1 %228  ;;  %11397 = vmatmul.mubr.msk.f32.vlgmr.msra.gmra.mrb[2].mxu0 %vm249_vm5, %v11394_v32 }
 0x142   :  { %v240_v45 = vsel %vm14736_vm4, %v229_v44, %v231_v16  ;;  %v239_v46 = vsel %vm14736_vm4, %v227_v33, %v229_v44  ;;  %648 = vmatprep.mubr.f32.mxu0 %v14737_v35 }
 0x143   :  { %466 = vmatprep.subr.mxu1 %v240_v45 }
 0x144   :  { %467 = vmatpush1.msra.mxu1 %v239_v46 }
 0x145   :  { %v557_v47 = vpop.permute.xlu0 %556  ;;  %v551_v25 = vpop.permute.xlu1 %550  ;;  %11398 = vmatmul.mubr.msk.f32.vlgmr.msra.gmra.mrb[2].mxu1 %vm249_vm5, %v11394_v32 }
 0x146   :  { %v566_v49 = vsel %vm564_vm6, %v549_v39, %v551_v25  ;;  %719 = vmatprep.mubr.f32.mxu1 %v14737_v35  ;;  %v567_v1 = vsel %vm564_vm6, %v551_v25, %v553_v28 }
 0x147   :  { %584 = vmatprep.subr.mxu0 %v566_v49  ;;  %v11424_v49 = vld [vmem:[%s14730_s1 + $0x5] ss:$8 sm:$0xf] }
 0x148   :  { %585 = vmatpush1.msra.mxu0 %v565_v51 }
 0x149   :  { %v561_v52 = vpop.permute.xlu0 %560  ;;  %v555_v56 = vpop.permute.xlu1 %554  ;;  %11399 = vmatmul.mubr.msk.f32.vlgmr.msra.gmra.mrb[0].mxu0 %vm249_vm5, %v123_v50 }
 0x14a   :  { %v568_v57 = vsel %vm564_vm6, %v553_v28, %v555_v56  ;;  %790 = vmatprep.mubr.f32.mxu0 %v14737_v35  ;;  %v572_v4 = vsel %vm564_vm6, %v561_v52, %v563_v60  ;;  %v569_v55 = vsel %vm564_vm6, %v555_v56, %v557_v47 }
 0x14b   :  { %655 = vmatprep.subr.mxu1 %v568_v57 }
 0x14c   :  { %656 = vmatpush1.msra.mxu1 %v567_v1 }
 0x14d   :  { %v963_v5 = vpop.permute.xlu0 %962  ;;  %797 = vmatprep.subr.mxu1 %v572_v4  ;;  %v559_v6 = vpop.permute.xlu1 %558  ;;  %11400 = vmatmul.mubr.msk.f32.vlgmr.msra.gmra.mrb[0].mxu1 %vm249_vm5, %v123_v50 }
 0x14e   :  { %v570_v9 = vsel %vm564_vm6, %v557_v47, %v559_v6  ;;  %v571_v10 = vsel %vm564_vm6, %v559_v6, %v561_v52  ;;  %861 = vmatprep.mubr.f32.mxu1 %v14737_v35 }
 0x14f   :  { %726 = vmatprep.subr.mxu0 %v570_v9  ;;  %798 = vmatpush1.msra.mxu1 %v571_v10 }
 0x150   :  { %727 = vmatpush1.msra.mxu0 %v569_v55 }
 0x151   :  { %v967_v59 = vpop.permute.xlu0 %966  ;;  %v961_v11 = vpop.permute.xlu1 %960  ;;  %11401 = vmatmul.mubr.msk.f32.vlgmr.msra.gmra.mrb[2].mxu0 %vm249_vm5, %v123_v50  ;;  %11402 = vmatmul.mubr.msk.f32.vlgmr.msra.gmra.mrb[2].mxu1 %vm249_vm5, %v123_v50 }
 0x152   :  { %v978_v12 = vsel %vm976_vm7, %v961_v11, %v963_v5  ;;  %v977_v15 = vsel %vm976_vm7, %v12264_v22, %v961_v11  ;;  %1060 = vmatprep.mubr.f32.mxu0 %v14737_v35  ;;  %1131 = vmatprep.mubr.f32.mxu1 %v14737_v35 }
 0x153   :  { %996 = vmatprep.subr.mxu0 %v978_v12  ;;  %v11431_v12 = vld [vmem:[%s14730_s1 + $0x6] ss:$8 sm:$0xf] }
 0x154   :  { %997 = vmatpush1.msra.mxu0 %v977_v15  ;;  %v11432_v15 = vld [vmem:[%s14730_s1 + $0x6] ss:$8 sm:$0xf0] }
 0x155   :  { %v971_v61 = vpop.permute.xlu0 %970  ;;  %v965_v63 = vpop.permute.xlu1 %964  ;;  %11406 = vmatmul.mubr.msk.f32.vlgmr.msra.gmra.mrb[0].mxu0 %vm249_vm5, %v11405_v58 }
 0x156   :  { %v980_v16 = vsel %vm976_vm7, %v965_v63, %v967_v59  ;;  %v979_v19 = vsel %vm976_vm7, %v963_v5, %v965_v63  ;;  %1202 = vmatprep.mubr.f32.mxu0 %v14737_v35  ;;  %v2548_v63 = vor.u32 %v11432_v15, %v11431_v12 }
 0x157   :  { %1067 = vmatprep.subr.mxu1 %v980_v16 }
 0x158   :  { %1068 = vmatpush1.msra.mxu1 %v979_v19  ;;  %v2557_v16 = vrot.slane %v2548_v63, %v11974_v8  ;;  %v2553_v19 = vrot.slane %v2548_v63, %v11964_v3 }
 0x159   :  { %v1381_v22 = vpop.permute.xlu0 %1380  ;;  %v969_v60 = vpop.permute.xlu1 %968  ;;  %11407 = vmatmul.mubr.msk.f32.vlgmr.msra.gmra.mrb[0].mxu1 %vm249_vm5, %v11405_v58 }
 0x15a   :  { %v982_v26 = vsel %vm976_vm7, %v969_v60, %v971_v61  ;;  %v981_v30 = vsel %vm976_vm7, %v967_v59, %v969_v60  ;;  %1273 = vmatprep.mubr.f32.mxu1 %v14737_v35  ;;  %v2561_v60 = vrot.slane %v2548_v63, %v11962_v2 }
 0x15b   :  { %1138 = vmatprep.subr.mxu0 %v982_v26  ;;  %v2573_v26 = vrot.slane %v2548_v63, %v11982_v13 }
 0x15c   :  { %1139 = vmatpush1.msra.mxu0 %v981_v30  ;;  %v2569_v30 = vrot.slane %v2548_v63, %v11984_v14 }
 0x15d   :  { %v973_v31 = vpop.permute.xlu1 %972  ;;  %v1385_v20 = vpop.permute.xlu0 %1384  ;;  %11408 = vmatmul.mubr.msk.f32.vlgmr.msra.gmra.mrb[2].mxu0 %vm249_vm5, %v11405_v58 }
 0x15e   :  { %v984_v21 = vsel %vm976_vm7, %v973_v31, %v12266_v0  ;;  %v983_v32 = vsel %vm976_vm7, %v971_v61, %v973_v31  ;;  %1480 = vmatprep.mubr.f32.mxu0 %v14737_v35  ;;  %v1397_v0 = vsel %vm1396_vm8, %v12268_v27, %v1381_v22  ;;  %v11438_v31 = vld [vmem:[%s14730_s1 + $0x7] ss:$8 sm:$0xf] }
 0x15f   :  { %1209 = vmatprep.subr.mxu1 %v984_v21  ;;  %v2581_v21 = vrot.slane %v2548_v63, %v11990_v17 }
 0x160   :  { %1210 = vmatpush1.msra.mxu1 %v983_v32  ;;  %v2577_v32 = vrot.slane %v2548_v63, %v11992_v18 }
 0x161   :  { %v1383_v33 = vpop.permute.xlu1 %1382  ;;  %v1389_v23 = vpop.permute.xlu0 %1388  ;;  %11409 = vmatmul.mubr.msk.f32.vlgmr.msra.gmra.mrb[2].mxu1 %vm249_vm5, %v11405_v58 }
 0x162   :  { %v1398_v37 = vsel %vm1396_vm8, %v1381_v22, %v1383_v33  ;;  %1551 = vmatprep.mubr.f32.mxu1 %v14737_v35  ;;  %v1399_v24 = vsel %vm1396_vm8, %v1383_v33, %v1385_v20  ;;  %v2565_v22 = vrot.slane %v2548_v63, %v11972_v7 }
 0x163   :  { %1416 = vmatprep.subr.mxu0 %v1398_v37 }
 0x164   :  { %1417 = vmatpush1.msra.mxu0 %v1397_v0 }
 0x165   :  { %v1387_v39 = vpop.permute.xlu1 %1386  ;;  %v1393_v40 = vpop.permute.xlu0 %1392  ;;  %11413 = vmatmul.mubr.msk.f32.vlgmr.msra.gmra.mrb[0].mxu0 %vm249_vm5, %v11412_v38 }
 0x166   :  { %v1400_v43 = vsel %vm1396_vm8, %v1385_v20, %v1387_v39  ;;  %1622 = vmatprep.mubr.f32.mxu0 %v14737_v35  ;;  %v1401_v46 = vsel %vm1396_vm8, %v1387_v39, %v1389_v23  ;;  %v11439_v20 = vld [vmem:[%s14730_s1 + $0x7] ss:$8 sm:$0xf0] }
 0x167   :  { %1487 = vmatprep.subr.mxu1 %v1400_v43  ;;  %v2966_v33 = vor.u32 %v11439_v20, %v11438_v31  ;;  %v11445_v43 = vld [vmem:[%s14730_s1 + $0x40] ss:$8 sm:$0xf] }
 0x168   :  { %1488 = vmatpush1.msra.mxu1 %v1399_v24  ;;  %v11446_v24 = vld [vmem:[%s14730_s1 + $0x40] ss:$8 sm:$0xf0] }
 0x169   :  { %v1391_v28 = vpop.permute.xlu1 %1390  ;;  %v1746_v44 = vpop.permute.xlu0 %1745  ;;  %11414 = vmatmul.mubr.msk.f32.vlgmr.msra.gmra.mrb[0].mxu1 %vm249_vm5, %v11412_v38  ;;  %v2971_v37 = vrot.slane %v2966_v33, %v11964_v3  ;;  %v2979_v0 = vrot.slane %v2966_v33, %v11962_v2  ;;  %v2991_v39 = vrot.slane %v2966_v33, %v11982_v13 }
 0x16a   :  { %v1402_v45 = vsel %vm1396_vm8, %v1389_v23, %v1391_v28  ;;  %v1778_v27 = vmul.f32 %v1746_v44, %v12066_v54  ;;  %1693 = vmatprep.mubr.f32.mxu1 %v14737_v35  ;;  %v11425_v54 = vld [vmem:[%s14730_s1 + $0x5] ss:$8 sm:$0xf0]  ;;  %v1403_v50 = vsel %vm1396_vm8, %v1391_v28, %v1393_v40  ;;  %v2975_v23 = vrot.slane %v2966_v33, %v11974_v8 }
 0x16b   :  { %1558 = vmatprep.subr.mxu0 %v1402_v45  ;;  %v2130_v56 = vor.u32 %v11425_v54, %v11424_v49  ;;  %v2999_v28 = vrot.slane %v2966_v33, %v11990_v17  ;;  %v3384_v45 = vor.u32 %v11446_v24, %v11445_v43 }
 0x16c   :  { %1559 = vmatpush1.msra.mxu0 %v1401_v46  ;;  %1798 = vrot.lane.b32.xlu0 %v1778_v27, %s11904_s12 }
 0x16d   :  { %v1395_v47 = vpop.permute.xlu1 %1394  ;;  %11415 = vmatmul.mubr.msk.f32.vlgmr.msra.gmra.mrb[2].mxu0 %vm249_vm5, %v11412_v38  ;;  %v12355_v51 = vpop.permute.xlu0 %1749  ;;  %v2139_v6 = vrot.slane %v2130_v56, %v11974_v8  ;;  %v2135_v9 = vrot.slane %v2130_v56, %v11964_v3  ;;  %v2147_v10 = vrot.slane %v2130_v56, %v11972_v7  ;;  %v2143_v55 = vrot.slane %v2130_v56, %v11962_v2 }
 0x16e   :  { %v1404_v25 = vsel %vm1396_vm8, %v1393_v40, %v1395_v47  ;;  %1899 = vmatprep.mubr.f32.mxu0 %v14737_v35  ;;  %v2155_v59 = vrot.slane %v2130_v56, %v11982_v13  ;;  %v2151_v11 = vrot.slane %v2130_v56, %v11984_v14  ;;  %v2163_v58 = vrot.slane %v2130_v56, %v11990_v17 }
 0x16f   :  { %1629 = vmatprep.subr.mxu1 %v1404_v25  ;;  %v2159_v61 = vrot.slane %v2130_v56, %v11992_v18  ;;  %v2987_v40 = vrot.slane %v2966_v33, %v11984_v14  ;;  %v3393_v27 = vrot.slane %v3384_v45, %v11974_v8  ;;  %v3389_v46 = vrot.slane %v3384_v45, %v11964_v3 }
 0x170   :  { %1630 = vmatpush1.msra.mxu1 %v1403_v50  ;;  %v3401_v47 = vrot.slane %v3384_v45, %v11972_v7  ;;  %v3397_v25 = vrot.slane %v3384_v45, %v11962_v2  ;;  %v3409_v49 = vrot.slane %v3384_v45, %v11982_v13  ;;  %v3405_v54 = vrot.slane %v3384_v45, %v11984_v14  ;;  %v11452_v50 = vld [vmem:[%s14730_s1 + $0x41] ss:$8 sm:$0xf] }
 0x171   :  { %v1748_v52 = vpop.permute.xlu1 %1747  ;;  %11416 = vmatmul.mubr.msk.f32.vlgmr.msra.gmra.mrb[2].mxu1 %vm249_vm5, %v11412_v38  ;;  %v2983_v38 = vrot.slane %v2966_v33, %v11972_v7  ;;  %v3417_v56 = vrot.slane %v3384_v45, %v11990_v17 }
 0x172   :  { %v1762_v57 = vsel %vm1761_vm9, %v1746_v44, %v1748_v52  ;;  %v1763_v1 = vsel %vm1761_vm9, %v1748_v52, %v12355_v51  ;;  %1970 = vmatprep.mubr.f32.mxu1 %v14737_v35  ;;  %v2995_v44 = vrot.slane %v2966_v33, %v11992_v18  ;;  %v11453_v52 = vld [vmem:[%s14730_s1 + $0x41] ss:$8 sm:$0xf0] }
 0x173   :  { %v1780_v4 = vmul.f32 %v1763_v1, %v12115_v29  ;;  %v1779_v5 = vmul.f32 %v1762_v57, %v12122_v34  ;;  %v3413_v57 = vrot.slane %v3384_v45, %v11992_v18  ;;  %v3802_v1 = vor.u32 %v11453_v52, %v11452_v50 }
 0x175   :  { %1802 = vrot.lane.b32.xlu0 %v1780_v4, %s11904_s12  ;;  %1800 = vrot.lane.b32.xlu1 %v1779_v5, %s11904_s12  ;;  %v3811_v4 = vrot.slane %v3802_v1, %v11974_v8  ;;  %v3807_v5 = vrot.slane %v3802_v1, %v11964_v3  ;;  %v3835_v12 = vrot.slane %v3802_v1, %v11990_v17 }
 0x176   :  { %v3831_v15 = vrot.slane %v3802_v1, %v11992_v18 }
 0x179   :  { %2166 = vrot.lane.b32.xlu0 %v2139_v6, %s11903_s7  ;;  %2164 = vrot.lane.b32.xlu1 %v2135_v9, %s11903_s7  ;;  %v3819_v6 = vrot.slane %v3802_v1, %v11972_v7  ;;  %v3815_v9 = vrot.slane %v3802_v1, %v11962_v2 }
 0x17d   :  { %2170 = vrot.lane.b32.xlu0 %v2147_v10, %s11903_s7  ;;  %2168 = vrot.lane.b32.xlu1 %v2143_v55, %s11903_s7  ;;  %v3827_v10 = vrot.slane %v3802_v1, %v11982_v13  ;;  %v3823_v55 = vrot.slane %v3802_v1, %v11984_v14 }
 0x181   :  { %2174 = vrot.lane.b32.xlu0 %v2155_v59, %s11903_s7  ;;  %2172 = vrot.lane.b32.xlu1 %v2151_v11, %s11903_s7  ;;  %v11459_v59 = vld [vmem:[%s14730_s1 + $0x42] ss:$8 sm:$0xf] }
 0x182   :  { %v11460_v11 = vld [vmem:[%s14730_s1 + $0x42] ss:$8 sm:$0xf0] }
 0x185   :  { %2178 = vrot.lane.b32.xlu0 %v2163_v58, %s11903_s7  ;;  %2176 = vrot.lane.b32.xlu1 %v2159_v61, %s11903_s7  ;;  %v4222_v58 = vor.u32 %v11460_v11, %v11459_v59 }
 0x187   :  { %v4231_v61 = vrot.slane %v4222_v58, %v11974_v8  ;;  %v4227_v63 = vrot.slane %v4222_v58, %v11964_v3  ;;  %v4255_v31 = vrot.slane %v4222_v58, %v11990_v17  ;;  %v4251_v20 = vrot.slane %v4222_v58, %v11992_v18 }
 0x189   :  { %2584 = vrot.lane.b32.xlu0 %v2557_v16, %s11901_s30  ;;  %2582 = vrot.lane.b32.xlu1 %v2553_v19, %s11901_s30  ;;  %v4239_v16 = vrot.slane %v4222_v58, %v11972_v7  ;;  %v4235_v19 = vrot.slane %v4222_v58, %v11962_v2 }
 0x18d   :  { %2588 = vrot.lane.b32.xlu0 %v2565_v22, %s11901_s30  ;;  %2586 = vrot.lane.b32.xlu1 %v2561_v60, %s11901_s30  ;;  %v4247_v22 = vrot.slane %v4222_v58, %v11982_v13  ;;  %v4243_v60 = vrot.slane %v4222_v58, %v11984_v14 }
 0x191   :  { %2592 = vrot.lane.b32.xlu0 %v2573_v26, %s11901_s30  ;;  %2590 = vrot.lane.b32.xlu1 %v2569_v30, %s11901_s30  ;;  %v11466_v26 = vld [vmem:[%s14730_s1 + $0x43] ss:$8 sm:$0xf] }
 0x192   :  { %v11467_v30 = vld [vmem:[%s14730_s1 + $0x43] ss:$8 sm:$0xf0] }
 0x195   :  { %2596 = vrot.lane.b32.xlu0 %v2581_v21, %s11901_s30  ;;  %2594 = vrot.lane.b32.xlu1 %v2577_v32, %s11901_s30  ;;  %v4641_v21 = vor.u32 %v11467_v30, %v11466_v26 }
 0x197   :  { %v4650_v32 = vrot.slane %v4641_v21, %v11974_v8  ;;  %v4646_v33 = vrot.slane %v4641_v21, %v11964_v3  ;;  %v4666_v43 = vrot.slane %v4641_v21, %v11982_v13  ;;  %v4662_v24 = vrot.slane %v4641_v21, %v11984_v14 }
 0x198   :  { %v4674_v45 = vrot.slane %v4641_v21, %v11990_v17 }
 0x199   :  { %3002 = vrot.lane.b32.xlu0 %v2975_v23, %s11900_s29  ;;  %3000 = vrot.lane.b32.xlu1 %v2971_v37, %s11900_s29  ;;  %v1754_v23 = vpop.permute.xlu0 %1753  ;;  %v1752_v37 = vpop.permute.xlu1 %1751 }
 0x19d   :  { %3006 = vrot.lane.b32.xlu0 %v2983_v38, %s11900_s29  ;;  %3004 = vrot.lane.b32.xlu1 %v2979_v0, %s11900_s29  ;;  %v4658_v38 = vrot.slane %v4641_v21, %v11972_v7  ;;  %v4654_v0 = vrot.slane %v4641_v21, %v11962_v2 }
 0x1a1   :  { %3010 = vrot.lane.b32.xlu0 %v2991_v39, %s11900_s29  ;;  %3008 = vrot.lane.b32.xlu1 %v2987_v40, %s11900_s29  ;;  %v1758_v39 = vpop.permute.xlu0 %1757  ;;  %v1756_v40 = vpop.permute.xlu1 %1755 }
 0x1a2   :  { %v1767_v58 = vsel %vm1761_vm9, %v1756_v40, %v1758_v39 }
 0x1a5   :  { %3014 = vrot.lane.b32.xlu0 %v2999_v28, %s11900_s29  ;;  %3012 = vrot.lane.b32.xlu1 %v2995_v44, %s11900_s29  ;;  %v1760_v44 = vpop.permute.xlu1 %1759 }
 0x1a9   :  { %3420 = vrot.lane.b32.xlu0 %v3393_v27, %s11899_s28  ;;  %3418 = vrot.lane.b32.xlu1 %v3389_v46, %s11899_s28  ;;  %v4670_v27 = vrot.slane %v4641_v21, %v11992_v18  ;;  %v11473_v46 = vld [vmem:[%s14730_s1 + $0x44] ss:$8 sm:$0xf]  ;;  %v1786_v21 = vmul.f32 %v1760_v44, %v12083_v62 }
 0x1aa   :  { %v12578_v62 = vld [vmem:[#allocation2] sm:$0xff] }
 0x1ad   :  { %3424 = vrot.lane.b32.xlu0 %v3401_v47, %s11899_s28  ;;  %3422 = vrot.lane.b32.xlu1 %v3397_v25, %s11899_s28  ;;  %v11474_v47 = vld [vmem:[%s14730_s1 + $0x44] ss:$8 sm:$0xf0]  ;;  %v1764_v25 = vsel %vm1761_vm9, %v12355_v51, %v1752_v37 }
 0x1ae   :  { %v1781_v50 = vmul.f32 %v1764_v25, %v12138_v42 }
 0x1b1   :  { %3428 = vrot.lane.b32.xlu0 %v3409_v49, %s11899_s28  ;;  %3426 = vrot.lane.b32.xlu1 %v3405_v54, %s11899_s28  ;;  %v1765_v49 = vsel %vm1761_vm9, %v1752_v37, %v1754_v23  ;;  %v12523_v54 = vor.u32 %v11474_v47, %v11473_v46 }
 0x1b2   :  { %v1782_v52 = vmul.f32 %v1765_v49, %v12128_v36 }
 0x1b3   :  { %v5074_v59 = vrot.slane %v12523_v54, %v11962_v2  ;;  %v5090_v37 = vrot.slane %v12523_v54, %v11992_v18 }
 0x1b5   :  { %3432 = vrot.lane.b32.xlu0 %v3417_v56, %s11899_s28  ;;  %3430 = vrot.lane.b32.xlu1 %v3413_v57, %s11899_s28 }
 0x1b9   :  { %3838 = vrot.lane.b32.xlu0 %v3811_v4, %s11905_s8  ;;  %3836 = vrot.lane.b32.xlu1 %v3807_v5, %s11905_s8  ;;  %v5070_v4 = vrot.slane %v12523_v54, %v11974_v8  ;;  %v5066_v5 = vrot.slane %v12523_v54, %v11964_v3 }
 0x1bd   :  { %3842 = vrot.lane.b32.xlu0 %v3819_v6, %s11905_s8  ;;  %3840 = vrot.lane.b32.xlu1 %v3815_v9, %s11905_s8  ;;  %v12541_v6 = vld [vmem:[%s14731_s2 + $0x20] sm:$0xff] }
 0x1c1   :  { %3846 = vrot.lane.b32.xlu0 %v3827_v10, %s11905_s8  ;;  %3844 = vrot.lane.b32.xlu1 %v3823_v55, %s11905_s8  ;;  %v1766_v55 = vsel %vm1761_vm9, %v1754_v23, %v1756_v40 }
 0x1c2   :  { %v1783_v11 = vmul.f32 %v1766_v55, %v12148_v48 }
 0x1c5   :  { %3850 = vrot.lane.b32.xlu0 %v3835_v12, %s11905_s8  ;;  %3848 = vrot.lane.b32.xlu1 %v3831_v15, %s11905_s8 }
 0x1c9   :  { %4258 = vrot.lane.b32.xlu0 %v4231_v61, %s11906_s14  ;;  %4256 = vrot.lane.b32.xlu1 %v4227_v63, %s11906_s14  ;;  %v5078_v61 = vrot.slane %v12523_v54, %v11972_v7  ;;  %v1784_v63 = vmul.f32 %v1767_v58, %v12136_v41 }
 0x1cd   :  { %4262 = vrot.lane.b32.xlu0 %v4239_v16, %s11906_s14  ;;  %4260 = vrot.lane.b32.xlu1 %v4235_v19, %s11906_s14 }
 0x1d1   :  { %4266 = vrot.lane.b32.xlu0 %v4247_v22, %s11906_s14  ;;  %4264 = vrot.lane.b32.xlu1 %v4243_v60, %s11906_s14  ;;  %v1768_v22 = vsel %vm1761_vm9, %v1758_v39, %v1760_v44  ;;  %v5082_v60 = vrot.slane %v12523_v54, %v11984_v14 }
 0x1d2   :  { %v1785_v26 = vmul.f32 %v1768_v22, %v12158_v53 }
 0x1d5   :  { %4270 = vrot.lane.b32.xlu0 %v4255_v31, %s11906_s14  ;;  %4268 = vrot.lane.b32.xlu1 %v4251_v20, %s11906_s14  ;;  %v5086_v20 = vrot.slane %v12523_v54, %v11982_v13 }
 0x1d9   :  { %4677 = vrot.lane.b32.xlu0 %v4650_v32, %s11907_s20  ;;  %4675 = vrot.lane.b32.xlu1 %v4646_v33, %s11907_s20 }
 0x1dd   :  { %4681 = vrot.lane.b32.xlu0 %v4658_v38, %s11907_s20  ;;  %4679 = vrot.lane.b32.xlu1 %v4654_v0, %s11907_s20 }
 0x1de   :  { %v1799_v28 = vpop.permute.xlu0 %1798 }
 0x1e1   :  { %4685 = vrot.lane.b32.xlu0 %v4666_v43, %s11907_s20  ;;  %4683 = vrot.lane.b32.xlu1 %v4662_v24, %s11907_s20 }
 0x1e5   :  { %4689 = vrot.lane.b32.xlu0 %v4674_v45, %s11907_s20  ;;  %4687 = vrot.lane.b32.xlu1 %v4670_v27, %s11907_s20  ;;  %v5094_v27 = vrot.slane %v12523_v54, %v11990_v17 }
 0x1e7   :  { %v12527_v56 = vpop.permute.xlu0 %1802  ;;  %v1801_v57 = vpop.permute.xlu1 %1800 }
 0x1e8   :  { %v1817_v1 = vsel %vm1761_vm9, %v1801_v57, %v12527_v56  ;;  %v1816_v51 = vsel %vm1761_vm9, %v1799_v28, %v1801_v57 }
 0x1e9   :  { %1806 = vrot.lane.b32.xlu0 %v1782_v52, %s11904_s12  ;;  %1804 = vrot.lane.b32.xlu1 %v1781_v50, %s11904_s12 }
 0x1ea   :  { %1835 = vmatprep.subr.mxu0 %v1817_v1 }
 0x1eb   :  { %1836 = vmatpush1.msra.mxu0 %v1816_v51  ;;  %v2167_v9 = vpop.permute.xlu0 %2166  ;;  %v2165_v10 = vpop.permute.xlu1 %2164 }
 0x1ec   :  { %11420 = vmatmul.mubr.msk.f32.vlgmr.msra.gmra.mrb[0].mxu0 %vm249_vm5, %v12541_v6  ;;  %v2180_v23 = vsel %vm1396_vm8, %v2165_v10, %v2167_v9  ;;  %v2196_v43 = vmul.f32 %v12578_v62, %v2165_v10 }
 0x1ed   :  { %5097 = vrot.lane.b32.xlu0 %v5070_v4, %s11908_s10  ;;  %5095 = vrot.lane.b32.xlu1 %v5066_v5, %s11908_s10  ;;  %v2197_v38 = vmul.f32 %v2180_v23, %v12122_v34 }
 0x1ee   :  { %2041 = vmatprep.mubr.f32.mxu0 %v14737_v35 }
 0x1ef   :  { %v2171_v12 = vpop.permute.xlu0 %2170  ;;  %v2169_v15 = vpop.permute.xlu1 %2168 }
 0x1f0   :  { %v2181_v40 = vsel %vm1396_vm8, %v2167_v9, %v2169_v15  ;;  %v2182_v45 = vsel %vm1396_vm8, %v2169_v15, %v2171_v12  ;;  %v12617_v9 = vld [vmem:[#allocation2 + $0x40] sm:$0xff]  ;;  %v12635_v15 = vld [vmem:[#allocation2 + $0x10] sm:$0xff] }
 0x1f1   :  { %5099 = vrot.lane.b32.xlu1 %v5074_v59, %s11908_s10  ;;  %1808 = vrot.lane.b32.xlu0 %v1783_v11, %s11904_s12  ;;  %v2198_v24 = vmul.f32 %v2181_v40, %v12115_v29  ;;  %v2199_v46 = vmul.f32 %v2182_v45, %v12138_v42  ;;  %v11487_v11 = vld [vmem:[%s14730_s1 + $0x46] ss:$8 sm:$0xf] }
 0x1f3   :  { %v2175_v16 = vpop.permute.xlu0 %2174  ;;  %v2173_v19 = vpop.permute.xlu1 %2172 }
 0x1f4   :  { %v2183_v29 = vsel %vm1396_vm8, %v2171_v12, %v2173_v19  ;;  %v2184_v49 = vsel %vm1396_vm8, %v2173_v19, %v2175_v16  ;;  %v11488_v12 = vld [vmem:[%s14730_s1 + $0x46] ss:$8 sm:$0xf0] }
 0x1f5   :  { %1810 = vrot.lane.b32.xlu1 %v1784_v63, %s11904_s12  ;;  %5101 = vrot.lane.b32.xlu0 %v5078_v61, %s11908_s10  ;;  %v2200_v50 = vmul.f32 %v2183_v29, %v12128_v36  ;;  %v2201_v52 = vmul.f32 %v2184_v49, %v12148_v48  ;;  %v12646_v22 = vor.u32 %v11488_v12, %v11487_v11  ;;  %v12726_v11 = vld [vmem:[#allocation2 + $0x8] sm:$0xff] }
 0x1f7   :  { %v2179_v30 = vpop.permute.xlu0 %2178  ;;  %v2177_v31 = vpop.permute.xlu1 %2176  ;;  %v5857_v45 = vrot.slane %v12646_v22, %v11972_v7 }
 0x1f8   :  { %v2185_v42 = vsel %vm1396_vm8, %v2175_v16, %v2177_v31  ;;  %v2186_v1 = vsel %vm1396_vm8, %v2177_v31, %v2179_v30  ;;  %v2204_v10 = vmul.f32 %v12617_v9, %v2179_v30  ;;  %v12651_v30 = vld [vmem:[#allocation2 + $0x20] sm:$0xff] }
 0x1f9   :  { %5103 = vrot.lane.b32.xlu1 %v5082_v60, %s11908_s10  ;;  %1812 = vrot.lane.b32.xlu0 %v1785_v26, %s11904_s12  ;;  %v2202_v51 = vmul.f32 %v2185_v42, %v12136_v41  ;;  %v2203_v4 = vmul.f32 %v2186_v1, %v12158_v53  ;;  %v12648_v60 = vld [vmem:[#allocation2 + $0x18] sm:$0xff] }
 0x1fb   :  { %v2585_v32 = vpop.permute.xlu0 %2584  ;;  %v2583_v33 = vpop.permute.xlu1 %2582 }
 0x1fc   :  { %v2598_v48 = vsel %vm976_vm7, %v2583_v33, %v2585_v32 }
 0x1fd   :  { %1814 = vrot.lane.b32.xlu1 %v1786_v21, %s11904_s12  ;;  %5105 = vrot.lane.b32.xlu0 %v5086_v20, %s11908_s10  ;;  %v2615_v55 = vmul.f32 %v2598_v48, %v12122_v34  ;;  %v2614_v34 = vmul.f32 %v12578_v62, %v2583_v33  ;;  %v5849_v33 = vrot.slane %v12646_v22, %v11974_v8 }
 0x1ff   :  { %v2589_v0 = vpop.permute.xlu0 %2588  ;;  %v2587_v39 = vpop.permute.xlu1 %2586 }
 0x200   :  { %v2599_v53 = vsel %vm976_vm7, %v2585_v32, %v2587_v39  ;;  %v2600_v16 = vsel %vm976_vm7, %v2587_v39, %v2589_v0  ;;  %v5845_v32 = vrot.slane %v12646_v22, %v11964_v3  ;;  %v12674_v39 = vld [vmem:[#allocation2 + $0x28] sm:$0xff] }
 0x201   :  { %5107 = vrot.lane.b32.xlu1 %v5090_v37, %s11908_s10  ;;  %2218 = vrot.lane.b32.xlu0 %v2197_v38, %s11898_s27  ;;  %v2616_v58 = vmul.f32 %v12635_v15, %v2599_v53  ;;  %v2617_v26 = vmul.f32 %v12648_v60, %v2600_v16  ;;  %v5869_v53 = vrot.slane %v12646_v22, %v11992_v18  ;;  %v11494_v16 = vld [vmem:[%s14730_s1 + $0x47] ss:$8 sm:$0xf] }
 0x203   :  { %v12582_v28 = vpop.permute.xlu0 %2592  ;;  %v2591_v44 = vpop.permute.xlu1 %2590 }
 0x204   :  { %v2601_v19 = vsel %vm976_vm7, %v2589_v0, %v2591_v44  ;;  %v2602_v38 = vsel %vm976_vm7, %v2591_v44, %v12582_v28  ;;  %v5853_v0 = vrot.slane %v12646_v22, %v11962_v2 }
 0x205   :  { %2216 = vrot.lane.b32.xlu0 %v2196_v43, %s11898_s27  ;;  %2220 = vrot.lane.b32.xlu1 %v2198_v24, %s11898_s27  ;;  %v2618_v31 = vmul.f32 %v12651_v30, %v2601_v19  ;;  %v2619_v40 = vmul.f32 %v12674_v39, %v2602_v38  ;;  %v11495_v19 = vld [vmem:[%s14730_s1 + $0x47] ss:$8 sm:$0xf0]  ;;  %v5873_v38 = vrot.slane %v12646_v22, %v11990_v17 }
 0x207   :  { %v12590_v47 = vpop.permute.xlu0 %2596  ;;  %v12592_v25 = vpop.permute.xlu1 %2594 }
 0x208   :  { %v2603_v44 = vsel %vm976_vm7, %v12582_v28, %v12592_v25  ;;  %v5861_v28 = vrot.slane %v12646_v22, %v11984_v14 }
 0x209   :  { %2222 = vrot.lane.b32.xlu0 %v2199_v46, %s11898_s27  ;;  %5109 = vrot.lane.b32.xlu1 %v5094_v27, %s11908_s10  ;;  %v12688_v27 = vld [vmem:[#allocation2 + $0x30] sm:$0xff] }
 0x20a   :  { %v2620_v46 = vmul.f32 %v12688_v27, %v2603_v44 }
 0x20b   :  { %v12600_v57 = vpop.permute.xlu0 %3002  ;;  %v12602_v54 = vpop.permute.xlu1 %3000 }
 0x20d   :  { %2226 = vrot.lane.b32.xlu0 %v2201_v52, %s11898_s27  ;;  %2224 = vrot.lane.b32.xlu1 %v2200_v50, %s11898_s27  ;;  %v2604_v50 = vsel %vm976_vm7, %v12592_v25, %v12590_v47  ;;  %v12702_v52 = vld [vmem:[#allocation2 + $0x38] sm:$0xff]  ;;  %v5865_v25 = vrot.slane %v12646_v22, %v11982_v13 }
 0x20e   :  { %v2621_v42 = vmul.f32 %v12702_v52, %v2604_v50 }
 0x20f   :  { %v12610_v5 = vpop.permute.xlu0 %3006  ;;  %v12612_v36 = vpop.permute.xlu1 %3004 }
 0x211   :  { %2230 = vrot.lane.b32.xlu0 %v2203_v4, %s11898_s27  ;;  %2228 = vrot.lane.b32.xlu1 %v2202_v51, %s11898_s27  ;;  %v2622_v4 = vmul.f32 %v12617_v9, %v12590_v47 }
 0x213   :  { %v12621_v59 = vpop.permute.xlu0 %3010  ;;  %v12623_v41 = vpop.permute.xlu1 %3008 }
 0x215   :  { %2232 = vrot.lane.b32.xlu1 %v2204_v10, %s11898_s27  ;;  %2636 = vrot.lane.b32.xlu0 %v2615_v55, %s11897_s22  ;;  %v3016_v55 = vsel %vm14736_vm4, %v12602_v54, %v12600_v57 }
 0x216   :  { %v3033_v12 = vmul.f32 %v12726_v11, %v3016_v55 }
 0x217   :  { %v12638_v61 = vpop.permute.xlu0 %3014  ;;  %v12640_v63 = vpop.permute.xlu1 %3012 }
 0x218   :  { %v3021_v55 = vsel %vm14736_vm4, %v12621_v59, %v12640_v63 }
 0x219   :  { %2634 = vrot.lane.b32.xlu0 %v2614_v34, %s11897_s22  ;;  %2638 = vrot.lane.b32.xlu1 %v2616_v58, %s11897_s22  ;;  %v3017_v58 = vsel %vm14736_vm4, %v12600_v57, %v12612_v36 }
 0x21b   :  { %v12654_v20 = vpop.permute.xlu0 %3420  ;;  %v12656_v21 = vpop.permute.xlu1 %3418 }
 0x21d   :  { %2640 = vrot.lane.b32.xlu1 %v2617_v26, %s11897_s22  ;;  %2642 = vrot.lane.b32.xlu0 %v2618_v31, %s11897_s22  ;;  %v3032_v26 = vmul.f32 %v12578_v62, %v12602_v54  ;;  %v3034_v31 = vmul.f32 %v12635_v15, %v3017_v58 }
 0x21f   :  { %v12664_v23 = vpop.permute.xlu0 %3424  ;;  %v12666_v37 = vpop.permute.xlu1 %3422 }
 0x221   :  { %5874 = vrot.lane.b32.xlu1 %v5845_v32, %s11909_s18  ;;  %5876 = vrot.lane.b32.xlu0 %v5849_v33, %s11909_s18  ;;  %v3018_v33 = vsel %vm14736_vm4, %v12612_v36, %v12610_v5 }
 0x222   :  { %v3035_v54 = vmul.f32 %v12648_v60, %v3018_v33  ;;  %v3040_v33 = vmul.f32 %v12617_v9, %v12638_v61 }
 0x223   :  { %v12677_v43 = vpop.permute.xlu0 %3428  ;;  %v12679_v24 = vpop.permute.xlu1 %3426 }
 0x225   :  { %5878 = vrot.lane.b32.xlu1 %v5853_v0, %s11909_s18  ;;  %2644 = vrot.lane.b32.xlu0 %v2619_v40, %s11897_s22  ;;  %v12758_v0 = vor.u32 %v11495_v19, %v11494_v16 }
 0x227   :  { %v12691_v29 = vpop.permute.xlu0 %3432  ;;  %v12693_v49 = vpop.permute.xlu1 %3430  ;;  %v6263_v36 = vrot.slane %v12758_v0, %v11964_v3 }
 0x229   :  { %5880 = vrot.lane.b32.xlu0 %v5857_v45, %s11909_s18  ;;  %2646 = vrot.lane.b32.xlu1 %v2620_v46, %s11897_s22  ;;  %v3019_v45 = vsel %vm14736_vm4, %v12610_v5, %v12623_v41  ;;  %v6271_v5 = vrot.slane %v12758_v0, %v11962_v2 }
 0x22a   :  { %v3036_v22 = vmul.f32 %v12651_v30, %v3019_v45 }
 0x22b   :  { %v12705_v1 = vpop.permute.xlu0 %3838  ;;  %v12707_v51 = vpop.permute.xlu1 %3836 }
 0x22d   :  { %2648 = vrot.lane.b32.xlu0 %v2621_v42, %s11897_s22  ;;  %5882 = vrot.lane.b32.xlu1 %v5861_v28, %s11909_s18  ;;  %v6267_v28 = vrot.slane %v12758_v0, %v11974_v8 }
 0x22f   :  { %v12715_v48 = vpop.permute.xlu0 %3842  ;;  %v12717_v10 = vpop.permute.xlu1 %3840 }
 0x231   :  { %5884 = vrot.lane.b32.xlu0 %v5865_v25, %s11909_s18  ;;  %2650 = vrot.lane.b32.xlu1 %v2622_v4, %s11897_s22  ;;  %v3020_v4 = vsel %vm14736_vm4, %v12623_v41, %v12621_v59  ;;  %v6275_v41 = vrot.slane %v12758_v0, %v11972_v7  ;;  %v6279_v59 = vrot.slane %v12758_v0, %v11984_v14 }
 0x233   :  { %v12729_v47 = vpop.permute.xlu0 %3846  ;;  %v12731_v34 = vpop.permute.xlu1 %3844 }
 0x235   :  { %5886 = vrot.lane.b32.xlu1 %v5869_v53, %s11909_s18  ;;  %3054 = vrot.lane.b32.xlu0 %v3033_v12, %s11896_s17  ;;  %v3037_v53 = vmul.f32 %v12674_v39, %v3020_v4  ;;  %v3038_v12 = vmul.f32 %v12688_v27, %v3021_v55 }
 0x237   :  { %v12747_v32 = vpop.permute.xlu0 %3850  ;;  %v12749_v57 = vpop.permute.xlu1 %3848 }
 0x239   :  { %3052 = vrot.lane.b32.xlu0 %v3032_v26, %s11896_s17  ;;  %3056 = vrot.lane.b32.xlu1 %v3034_v31, %s11896_s17  ;;  %v3022_v31 = vsel %vm14736_vm4, %v12640_v63, %v12638_v61  ;;  %v6283_v63 = vrot.slane %v12758_v0, %v11982_v13  ;;  %v3434_v61 = vsel %vm564_vm6, %v12656_v21, %v12654_v20  ;;  %vm4746_vm4 = vcmask 56320  }
 0x23a   :  { %v3451_v4 = vmul.f32 %v12726_v11, %v3434_v61 }
 0x23b   :  { %v12761_v40 = vpop.permute.xlu0 %4258  ;;  %v12763_v44 = vpop.permute.xlu1 %4256 }
 0x23d   :  { %3058 = vrot.lane.b32.xlu0 %v3035_v54, %s11896_s17  ;;  %5888 = vrot.lane.b32.xlu1 %v5873_v38, %s11909_s18  ;;  %v3039_v38 = vmul.f32 %v12702_v52, %v3022_v31  ;;  %v3450_v31 = vmul.f32 %v12578_v62, %v12656_v21 }
 0x23f   :  { %v12773_v46 = vpop.permute.xlu0 %4262  ;;  %v12775_v50 = vpop.permute.xlu1 %4260 }
 0x241   :  { %6292 = vrot.lane.b32.xlu0 %v6263_v36, %s11910_s25  ;;  %3060 = vrot.lane.b32.xlu1 %v3036_v22, %s11896_s17  ;;  %v6287_v36 = vrot.slane %v12758_v0, %v11992_v18 }
 0x243   :  { %v12783_v42 = vpop.permute.xlu0 %4266  ;;  %v12785_v25 = vpop.permute.xlu1 %4264 }
 0x245   :  { %6296 = vrot.lane.b32.xlu0 %v6271_v5, %s11910_s25  ;;  %6294 = vrot.lane.b32.xlu1 %v6267_v28, %s11910_s25  ;;  %v3435_v28 = vsel %vm564_vm6, %v12654_v20, %v12666_v37  ;;  %v11501_v20 = vld [vmem:[%s14730_s1 + $0x80] ss:$8 sm:$0xf] }
 0x246   :  { %v3452_v55 = vmul.f32 %v12635_v15, %v3435_v28 }
 0x247   :  { %v12797_v58 = vpop.permute.xlu0 %4270  ;;  %v12799_v16 = vpop.permute.xlu1 %4268 }
 0x249   :  { %3062 = vrot.lane.b32.xlu1 %v3037_v53, %s11896_s17  ;;  %3064 = vrot.lane.b32.xlu0 %v3038_v12, %s11896_s17 }
 0x24b   :  { %v12807_v19 = vpop.permute.xlu0 %4677  ;;  %v12809_v26 = vpop.permute.xlu1 %4675 }
 0x24d   :  { %6298 = vrot.lane.b32.xlu1 %v6275_v41, %s11910_s25  ;;  %6300 = vrot.lane.b32.xlu0 %v6279_v59, %s11910_s25  ;;  %v6291_v41 = vrot.slane %v12758_v0, %v11990_v17  ;;  %v11502_v59 = vld [vmem:[%s14730_s1 + $0x80] ss:$8 sm:$0xf0]  ;;  %v3437_v0 = vsel %vm564_vm6, %v12664_v23, %v12679_v24 }
 0x24e   :  { %v12870_v21 = vor.u32 %v11502_v59, %v11501_v20  ;;  %v3438_v59 = vsel %vm564_vm6, %v12679_v24, %v12677_v43 }
 0x24f   :  { %v12819_v54 = vpop.permute.xlu0 %4681  ;;  %v12821_v45 = vpop.permute.xlu1 %4679 }
 0x250   :  { %v6693_v24 = vrot.slane %v12870_v21, %v11972_v7 }
 0x251   :  { %3066 = vrot.lane.b32.xlu1 %v3039_v38, %s11896_s17  ;;  %3068 = vrot.lane.b32.xlu0 %v3040_v33, %s11896_s17 }
 0x253   :  { %v12829_v22 = vpop.permute.xlu0 %4685  ;;  %v12831_v5 = vpop.permute.xlu1 %4683 }
 0x255   :  { %6302 = vrot.lane.b32.xlu1 %v6283_v63, %s11910_s25  ;;  %6304 = vrot.lane.b32.xlu0 %v6287_v36, %s11910_s25  ;;  %v3436_v63 = vsel %vm564_vm6, %v12666_v37, %v12664_v23  ;;  %v3454_v37 = vmul.f32 %v12651_v30, %v3437_v0 }
 0x256   :  { %v3453_v28 = vmul.f32 %v12648_v60, %v3436_v63 }
 0x257   :  { %v12843_v53 = vpop.permute.xlu0 %4689  ;;  %v12845_v12 = vpop.permute.xlu1 %4687 }
 0x259   :  { %3472 = vrot.lane.b32.xlu1 %v3451_v4, %s11895_s0  ;;  %3474 = vrot.lane.b32.xlu0 %v3452_v55, %s11895_s0  ;;  %v6685_v55 = vrot.slane %v12870_v21, %v11974_v8 }
 0x25b   :  { %v1807_v33 = vpop.permute.xlu0 %1806  ;;  %v1805_v38 = vpop.permute.xlu1 %1804 }
 0x25c   :  { %v1819_v36 = vsel %vm1761_vm9, %v1805_v38, %v1807_v33  ;;  %v1818_v61 = vsel %vm1761_vm9, %v12527_v56, %v1805_v38  ;;  %v6681_v56 = vrot.slane %v12870_v21, %v11964_v3  ;;  %v3455_v38 = vmul.f32 %v12674_v39, %v3438_v59 }
 0x25d   :  { %3470 = vrot.lane.b32.xlu1 %v3450_v31, %s11895_s0  ;;  %6306 = vrot.lane.b32.xlu0 %v6291_v41, %s11910_s25  ;;  %v6689_v31 = vrot.slane %v12870_v21, %v11962_v2 }
 0x25e   :  { %1906 = vmatprep.subr.mxu1 %v1819_v36  ;;  %v3439_v36 = vsel %vm564_vm6, %v12677_v43, %v12693_v49  ;;  %v3440_v43 = vsel %vm564_vm6, %v12693_v49, %v12691_v29  ;;  %v6701_v49 = vrot.slane %v12870_v21, %v11982_v13 }
 0x25f   :  { %1907 = vmatpush1.msra.mxu1 %v1818_v61  ;;  %v12874_v4 = vpop.permute.xlu0 %5097  ;;  %v12876_v23 = vpop.permute.xlu1 %5095 }
 0x260   :  { %11421 = vmatmul.mubr.msk.f32.vlgmr.msra.gmra.mrb[0].mxu1 %vm249_vm5, %v12541_v6 }
 0x261   :  { %3476 = vrot.lane.b32.xlu1 %v3453_v28, %s11895_s0  ;;  %3478 = vrot.lane.b32.xlu0 %v3454_v37, %s11895_s0  ;;  %v3456_v37 = vmul.f32 %v12688_v27, %v3439_v36 }
 0x262   :  { %2112 = vmatprep.mubr.f32.mxu1 %v14737_v35 }
 0x263   :  { %v1809_v41 = vpop.permute.xlu0 %1808  ;;  %v12887_v20 = vpop.permute.xlu1 %5099 }
 0x264   :  { %v1820_v28 = vsel %vm1761_vm9, %v1807_v33, %v1809_v41  ;;  %v6697_v33 = vrot.slane %v12870_v21, %v11984_v14 }
 0x265   :  { %6710 = vrot.lane.b32.xlu1 %v6681_v56, %s11911_s15  ;;  %6712 = vrot.lane.b32.xlu0 %v6685_v55, %s11911_s15 }
 0x267   :  { %v12897_v63 = vpop.permute.xlu0 %5101  ;;  %v1811_v0 = vpop.permute.xlu1 %1810 }
 0x268   :  { %v1821_v61 = vsel %vm1761_vm9, %v1809_v41, %v1811_v0  ;;  %v3457_v41 = vmul.f32 %v12702_v52, %v3440_v43 }
 0x269   :  { %6714 = vrot.lane.b32.xlu1 %v6689_v31, %s11911_s15  ;;  %3480 = vrot.lane.b32.xlu0 %v3455_v38, %s11895_s0 }
 0x26a   :  { %1977 = vmatprep.subr.mxu0 %v1821_v61  ;;  %v3458_v61 = vmul.f32 %v12617_v9, %v12691_v29 }
 0x26b   :  { %1978 = vmatpush1.msra.mxu0 %v1820_v28  ;;  %v1813_v56 = vpop.permute.xlu0 %1812  ;;  %v12909_v55 = vpop.permute.xlu1 %5103 }
 0x26c   :  { %11422 = vmatmul.mubr.msk.f32.vlgmr.msra.gmra.mrb[2].mxu0 %vm249_vm5, %v12541_v6  ;;  %v1822_v36 = vsel %vm1761_vm9, %v1811_v0, %v1813_v56  ;;  %v6705_v0 = vrot.slane %v12870_v21, %v11992_v18 }
 0x26d   :  { %6716 = vrot.lane.b32.xlu0 %v6693_v24, %s11911_s15  ;;  %3482 = vrot.lane.b32.xlu1 %v3456_v37, %s11895_s0  ;;  %v3853_v37 = vsel %vm3852_vm10, %v12707_v51, %v12705_v1 }
 0x26e   :  { %2317 = vmatprep.mubr.f32.mxu0 %v14737_v35  ;;  %v3870_v29 = vmul.f32 %v12726_v11, %v3853_v37  ;;  %v3855_v37 = vsel %vm3852_vm10, %v12717_v10, %v12715_v48 }
 0x26f   :  { %v12922_v59 = vpop.permute.xlu0 %5105  ;;  %v1815_v31 = vpop.permute.xlu1 %1814 }
 0x270   :  { %v1823_v38 = vsel %vm1761_vm9, %v1813_v56, %v1815_v31  ;;  %v11426_v31 = vld [vmem:[%s14731_s2 + $0x28] sm:$0xff] }
 0x271   :  { %3484 = vrot.lane.b32.xlu0 %v3457_v41, %s11895_s0  ;;  %6718 = vrot.lane.b32.xlu1 %v6697_v33, %s11911_s15  ;;  %v3854_v33 = vsel %vm3852_vm10, %v12705_v1, %v12717_v10  ;;  %v11509_v1 = vld [vmem:[%s14730_s1 + $0x81] ss:$8 sm:$0xf0]  ;;  %v3856_v10 = vsel %vm3852_vm10, %v12715_v48, %v12731_v34 }
 0x272   :  { %2048 = vmatprep.subr.mxu1 %v1823_v38  ;;  %v11508_v38 = vld [vmem:[%s14730_s1 + $0x81] ss:$8 sm:$0xf] }
 0x273   :  { %2049 = vmatpush1.msra.mxu1 %v1822_v36  ;;  %v2219_v24 = vpop.permute.xlu0 %2218  ;;  %v12932_v28 = vpop.permute.xlu1 %5107  ;;  %v3871_v36 = vmul.f32 %v12635_v15, %v3854_v33 }
 0x274   :  { %11423 = vmatmul.mubr.msk.f32.vlgmr.msra.gmra.mrb[2].mxu1 %vm249_vm5, %v12541_v6 }
 0x275   :  { %6720 = vrot.lane.b32.xlu0 %v6701_v49, %s11911_s15  ;;  %3486 = vrot.lane.b32.xlu1 %v3458_v61, %s11895_s0  ;;  %v3869_v49 = vmul.f32 %v12578_v62, %v12707_v51  ;;  %v12974_v51 = vor.u32 %v11509_v1, %v11508_v38  ;;  %v3873_v38 = vmul.f32 %v12651_v30, %v3856_v10 }
 0x276   :  { %2388 = vmatprep.mubr.f32.mxu1 %v14737_v35  ;;  %v3858_v10 = vsel %vm3852_vm10, %v12729_v47, %v12749_v57 }
 0x277   :  { %v2217_v56 = vpop.permute.xlu0 %2216  ;;  %v2221_v43 = vpop.permute.xlu1 %2220  ;;  %v7107_v48 = vrot.slane %v12974_v51, %v11962_v2 }
 0x278   :  { %v2234_v41 = vsel %vm1341_vm3, %v2217_v56, %v2219_v24  ;;  %v2235_v6 = vsel %vm1341_vm3, %v2219_v24, %v2221_v43 }
 0x279   :  { %6722 = vrot.lane.b32.xlu1 %v6705_v0, %s11911_s15  ;;  %3891 = vrot.lane.b32.xlu0 %v3870_v29, %s11912_s16  ;;  %v6709_v0 = vrot.slane %v12870_v21, %v11990_v17  ;;  %v3872_v29 = vmul.f32 %v12648_v60, %v3855_v37  ;;  %v7099_v21 = vrot.slane %v12974_v51, %v11964_v3 }
 0x27a   :  { %2253 = vmatprep.subr.mxu0 %v2235_v6  ;;  %v7103_v37 = vrot.slane %v12974_v51, %v11974_v8 }
 0x27b   :  { %2254 = vmatpush1.msra.mxu0 %v2234_v41  ;;  %v2223_v61 = vpop.permute.xlu0 %2222  ;;  %v12964_v24 = vpop.permute.xlu1 %5109 }
 0x27c   :  { %11427 = vmatmul.mubr.msk.f32.vlgmr.msra.gmra.mrb[0].mxu0 %vm249_vm5, %v11426_v31  ;;  %v2236_v6 = vsel %vm1341_vm3, %v2221_v43, %v2223_v61 }
 0x27d   :  { %3889 = vrot.lane.b32.xlu0 %v3869_v49, %s11912_s16  ;;  %3893 = vrot.lane.b32.xlu1 %v3871_v36, %s11912_s16 }
 0x27e   :  { %2459 = vmatprep.mubr.f32.mxu0 %v14737_v35 }
 0x27f   :  { %v2227_v56 = vpop.permute.xlu0 %2226  ;;  %v2225_v33 = vpop.permute.xlu1 %2224 }
 0x280   :  { %v2237_v41 = vsel %vm1341_vm3, %v2223_v61, %v2225_v33  ;;  %v2238_v43 = vsel %vm1341_vm3, %v2225_v33, %v2227_v56 }
 0x281   :  { %3895 = vrot.lane.b32.xlu0 %v3872_v29, %s11912_s16  ;;  %6724 = vrot.lane.b32.xlu1 %v6709_v0, %s11911_s15  ;;  %v3857_v29 = vsel %vm3852_vm10, %v12731_v34, %v12729_v47  ;;  %v3875_v34 = vmul.f32 %v12688_v27, %v3858_v10 }
 0x282   :  { %2324 = vmatprep.subr.mxu1 %v2237_v41  ;;  %v3874_v33 = vmul.f32 %v12674_v39, %v3857_v29 }
 0x283   :  { %2325 = vmatpush1.msra.mxu1 %v2236_v6  ;;  %v2231_v1 = vpop.permute.xlu0 %2230  ;;  %v2229_v49 = vpop.permute.xlu1 %2228 }
 0x284   :  { %v2239_v36 = vsel %vm1341_vm3, %v2227_v56, %v2229_v49  ;;  %11428 = vmatmul.mubr.msk.f32.vlgmr.msra.gmra.mrb[0].mxu1 %vm249_vm5, %v11426_v31  ;;  %v2240_v56 = vsel %vm1341_vm3, %v2229_v49, %v2231_v1  ;;  %v7111_v49 = vrot.slane %v12974_v51, %v11972_v7 }
 0x285   :  { %7128 = vrot.lane.b32.xlu0 %v7099_v21, %s11912_s16  ;;  %3897 = vrot.lane.b32.xlu1 %v3873_v38, %s11912_s16 }
 0x286   :  { %2395 = vmatprep.subr.mxu0 %v2239_v36  ;;  %2530 = vmatprep.mubr.f32.mxu1 %v14737_v35  ;;  %v13024_v36 = vld [vmem:[%s14731_s2 + $0x30] sm:$0xff] }
 0x287   :  { %2396 = vmatpush1.msra.mxu0 %v2238_v43  ;;  %v2637_v61 = vpop.permute.xlu0 %2636  ;;  %v2233_v0 = vpop.permute.xlu1 %2232 }
 0x288   :  { %v2241_v41 = vsel %vm1341_vm3, %v2231_v1, %v2233_v0  ;;  %11429 = vmatmul.mubr.msk.f32.vlgmr.msra.gmra.mrb[2].mxu0 %vm249_vm5, %v11426_v31  ;;  %v7115_v1 = vrot.slane %v12974_v51, %v11984_v14  ;;  %v3877_v0 = vmul.f32 %v12617_v9, %v12747_v32 }
 0x289   :  { %7132 = vrot.lane.b32.xlu0 %v7107_v48, %s11912_s16  ;;  %7130 = vrot.lane.b32.xlu1 %v7103_v37, %s11912_s16  ;;  %v3859_v37 = vsel %vm3852_vm10, %v12749_v57, %v12747_v32  ;;  %v7119_v32 = vrot.slane %v12974_v51, %v11982_v13 }
 0x28a   :  { %2466 = vmatprep.subr.mxu1 %v2241_v41  ;;  %2735 = vmatprep.mubr.f32.mxu0 %v14737_v35  ;;  %v3876_v29 = vmul.f32 %v12702_v52, %v3859_v37  ;;  %v7123_v41 = vrot.slane %v12974_v51, %v11992_v18  ;;  %v11515_v37 = vld [vmem:[%s14730_s1 + $0x82] ss:$8 sm:$0xf] }
 0x28b   :  { %2467 = vmatpush1.msra.mxu1 %v2240_v56  ;;  %v2635_v21 = vpop.permute.xlu0 %2634  ;;  %v2639_v47 = vpop.permute.xlu1 %2638 }
 0x28c   :  { %v2652_v6 = vsel %vm921_vm2, %v2635_v21, %v2637_v61  ;;  %v2653_v38 = vsel %vm921_vm2, %v2637_v61, %v2639_v47  ;;  %11430 = vmatmul.mubr.msk.f32.vlgmr.msra.gmra.mrb[2].mxu1 %vm249_vm5, %v11426_v31  ;;  %v4274_v21 = vsel %vm4272_vm11, %v12761_v40, %v12775_v50 }
 0x28d   :  { %3901 = vrot.lane.b32.xlu0 %v3875_v34, %s11912_s16  ;;  %3899 = vrot.lane.b32.xlu1 %v3874_v33, %s11912_s16  ;;  %v4273_v34 = vsel %vm4272_vm11, %v12763_v44, %v12761_v40  ;;  %v7127_v40 = vrot.slane %v12974_v51, %v11990_v17  ;;  %v4275_v51 = vsel %vm4272_vm11, %v12775_v50, %v12773_v46 }
 0x28e   :  { %2671 = vmatprep.subr.mxu0 %v2653_v38  ;;  %2806 = vmatprep.mubr.f32.mxu1 %v14737_v35 }
 0x28f   :  { %2672 = vmatpush1.msra.mxu0 %v2652_v6  ;;  %v2643_v31 = vpop.permute.xlu0 %2642  ;;  %v2641_v48 = vpop.permute.xlu1 %2640  ;;  %v4291_v6 = vmul.f32 %v12635_v15, %v4274_v21 }
 0x290   :  { %v2655_v43 = vsel %vm921_vm2, %v2641_v48, %v2643_v31  ;;  %v2654_v61 = vsel %vm921_vm2, %v2639_v47, %v2641_v48  ;;  %11434 = vmatmul.mubr.msk.f32.vlgmr.msra.gmra.mrb[0].mxu0 %vm249_vm5, %v13024_v36  ;;  %v4290_v47 = vmul.f32 %v12726_v11, %v4273_v34 }
 0x291   :  { %7136 = vrot.lane.b32.xlu0 %v7115_v1, %s11912_s16  ;;  %7134 = vrot.lane.b32.xlu1 %v7111_v49, %s11912_s16 }
 0x292   :  { %2742 = vmatprep.subr.mxu1 %v2655_v43  ;;  %2877 = vmatprep.mubr.f32.mxu0 %v14737_v35  ;;  %v11516_v43 = vld [vmem:[%s14730_s1 + $0x82] ss:$8 sm:$0xf0] }
 0x293   :  { %2743 = vmatpush1.msra.mxu1 %v2654_v61  ;;  %v13040_v57 = vpop.permute.xlu0 %5876  ;;  %v13042_v10 = vpop.permute.xlu1 %5874  ;;  %v4289_v61 = vmul.f32 %v12578_v62, %v12763_v44  ;;  %v13093_v44 = vor.u32 %v11516_v43, %v11515_v37 }
 0x294   :  { %11435 = vmatmul.mubr.msk.f32.vlgmr.msra.gmra.mrb[0].mxu1 %vm249_vm5, %v13024_v36 }
 0x295   :  { %3905 = vrot.lane.b32.xlu0 %v3877_v0, %s11912_s16  ;;  %3903 = vrot.lane.b32.xlu1 %v3876_v29, %s11912_s16  ;;  %v7521_v34 = vrot.slane %v13093_v44, %v11974_v8  ;;  %v7517_v21 = vrot.slane %v13093_v44, %v11964_v3 }
 0x296   :  { %2948 = vmatprep.mubr.f32.mxu1 %v14737_v35 }
 0x297   :  { %v2645_v56 = vpop.permute.xlu0 %2644  ;;  %v13053_v33 = vpop.permute.xlu1 %5878 }
 0x298   :  { %v2656_v48 = vsel %vm921_vm2, %v2643_v31, %v2645_v56  ;;  %v4276_v31 = vsel %vm4272_vm11, %v12773_v46, %v12785_v25 }
 0x299   :  { %7140 = vrot.lane.b32.xlu0 %v7123_v41, %s11912_s16  ;;  %7138 = vrot.lane.b32.xlu1 %v7119_v32, %s11912_s16  ;;  %v4292_v41 = vmul.f32 %v12648_v60, %v4275_v51  ;;  %v4293_v32 = vmul.f32 %v12651_v30, %v4276_v31  ;;  %v13133_v51 = vld [vmem:[%s14731_s2 + $0x38] sm:$0xff] }
 0x29b   :  { %v13065_v38 = vpop.permute.xlu0 %5880  ;;  %v2647_v1 = vpop.permute.xlu1 %2646 }
 0x29c   :  { %v2657_v49 = vsel %vm921_vm2, %v2645_v56, %v2647_v1 }
 0x29d   :  { %4313 = vrot.lane.b32.xlu0 %v4291_v6, %s11911_s15  ;;  %4311 = vrot.lane.b32.xlu1 %v4290_v47, %s11911_s15 }
 0x29e   :  { %2813 = vmatprep.subr.mxu0 %v2657_v49 }
 0x29f   :  { %2814 = vmatpush1.msra.mxu0 %v2656_v48  ;;  %v2649_v0 = vpop.permute.xlu0 %2648  ;;  %v13081_v29 = vpop.permute.xlu1 %5882  ;;  %v7525_v48 = vrot.slane %v13093_v44, %v11962_v2 }
 0x2a0   :  { %11436 = vmatmul.mubr.msk.f32.vlgmr.msra.gmra.mrb[2].mxu0 %vm249_vm5, %v13024_v36  ;;  %v2658_v47 = vsel %vm921_vm2, %v2647_v1, %v2649_v0 }
 0x2a1   :  { %7142 = vrot.lane.b32.xlu0 %v7127_v40, %s11912_s16  ;;  %4309 = vrot.lane.b32.xlu1 %v4289_v61, %s11911_s15  ;;  %v4277_v40 = vsel %vm4272_vm11, %v12785_v25, %v12783_v42  ;;  %v4278_v25 = vsel %vm4272_vm11, %v12783_v42, %v12799_v16 }
 0x2a2   :  { %3153 = vmatprep.mubr.f32.mxu0 %v14737_v35  ;;  %v4294_v1 = vmul.f32 %v12674_v39, %v4277_v40  ;;  %v4295_v31 = vmul.f32 %v12688_v27, %v4278_v25  ;;  %v4297_v40 = vmul.f32 %v12617_v9, %v12797_v58 }
 0x2a3   :  { %v13098_v50 = vpop.permute.xlu0 %5884  ;;  %v2651_v56 = vpop.permute.xlu1 %2650 }
 0x2a4   :  { %v2659_v46 = vsel %vm921_vm2, %v2649_v0, %v2651_v56  ;;  %v7529_v0 = vrot.slane %v13093_v44, %v11972_v7  ;;  %v7533_v56 = vrot.slane %v13093_v44, %v11984_v14 }
 0x2a5   :  { %4317 = vrot.lane.b32.xlu0 %v4293_v32, %s11911_s15  ;;  %4315 = vrot.lane.b32.xlu1 %v4292_v41, %s11911_s15  ;;  %v4279_v32 = vsel %vm4272_vm11, %v12799_v16, %v12797_v58  ;;  %v7537_v16 = vrot.slane %v13093_v44, %v11982_v13 }
 0x2a6   :  { %2884 = vmatprep.subr.mxu1 %v2659_v46  ;;  %v4296_v46 = vmul.f32 %v12702_v52, %v4279_v32  ;;  %v11523_v32 = vld [vmem:[%s14730_s1 + $0x83] ss:$8 sm:$0xf0] }
 0x2a7   :  { %2885 = vmatpush1.msra.mxu1 %v2658_v47  ;;  %v3055_v6 = vpop.permute.xlu0 %3054  ;;  %v13108_v49 = vpop.permute.xlu1 %5886 }
 0x2a8   :  { %11437 = vmatmul.mubr.msk.f32.vlgmr.msra.gmra.mrb[2].mxu1 %vm249_vm5, %v13024_v36 }
 0x2a9   :  { %7548 = vrot.lane.b32.xlu0 %v7521_v34, %s11895_s0  ;;  %7546 = vrot.lane.b32.xlu1 %v7517_v21, %s11895_s0 }
 0x2aa   :  { %3224 = vmatprep.mubr.f32.mxu1 %v14737_v35 }
 0x2ab   :  { %v3053_v37 = vpop.permute.xlu0 %3052  ;;  %v3057_v43 = vpop.permute.xlu1 %3056 }
 0x2ac   :  { %v3070_v61 = vsel %vm177_vm0, %v3053_v37, %v3055_v6  ;;  %v3071_v36 = vsel %vm177_vm0, %v3055_v6, %v3057_v43  ;;  %v4692_v37 = vsel %vm4691_vm12, %v12809_v26, %v12807_v19 }
 0x2ad   :  { %4319 = vrot.lane.b32.xlu0 %v4294_v1, %s11911_s15  ;;  %7550 = vrot.lane.b32.xlu1 %v7525_v48, %s11895_s0  ;;  %v4709_v58 = vmul.f32 %v12726_v11, %v4692_v37 }
 0x2ae   :  { %3089 = vmatprep.subr.mxu0 %v3071_v36  ;;  %v4693_v36 = vsel %vm4691_vm12, %v12807_v19, %v12821_v45  ;;  %v4708_v19 = vmul.f32 %v12578_v62, %v12809_v26  ;;  %v7545_v62 = vrot.slane %v13093_v44, %v11990_v17 }
 0x2af   :  { %3090 = vmatpush1.msra.mxu0 %v3070_v61  ;;  %v3059_v42 = vpop.permute.xlu0 %3058  ;;  %v13136_v41 = vpop.permute.xlu1 %5888 }
 0x2b0   :  { %11441 = vmatmul.mubr.msk.f32.vlgmr.msra.gmra.mrb[0].mxu0 %vm249_vm5, %v13133_v51  ;;  %v3072_v6 = vsel %vm177_vm0, %v3057_v43, %v3059_v42  ;;  %v7541_v43 = vrot.slane %v13093_v44, %v11992_v18 }
 0x2b1   :  { %7552 = vrot.lane.b32.xlu0 %v7529_v0, %s11895_s0  ;;  %4321 = vrot.lane.b32.xlu1 %v4295_v31, %s11911_s15 }
 0x2b2   :  { %3295 = vmatprep.mubr.f32.mxu0 %v14737_v35 }
 0x2b3   :  { %v13149_v34 = vpop.permute.xlu0 %6292  ;;  %v3061_v21 = vpop.permute.xlu1 %3060 }
 0x2b4   :  { %v3073_v47 = vsel %vm177_vm0, %v3059_v42, %v3061_v21  ;;  %v11522_v42 = vld [vmem:[%s14730_s1 + $0x83] ss:$8 sm:$0xf] }
 0x2b5   :  { %4323 = vrot.lane.b32.xlu0 %v4296_v46, %s11911_s15  ;;  %7554 = vrot.lane.b32.xlu1 %v7533_v56, %s11895_s0  ;;  %v4710_v56 = vmul.f32 %v12635_v15, %v4693_v36  ;;  %v13203_v26 = vor.u32 %v11523_v32, %v11522_v42  ;;  %v4696_v42 = vsel %vm4691_vm12, %v12831_v5, %v12829_v22 }
 0x2b6   :  { %3160 = vmatprep.subr.mxu1 %v3073_v47  ;;  %v4694_v47 = vsel %vm4691_vm12, %v12821_v45, %v12819_v54  ;;  %v4695_v45 = vsel %vm4691_vm12, %v12819_v54, %v12831_v5 }
 0x2b7   :  { %3161 = vmatpush1.msra.mxu1 %v3072_v6  ;;  %v13159_v48 = vpop.permute.xlu0 %6296  ;;  %v13161_v1 = vpop.permute.xlu1 %6294  ;;  %v7935_v44 = vrot.slane %v13203_v26, %v11964_v3  ;;  %v7943_v54 = vrot.slane %v13203_v26, %v11962_v2 }
 0x2b8   :  { %11442 = vmatmul.mubr.msk.f32.vlgmr.msra.gmra.mrb[0].mxu1 %vm249_vm5, %v13133_v51 }
 0x2b9   :  { %7556 = vrot.lane.b32.xlu0 %v7537_v16, %s11895_s0  ;;  %4325 = vrot.lane.b32.xlu1 %v4297_v40, %s11911_s15  ;;  %v4711_v16 = vmul.f32 %v12648_v60, %v4694_v47 }
 0x2ba   :  { %3366 = vmatprep.mubr.f32.mxu1 %v14737_v35 }
 0x2bb   :  { %v3065_v25 = vpop.permute.xlu0 %3064  ;;  %v3063_v61 = vpop.permute.xlu1 %3062 }
 0x2bc   :  { %v3075_v0 = vsel %vm177_vm0, %v3063_v61, %v3065_v25  ;;  %v3074_v31 = vsel %vm177_vm0, %v3061_v21, %v3063_v61 }
 0x2bd   :  { %4730 = vrot.lane.b32.xlu0 %v4709_v58, %s11910_s25  ;;  %7558 = vrot.lane.b32.xlu1 %v7541_v43, %s11895_s0  ;;  %v4712_v58 = vmul.f32 %v12651_v30, %v4695_v45 }
 0x2be   :  { %3231 = vmatprep.subr.mxu0 %v3075_v0 }
 0x2bf   :  { %3232 = vmatpush1.msra.mxu0 %v3074_v31  ;;  %v13190_v46 = vpop.permute.xlu0 %6300  ;;  %v13192_v21 = vpop.permute.xlu1 %6298 }
 0x2c0   :  { %11443 = vmatmul.mubr.msk.f32.vlgmr.msra.gmra.mrb[2].mxu0 %vm249_vm5, %v13133_v51 }
 0x2c1   :  { %4728 = vrot.lane.b32.xlu0 %v4708_v19, %s11910_s25  ;;  %4732 = vrot.lane.b32.xlu1 %v4710_v56, %s11910_s25  ;;  %v4713_v19 = vmul.f32 %v12674_v39, %v4696_v42  ;;  %v5112_v42 = vsel %vm5111_vm13, %v12876_v23, %v12874_v4 }
 0x2c2   :  { %3571 = vmatprep.mubr.f32.mxu0 %v14737_v35 }
 0x2c3   :  { %v3069_v6 = vpop.permute.xlu0 %3068  ;;  %v3067_v40 = vpop.permute.xlu1 %3066 }
 0x2c4   :  { %v3077_v37 = vsel %vm177_vm0, %v3067_v40, %v3069_v6  ;;  %v3076_v43 = vsel %vm177_vm0, %v3065_v25, %v3067_v40  ;;  %v7939_v25 = vrot.slane %v13203_v26, %v11974_v8  ;;  %v7947_v6 = vrot.slane %v13203_v26, %v11972_v7 }
 0x2c5   :  { %4734 = vrot.lane.b32.xlu0 %v4711_v16, %s11910_s25  ;;  %7560 = vrot.lane.b32.xlu1 %v7545_v62, %s11895_s0  ;;  %v7951_v16 = vrot.slane %v13203_v26, %v11984_v14 }
 0x2c6   :  { %3302 = vmatprep.subr.mxu1 %v3077_v37  ;;  %v4698_v37 = vsel %vm4691_vm12, %v12845_v12, %v12843_v53 }
 0x2c7   :  { %3303 = vmatpush1.msra.mxu1 %v3076_v43  ;;  %v13217_v61 = vpop.permute.xlu0 %6304  ;;  %v13219_v36 = vpop.permute.xlu1 %6302 }
 0x2c8   :  { %11444 = vmatmul.mubr.msk.f32.vlgmr.msra.gmra.mrb[2].mxu1 %vm249_vm5, %v13133_v51  ;;  %v4697_v51 = vsel %vm4691_vm12, %v12829_v22, %v12845_v12  ;;  %v13247_v22 = vld [vmem:[%s14731_s2 + $0x40] sm:$0xff] }
 0x2c9   :  { %7964 = vrot.lane.b32.xlu0 %v7935_v44, %s11896_s17  ;;  %4736 = vrot.lane.b32.xlu1 %v4712_v58, %s11910_s25  ;;  %v4714_v56 = vmul.f32 %v12688_v27, %v4697_v51  ;;  %v4716_v58 = vmul.f32 %v12617_v9, %v12843_v53  ;;  %v7955_v9 = vrot.slane %v13203_v26, %v11982_v13 }
 0x2ca   :  { %3642 = vmatprep.mubr.f32.mxu1 %v14737_v35  ;;  %v5113_v51 = vsel %vm5111_vm13, %v12874_v4, %v12887_v20  ;;  %v7963_v4 = vrot.slane %v13203_v26, %v11990_v17 }
 0x2cb   :  { %v3475_v0 = vpop.permute.xlu0 %3474  ;;  %v3473_v31 = vpop.permute.xlu1 %3472 }
 0x2cc   :  { %v3489_v32 = vsel %vm97_vm1, %v3473_v31, %v3475_v0 }
 0x2cd   :  { %7968 = vrot.lane.b32.xlu0 %v7943_v54, %s11896_s17  ;;  %7966 = vrot.lane.b32.xlu1 %v7939_v25, %s11896_s17  ;;  %v4715_v54 = vmul.f32 %v12702_v52, %v4698_v37 }
 0x2ce   :  { %3507 = vmatprep.subr.mxu0 %v3489_v32  ;;  %v5129_v32 = vmul.f32 %v12726_v11, %v5112_v42  ;;  %v11529_v11 = vld [vmem:[%s14730_s1 + $0x84] ss:$8 sm:$0xf]  ;;  %v5116_v42 = vsel %vm5111_vm13, %v12909_v55, %v12922_v59 }
 0x2cf   :  { %v13241_v47 = vpop.permute.xlu0 %6306  ;;  %v3471_v62 = vpop.permute.xlu1 %3470 }
 0x2d0   :  { %v3488_v5 = vsel %vm97_vm1, %v3471_v62, %v3473_v31 }
 0x2d1   :  { %4740 = vrot.lane.b32.xlu0 %v4714_v56, %s11910_s25  ;;  %4738 = vrot.lane.b32.xlu1 %v4713_v19, %s11910_s25  ;;  %v5130_v19 = vmul.f32 %v12635_v15, %v5113_v51  ;;  %v11530_v15 = vld [vmem:[%s14730_s1 + $0x84] ss:$8 sm:$0xf0] }
 0x2d2   :  { %3508 = vmatpush1.msra.mxu0 %v3488_v5 }
 0x2d3   :  { %v3479_v40 = vpop.permute.xlu0 %3478  ;;  %v3477_v45 = vpop.permute.xlu1 %3476  ;;  %11448 = vmatmul.mubr.msk.f32.vlgmr.msra.gmra.mrb[0].mxu0 %vm249_vm5, %v13247_v22 }
 0x2d4   :  { %v3491_v43 = vsel %vm97_vm1, %v3477_v45, %v3479_v40  ;;  %v3490_v44 = vsel %vm97_vm1, %v3475_v0, %v3477_v45  ;;  %3713 = vmatprep.mubr.f32.mxu0 %v14737_v35  ;;  %v7959_v0 = vrot.slane %v13203_v26, %v11992_v18  ;;  %v5114_v26 = vsel %vm5111_vm13, %v12887_v20, %v12897_v63 }
 0x2d5   :  { %7972 = vrot.lane.b32.xlu0 %v7951_v16, %s11896_s17  ;;  %7970 = vrot.lane.b32.xlu1 %v7947_v6, %s11896_s17  ;;  %v11820_v6 = vld [vmem:[#allocation2] sm:$0xff] }
 0x2d6   :  { %3578 = vmatprep.subr.mxu1 %v3491_v43  ;;  %v5128_v45 = vmul.f32 %v11820_v6, %v12876_v23  ;;  %v13320_v23 = vor.u32 %v11530_v15, %v11529_v11  ;;  %v5118_v15 = vsel %vm5111_vm13, %v12932_v28, %v12964_v24 }
 0x2d7   :  { %3579 = vmatpush1.msra.mxu1 %v3490_v44  ;;  %v13268_v25 = vpop.permute.xlu0 %6712  ;;  %v13270_v12 = vpop.permute.xlu1 %6710  ;;  %v5131_v44 = vmul.f32 %v12648_v60, %v5114_v26 }
 0x2d8   :  { %11449 = vmatmul.mubr.msk.f32.vlgmr.msra.gmra.mrb[0].mxu1 %vm249_vm5, %v13247_v22  ;;  %v8361_v51 = vrot.slane %v13320_v23, %v11962_v2  ;;  %v8369_v6 = vrot.slane %v13320_v23, %v11984_v14 }
 0x2d9   :  { %4744 = vrot.lane.b32.xlu0 %v4716_v58, %s11910_s25  ;;  %4742 = vrot.lane.b32.xlu1 %v4715_v54, %s11910_s25 }
 0x2da   :  { %3784 = vmatprep.mubr.f32.mxu1 %v14737_v35 }
 0x2db   :  { %v3481_v53 = vpop.permute.xlu0 %3480  ;;  %v13281_v31 = vpop.permute.xlu1 %6714 }
 0x2dc   :  { %v3492_v16 = vsel %vm97_vm1, %v3479_v40, %v3481_v53  ;;  %v5115_v40 = vsel %vm5111_vm13, %v12897_v63, %v12909_v55  ;;  %v5117_v55 = vsel %vm5111_vm13, %v12922_v59, %v12932_v28  ;;  %v8373_v28 = vrot.slane %v13320_v23, %v11982_v13 }
 0x2dd   :  { %7976 = vrot.lane.b32.xlu0 %v7959_v0, %s11896_s17  ;;  %7974 = vrot.lane.b32.xlu1 %v7955_v9, %s11896_s17  ;;  %v5132_v58 = vmul.f32 %v12651_v30, %v5115_v40  ;;  %v8357_v0 = vrot.slane %v13320_v23, %v11974_v8  ;;  %v8353_v9 = vrot.slane %v13320_v23, %v11964_v3 }
 0x2df   :  { %v13293_v56 = vpop.permute.xlu0 %6716  ;;  %v3483_v62 = vpop.permute.xlu1 %3482 }
 0x2e0   :  { %v3493_v5 = vsel %vm97_vm1, %v3481_v53, %v3483_v62 }
 0x2e1   :  { %5152 = vrot.lane.b32.xlu0 %v5130_v19, %s11909_s18  ;;  %5150 = vrot.lane.b32.xlu1 %v5129_v32, %s11909_s18  ;;  %v5133_v32 = vmul.f32 %v12674_v39, %v5116_v42  ;;  %v13360_v39 = vld [vmem:[%s14731_s2 + $0x48] sm:$0xff] }
 0x2e2   :  { %3649 = vmatprep.subr.mxu0 %v3493_v5 }
 0x2e3   :  { %3650 = vmatpush1.msra.mxu0 %v3492_v16  ;;  %v3485_v37 = vpop.permute.xlu0 %3484  ;;  %v13308_v43 = vpop.permute.xlu1 %6718  ;;  %v5134_v16 = vmul.f32 %v12688_v27, %v5117_v55  ;;  %v5135_v27 = vmul.f32 %v12702_v52, %v5118_v15  ;;  %v11537_v52 = vld [vmem:[%s14730_s1 + $0x85] ss:$8 sm:$0xf0] }
 0x2e4   :  { %11450 = vmatmul.mubr.msk.f32.vlgmr.msra.gmra.mrb[2].mxu0 %vm249_vm5, %v13247_v22  ;;  %v3494_v60 = vsel %vm97_vm1, %v3483_v62, %v3485_v37 }
 0x2e5   :  { %7978 = vrot.lane.b32.xlu0 %v7963_v4, %s11896_s17  ;;  %5148 = vrot.lane.b32.xlu1 %v5128_v45, %s11909_s18  ;;  %v8365_v4 = vrot.slane %v13320_v23, %v11972_v7 }
 0x2e6   :  { %3991 = vmatprep.mubr.f32.mxu0 %v14737_v35 }
 0x2e7   :  { %v13325_v20 = vpop.permute.xlu0 %6720  ;;  %v3487_v54 = vpop.permute.xlu1 %3486 }
 0x2e8   :  { %v3495_v63 = vsel %vm97_vm1, %v3485_v37, %v3487_v54 }
 0x2e9   :  { %5156 = vrot.lane.b32.xlu0 %v5132_v58, %s11909_s18  ;;  %5154 = vrot.lane.b32.xlu1 %v5131_v44, %s11909_s18  ;;  %v11536_v44 = vld [vmem:[%s14730_s1 + $0x85] ss:$8 sm:$0xf] }
 0x2ea   :  { %3720 = vmatprep.subr.mxu1 %v3495_v63  ;;  %v13390_v58 = vld [vmem:[#allocation2 + $0x40] sm:$0xff] }
 0x2eb   :  { %3721 = vmatpush1.msra.mxu1 %v3494_v60  ;;  %v3892_v30 = vpop.permute.xlu0 %3891  ;;  %v13335_v53 = vpop.permute.xlu1 %6722  ;;  %v5136_v54 = vmul.f32 %v13390_v58, %v12964_v24  ;;  %v8377_v60 = vrot.slane %v13320_v23, %v11992_v18 }
 0x2ec   :  { %11451 = vmatmul.mubr.msk.f32.vlgmr.msra.gmra.mrb[2].mxu1 %vm249_vm5, %v13247_v22 }
 0x2ed   :  { %8384 = vrot.lane.b32.xlu0 %v8357_v0, %s11897_s22  ;;  %8382 = vrot.lane.b32.xlu1 %v8353_v9, %s11897_s22  ;;  %v8381_v9 = vrot.slane %v13320_v23, %v11990_v17 }
 0x2ee   :  { %4062 = vmatprep.mubr.f32.mxu1 %v14737_v35 }
 0x2ef   :  { %v3890_v19 = vpop.permute.xlu0 %3889  ;;  %v3894_v62 = vpop.permute.xlu1 %3893 }
 0x2f0   :  { %v3908_v22 = vsel %vm3907_vm14, %v3890_v19, %v3892_v30  ;;  %v3909_v5 = vsel %vm3907_vm14, %v3892_v30, %v3894_v62  ;;  %v13406_v30 = vor.u32 %v11537_v52, %v11536_v44 }
 0x2f1   :  { %5158 = vrot.lane.b32.xlu0 %v5133_v32, %s11909_s18  ;;  %8386 = vrot.lane.b32.xlu1 %v8361_v51, %s11897_s22 }
 0x2f2   :  { %3927 = vmatprep.subr.mxu0 %v3909_v5  ;;  %v8775_v19 = vrot.slane %v13406_v30, %v11974_v8  ;;  %v8771_v23 = vrot.slane %v13406_v30, %v11964_v3  ;;  %v8779_v5 = vrot.slane %v13406_v30, %v11962_v2  ;;  %v8795_v44 = vrot.slane %v13406_v30, %v11992_v18 }
 0x2f3   :  { %3928 = vmatpush1.msra.mxu0 %v3908_v22  ;;  %v3896_v59 = vpop.permute.xlu0 %3895  ;;  %v13363_v11 = vpop.permute.xlu1 %6724  ;;  %v8783_v22 = vrot.slane %v13406_v30, %v11972_v7 }
 0x2f4   :  { %11455 = vmatmul.mubr.msk.f32.vlgmr.msra.gmra.mrb[0].mxu0 %vm249_vm5, %v13360_v39  ;;  %v3910_v40 = vsel %vm3907_vm14, %v3894_v62, %v3896_v59 }
 0x2f5   :  { %8388 = vrot.lane.b32.xlu0 %v8365_v4, %s11897_s22  ;;  %5160 = vrot.lane.b32.xlu1 %v5134_v16, %s11909_s18 }
 0x2f6   :  { %4133 = vmatprep.mubr.f32.mxu0 %v14737_v35 }
 0x2f7   :  { %v13376_v45 = vpop.permute.xlu0 %7128  ;;  %v3898_v37 = vpop.permute.xlu1 %3897 }
 0x2f8   :  { %v3911_v26 = vsel %vm3907_vm14, %v3896_v59, %v3898_v37 }
 0x2f9   :  { %5162 = vrot.lane.b32.xlu0 %v5135_v27, %s11909_s18  ;;  %8390 = vrot.lane.b32.xlu1 %v8369_v6, %s11897_s22  ;;  %v8791_v6 = vrot.slane %v13406_v30, %v11982_v13  ;;  %v8787_v27 = vrot.slane %v13406_v30, %v11984_v14 }
 0x2fa   :  { %3998 = vmatprep.subr.mxu1 %v3911_v26 }
 0x2fb   :  { %3999 = vmatpush1.msra.mxu1 %v3910_v40  ;;  %v13394_v63 = vpop.permute.xlu0 %7132  ;;  %v13396_v0 = vpop.permute.xlu1 %7130  ;;  %v5890_v40 = vsel %vm5166_vm15, %v13042_v10, %v13040_v57 }
 0x2fc   :  { %11456 = vmatmul.mubr.msk.f32.vlgmr.msra.gmra.mrb[0].mxu1 %vm249_vm5, %v13360_v39 }
 0x2fd   :  { %8392 = vrot.lane.b32.xlu0 %v8373_v28, %s11897_s22  ;;  %5164 = vrot.lane.b32.xlu1 %v5136_v54, %s11909_s18  ;;  %v13442_v28 = vld [vmem:[#allocation2 + $0x10] sm:$0xff] }
 0x2fe   :  { %4204 = vmatprep.mubr.f32.mxu1 %v14737_v35  ;;  %v5907_v52 = vmul.f32 %v5890_v40, %v13442_v28  ;;  %v13496_v40 = vld [vmem:[#allocation2 + $0x28] sm:$0xff] }
 0x2ff   :  { %v3902_v24 = vpop.permute.xlu0 %3901  ;;  %v3900_v42 = vpop.permute.xlu1 %3899 }
 0x300   :  { %v3913_v51 = vsel %vm3907_vm14, %v3900_v42, %v3902_v24  ;;  %v3912_v32 = vsel %vm3907_vm14, %v3898_v37, %v3900_v42 }
 0x301   :  { %8396 = vrot.lane.b32.xlu0 %v8381_v9, %s11897_s22  ;;  %8394 = vrot.lane.b32.xlu1 %v8377_v60, %s11897_s22  ;;  %v13455_v60 = vld [vmem:[#allocation2 + $0x8] sm:$0xff] }
 0x302   :  { %4069 = vmatprep.subr.mxu0 %v3913_v51  ;;  %v11543_v51 = vld [vmem:[%s14730_s1 + $0x86] ss:$8 sm:$0xf] }
 0x303   :  { %4070 = vmatpush1.msra.mxu0 %v3912_v32  ;;  %v13417_v62 = vpop.permute.xlu0 %7136  ;;  %v13419_v55 = vpop.permute.xlu1 %7134  ;;  %v11544_v32 = vld [vmem:[%s14730_s1 + $0x86] ss:$8 sm:$0xf0] }
 0x304   :  { %11457 = vmatmul.mubr.msk.f32.vlgmr.msra.gmra.mrb[2].mxu0 %vm249_vm5, %v13360_v39 }
 0x305   :  { %8802 = vrot.lane.b32.xlu0 %v8775_v19, %s11898_s27  ;;  %8800 = vrot.lane.b32.xlu1 %v8771_v23, %s11898_s27  ;;  %v5906_v19 = vmul.f32 %v13042_v10, %v13455_v60  ;;  %v8799_v10 = vrot.slane %v13406_v30, %v11990_v17 }
 0x306   :  { %4410 = vmatprep.mubr.f32.mxu0 %v14737_v35 }
 0x307   :  { %v3906_v4 = vpop.permute.xlu0 %3905  ;;  %v3904_v16 = vpop.permute.xlu1 %3903 }
 0x308   :  { %v3915_v59 = vsel %vm3907_vm14, %v3904_v16, %v3906_v4  ;;  %v3914_v15 = vsel %vm3907_vm14, %v3902_v24, %v3904_v16  ;;  %v13457_v24 = vld [vmem:[#allocation2 + $0x18] sm:$0xff]  ;;  %v5892_v4 = vsel %vm5166_vm15, %v13053_v33, %v13065_v38 }
 0x309   :  { %8806 = vrot.lane.b32.xlu0 %v8783_v22, %s11898_s27  ;;  %8804 = vrot.lane.b32.xlu1 %v8779_v5, %s11898_s27  ;;  %v13476_v5 = vld [vmem:[#allocation2 + $0x20] sm:$0xff] }
 0x30a   :  { %4140 = vmatprep.subr.mxu1 %v3915_v59  ;;  %v13485_v59 = vld [vmem:[%s14731_s2 + $0x50] sm:$0xff] }
 0x30b   :  { %4141 = vmatpush1.msra.mxu1 %v3914_v15  ;;  %v13438_v37 = vpop.permute.xlu0 %7140  ;;  %v13440_v26 = vpop.permute.xlu1 %7138  ;;  %v13491_v15 = vor.u32 %v11544_v32, %v11543_v51 }
 0x30c   :  { %11458 = vmatmul.mubr.msk.f32.vlgmr.msra.gmra.mrb[2].mxu1 %vm249_vm5, %v13360_v39  ;;  %v5891_v39 = vsel %vm5166_vm15, %v13040_v57, %v13053_v33 }
 0x30d   :  { %8810 = vrot.lane.b32.xlu0 %v8791_v6, %s11898_s27  ;;  %8808 = vrot.lane.b32.xlu1 %v8787_v27, %s11898_s27  ;;  %v5908_v57 = vmul.f32 %v5891_v39, %v13457_v24  ;;  %v5909_v6 = vmul.f32 %v5892_v4, %v13476_v5  ;;  %v9193_v51 = vrot.slane %v13491_v15, %v11974_v8  ;;  %v13529_v4 = vld [vmem:[#allocation2 + $0x38] sm:$0xff] }
 0x30e   :  { %4481 = vmatprep.mubr.f32.mxu1 %v14737_v35 }
 0x30f   :  { %v4314_v54 = vpop.permute.xlu0 %4313  ;;  %v4312_v9 = vpop.permute.xlu1 %4311 }
 0x310   :  { %v4328_v42 = vsel %vm249_vm5, %v4312_v9, %v4314_v54 }
 0x311   :  { %5928 = vrot.lane.b32.xlu0 %v5907_v52, %s11908_s10  ;;  %8812 = vrot.lane.b32.xlu1 %v8795_v44, %s11898_s27  ;;  %v5893_v44 = vsel %vm5166_vm15, %v13065_v38, %v13081_v29 }
 0x312   :  { %4346 = vmatprep.subr.mxu0 %v4328_v42  ;;  %v5910_v39 = vmul.f32 %v5893_v44, %v13496_v40 }
 0x313   :  { %v13474_v23 = vpop.permute.xlu0 %7142  ;;  %v4310_v22 = vpop.permute.xlu1 %4309 }
 0x314   :  { %v4327_v16 = vsel %vm249_vm5, %v4310_v22, %v4312_v9  ;;  %v9189_v9 = vrot.slane %v13491_v15, %v11964_v3  ;;  %v5894_v22 = vsel %vm5166_vm15, %v13081_v29, %v13098_v50  ;;  %v9205_v29 = vrot.slane %v13491_v15, %v11984_v14 }
 0x315   :  { %5926 = vrot.lane.b32.xlu0 %v5906_v19, %s11908_s10  ;;  %5930 = vrot.lane.b32.xlu1 %v5908_v57, %s11908_s10  ;;  %v13524_v57 = vld [vmem:[#allocation2 + $0x30] sm:$0xff] }
 0x316   :  { %4347 = vmatpush1.msra.mxu0 %v4327_v16  ;;  %v5895_v16 = vsel %vm5166_vm15, %v13098_v50, %v13108_v49  ;;  %v9201_v50 = vrot.slane %v13491_v15, %v11972_v7 }
 0x317   :  { %v4318_v33 = vpop.permute.xlu0 %4317  ;;  %v4316_v27 = vpop.permute.xlu1 %4315  ;;  %11462 = vmatmul.mubr.msk.f32.vlgmr.msra.gmra.mrb[0].mxu0 %vm249_vm5, %v13485_v59 }
 0x318   :  { %v4330_v52 = vsel %vm249_vm5, %v4316_v27, %v4318_v33  ;;  %v4329_v30 = vsel %vm249_vm5, %v4314_v54, %v4316_v27  ;;  %4552 = vmatprep.mubr.f32.mxu0 %v14737_v35  ;;  %v9197_v54 = vrot.slane %v13491_v15, %v11962_v2 }
 0x319   :  { %5932 = vrot.lane.b32.xlu0 %v5909_v6, %s11908_s10  ;;  %8814 = vrot.lane.b32.xlu1 %v8799_v10, %s11898_s27  ;;  %v5911_v10 = vmul.f32 %v5894_v22, %v13524_v57  ;;  %v5912_v6 = vmul.f32 %v5895_v16, %v13529_v4  ;;  %v5896_v22 = vsel %vm5166_vm15, %v13108_v49, %v13136_v41 }
 0x31a   :  { %4417 = vmatprep.subr.mxu1 %v4330_v52  ;;  %v9213_v49 = vrot.slane %v13491_v15, %v11992_v18 }
 0x31b   :  { %4418 = vmatpush1.msra.mxu1 %v4329_v30  ;;  %v13509_v42 = vpop.permute.xlu0 %7548  ;;  %v13511_v38 = vpop.permute.xlu1 %7546 }
 0x31c   :  { %11463 = vmatmul.mubr.msk.f32.vlgmr.msra.gmra.mrb[0].mxu1 %vm249_vm5, %v13485_v59 }
 0x31d   :  { %9218 = vrot.lane.b32.xlu0 %v9189_v9, %s11904_s12  ;;  %5934 = vrot.lane.b32.xlu1 %v5910_v39, %s11908_s10 }
 0x31e   :  { %4623 = vmatprep.mubr.f32.mxu1 %v14737_v35 }
 0x31f   :  { %v4320_v32 = vpop.permute.xlu0 %4319  ;;  %v13522_v19 = vpop.permute.xlu1 %7550 }
 0x320   :  { %v4331_v30 = vsel %vm249_vm5, %v4318_v33, %v4320_v32 }
 0x321   :  { %9222 = vrot.lane.b32.xlu0 %v9197_v54, %s11904_s12  ;;  %9220 = vrot.lane.b32.xlu1 %v9193_v51, %s11904_s12  ;;  %v13550_v54 = vld [vmem:[#allocation2 + $0x40] sm:$0xff]  ;;  %v13552_v51 = vld [vmem:[#allocation2 + $0x48] sm:$0xff] }
 0x322   :  { %v5913_v33 = vmul.f32 %v5896_v22, %v13550_v54  ;;  %v6309_v22 = vsel %vm4746_vm4, %v13161_v1, %v13159_v48 }
 0x323   :  { %v13538_v27 = vpop.permute.xlu0 %7552  ;;  %v4322_v44 = vpop.permute.xlu1 %4321 }
 0x324   :  { %v4332_v52 = vsel %vm249_vm5, %v4320_v32, %v4322_v44  ;;  %v5914_v32 = vmul.f32 %v13136_v41, %v13552_v51 }
 0x325   :  { %5938 = vrot.lane.b32.xlu0 %v5912_v6, %s11908_s10  ;;  %5936 = vrot.lane.b32.xlu1 %v5911_v10, %s11908_s10 }
 0x326   :  { %4488 = vmatprep.subr.mxu0 %v4332_v52  ;;  %v9209_v52 = vrot.slane %v13491_v15, %v11982_v13 }
 0x327   :  { %4489 = vmatpush1.msra.mxu0 %v4331_v30  ;;  %v4324_v9 = vpop.permute.xlu0 %4323  ;;  %v13548_v39 = vpop.permute.xlu1 %7554  ;;  %v6308_v30 = vsel %vm4746_vm4, %v13149_v34, %v13161_v1  ;;  %v9217_v1 = vrot.slane %v13491_v15, %v11990_v17 }
 0x328   :  { %11464 = vmatmul.mubr.msk.f32.vlgmr.msra.gmra.mrb[2].mxu0 %vm249_vm5, %v13485_v59 }
 0x329   :  { %9226 = vrot.lane.b32.xlu0 %v9205_v29, %s11904_s12  ;;  %9224 = vrot.lane.b32.xlu1 %v9201_v50, %s11904_s12  ;;  %v4333_v29 = vsel %vm249_vm5, %v4322_v44, %v4324_v9  ;;  %v6325_v44 = vmul.f32 %v6308_v30, %v13442_v28  ;;  %v6310_v30 = vsel %vm4746_vm4, %v13159_v48, %v13192_v21 }
 0x32a   :  { %4830 = vmatprep.mubr.f32.mxu0 %v14737_v35 }
 0x32b   :  { %v13565_v16 = vpop.permute.xlu0 %7556  ;;  %v4326_v10 = vpop.permute.xlu1 %4325 }
 0x32c   :  { %v4334_v6 = vsel %vm249_vm5, %v4324_v9, %v4326_v10  ;;  %v6326_v9 = vmul.f32 %v6309_v22, %v13457_v24  ;;  %v6311_v22 = vsel %vm4746_vm4, %v13192_v21, %v13190_v46 }
 0x32d   :  { %5942 = vrot.lane.b32.xlu0 %v5914_v32, %s11908_s10  ;;  %5940 = vrot.lane.b32.xlu1 %v5913_v33, %s11908_s10 }
 0x32e   :  { %4559 = vmatprep.subr.mxu1 %v4334_v6 }
 0x32f   :  { %4560 = vmatpush1.msra.mxu1 %v4333_v29  ;;  %v4731_v41 = vpop.permute.xlu0 %4730  ;;  %v13575_v50 = vpop.permute.xlu1 %7558  ;;  %v6324_v29 = vmul.f32 %v13149_v34, %v13455_v60 }
 0x330   :  { %11465 = vmatmul.mubr.msk.f32.vlgmr.msra.gmra.mrb[2].mxu1 %vm249_vm5, %v13485_v59  ;;  %v13599_v59 = vld [vmem:[%s14731_s2 + $0x58] sm:$0xff] }
 0x331   :  { %9230 = vrot.lane.b32.xlu0 %v9213_v49, %s11904_s12  ;;  %9228 = vrot.lane.b32.xlu1 %v9209_v52, %s11904_s12  ;;  %v11550_v49 = vld [vmem:[%s14730_s1 + $0x87] ss:$8 sm:$0xf] }
 0x332   :  { %4901 = vmatprep.mubr.f32.mxu1 %v14737_v35  ;;  %v11551_v52 = vld [vmem:[%s14730_s1 + $0x87] ss:$8 sm:$0xf0] }
 0x333   :  { %v4729_v33 = vpop.permute.xlu0 %4728  ;;  %v4733_v32 = vpop.permute.xlu1 %4732  ;;  %v13621_v34 = vor.u32 %v11551_v52, %v11550_v49 }
 0x334   :  { %v4747_v10 = vsel %vm4746_vm4, %v4729_v33, %v4731_v41  ;;  %v4748_v6 = vsel %vm4746_vm4, %v4731_v41, %v4733_v32 }
 0x335   :  { %6348 = vrot.lane.b32.xlu0 %v6326_v9, %s11907_s20  ;;  %6346 = vrot.lane.b32.xlu1 %v6325_v44, %s11907_s20  ;;  %v6327_v44 = vmul.f32 %v6310_v30, %v13476_v5  ;;  %v6328_v9 = vmul.f32 %v6311_v22, %v13496_v40  ;;  %v9615_v30 = vrot.slane %v13621_v34, %v11962_v2 }
 0x336   :  { %4766 = vmatprep.subr.mxu0 %v4748_v6  ;;  %v9607_v6 = vrot.slane %v13621_v34, %v11964_v3 }
 0x337   :  { %4767 = vmatpush1.msra.mxu0 %v4747_v10  ;;  %v4735_v41 = vpop.permute.xlu0 %4734  ;;  %v13609_v15 = vpop.permute.xlu1 %7560  ;;  %v9611_v10 = vrot.slane %v13621_v34, %v11974_v8 }
 0x338   :  { %11469 = vmatmul.mubr.msk.f32.vlgmr.msra.gmra.mrb[0].mxu0 %vm249_vm5, %v13599_v59 }
 0x339   :  { %9232 = vrot.lane.b32.xlu0 %v9217_v1, %s11904_s12  ;;  %6344 = vrot.lane.b32.xlu1 %v6324_v29, %s11907_s20  ;;  %v4749_v1 = vsel %vm4746_vm4, %v4733_v32, %v4735_v41  ;;  %v6312_v29 = vsel %vm4746_vm4, %v13190_v46, %v13219_v36  ;;  %v6313_v46 = vsel %vm4746_vm4, %v13219_v36, %v13217_v61 }
 0x33a   :  { %4972 = vmatprep.mubr.f32.mxu0 %v14737_v35  ;;  %v6329_v32 = vmul.f32 %v6312_v29, %v13524_v57  ;;  %v6314_v36 = vsel %vm4746_vm4, %v13217_v61, %v13241_v47 }
 0x33b   :  { %v13626_v48 = vpop.permute.xlu0 %7964  ;;  %v4737_v33 = vpop.permute.xlu1 %4736  ;;  %v6331_v29 = vmul.f32 %v6314_v36, %v13550_v54 }
 0x33c   :  { %v4750_v21 = vsel %vm4746_vm4, %v4735_v41, %v4737_v33 }
 0x33d   :  { %6352 = vrot.lane.b32.xlu0 %v6328_v9, %s11907_s20  ;;  %6350 = vrot.lane.b32.xlu1 %v6327_v44, %s11907_s20 }
 0x33e   :  { %4837 = vmatprep.subr.mxu1 %v4750_v21  ;;  %v9619_v21 = vrot.slane %v13621_v34, %v11972_v7 }
 0x33f   :  { %4838 = vmatpush1.msra.mxu1 %v4749_v1  ;;  %v13636_v49 = vpop.permute.xlu0 %7968  ;;  %v13638_v52 = vpop.permute.xlu1 %7966 }
 0x340   :  { %11470 = vmatmul.mubr.msk.f32.vlgmr.msra.gmra.mrb[0].mxu1 %vm249_vm5, %v13599_v59 }
 0x341   :  { %9638 = vrot.lane.b32.xlu0 %v9611_v10, %s11903_s7  ;;  %9636 = vrot.lane.b32.xlu1 %v9607_v6, %s11903_s7  ;;  %v6330_v10 = vmul.f32 %v6313_v46, %v13529_v4  ;;  %v9627_v46 = vrot.slane %v13621_v34, %v11982_v13 }
 0x342   :  { %5043 = vmatprep.mubr.f32.mxu1 %v14737_v35 }
 0x343   :  { %v4741_v41 = vpop.permute.xlu0 %4740  ;;  %v4739_v22 = vpop.permute.xlu1 %4738 }
 0x344   :  { %v4752_v44 = vsel %vm4746_vm4, %v4739_v22, %v4741_v41  ;;  %v4751_v9 = vsel %vm4746_vm4, %v4737_v33, %v4739_v22  ;;  %v9623_v33 = vrot.slane %v13621_v34, %v11984_v14 }
 0x345   :  { %6354 = vrot.lane.b32.xlu0 %v6329_v32, %s11907_s20  ;;  %9640 = vrot.lane.b32.xlu1 %v9615_v30, %s11903_s7 }
 0x346   :  { %4908 = vmatprep.subr.mxu0 %v4752_v44  ;;  %v6332_v44 = vmul.f32 %v13241_v47, %v13552_v51 }
 0x347   :  { %4909 = vmatpush1.msra.mxu0 %v4751_v9  ;;  %v13661_v6 = vpop.permute.xlu0 %7972  ;;  %v13663_v1 = vpop.permute.xlu1 %7970 }
 0x348   :  { %11471 = vmatmul.mubr.msk.f32.vlgmr.msra.gmra.mrb[2].mxu0 %vm249_vm5, %v13599_v59 }
 0x349   :  { %9642 = vrot.lane.b32.xlu0 %v9619_v21, %s11903_s7  ;;  %6356 = vrot.lane.b32.xlu1 %v6330_v10, %s11907_s20  ;;  %v9631_v10 = vrot.slane %v13621_v34, %v11992_v18 }
 0x34a   :  { %5250 = vmatprep.mubr.f32.mxu0 %v14737_v35 }
 0x34b   :  { %v4745_v30 = vpop.permute.xlu0 %4744  ;;  %v4743_v32 = vpop.permute.xlu1 %4742 }
 0x34c   :  { %v4754_v22 = vsel %vm4746_vm4, %v4743_v32, %v4745_v30  ;;  %v4753_v61 = vsel %vm4746_vm4, %v4741_v41, %v4743_v32  ;;  %v6726_v41 = vsel %vm249_vm5, %v13270_v12, %v13268_v25  ;;  %v11558_v32 = vld [vmem:[%s14730_s1 + $0xc0] ss:$8 sm:$0xf0]  ;;  %vm14758_vm4 = vcmask 588800  }
 0x34d   :  { %6358 = vrot.lane.b32.xlu0 %v6331_v29, %s11907_s20  ;;  %9644 = vrot.lane.b32.xlu1 %v9623_v33, %s11903_s7  ;;  %v6743_v47 = vmul.f32 %v6726_v41, %v13442_v28  ;;  %v6727_v29 = vsel %vm249_vm5, %v13268_v25, %v13281_v31 }
 0x34e   :  { %4979 = vmatprep.subr.mxu1 %v4754_v22  ;;  %v6742_v22 = vmul.f32 %v13270_v12, %v13455_v60  ;;  %v6744_v25 = vmul.f32 %v6727_v29, %v13457_v24  ;;  %v9635_v12 = vrot.slane %v13621_v34, %v11990_v17 }
 0x34f   :  { %4980 = vmatpush1.msra.mxu1 %v4753_v61  ;;  %v13684_v9 = vpop.permute.xlu0 %7976  ;;  %v13686_v21 = vpop.permute.xlu1 %7974 }
 0x350   :  { %11472 = vmatmul.mubr.msk.f32.vlgmr.msra.gmra.mrb[2].mxu1 %vm249_vm5, %v13599_v59  ;;  %v11557_v59 = vld [vmem:[%s14730_s1 + $0xc0] ss:$8 sm:$0xf] }
 0x351   :  { %9646 = vrot.lane.b32.xlu0 %v9627_v46, %s11903_s7  ;;  %6360 = vrot.lane.b32.xlu1 %v6332_v44, %s11907_s20  ;;  %v6728_v44 = vsel %vm249_vm5, %v13281_v31, %v13293_v56 }
 0x352   :  { %5321 = vmatprep.mubr.f32.mxu1 %v14737_v35  ;;  %v6745_v29 = vmul.f32 %v6728_v44, %v13476_v5 }
 0x353   :  { %v5153_v36 = vpop.permute.xlu0 %5152  ;;  %v5151_v33 = vpop.permute.xlu1 %5150 }
 0x354   :  { %v5168_v30 = vsel %vm5166_vm15, %v5151_v33, %v5153_v36 }
 0x355   :  { %6764 = vrot.lane.b32.xlu0 %v6743_v47, %s11906_s14  ;;  %9648 = vrot.lane.b32.xlu1 %v9631_v10, %s11903_s7  ;;  %v13723_v10 = vld [vmem:[%s14731_s2 + $0x60] sm:$0xff]  ;;  %v13729_v47 = vor.u32 %v11558_v32, %v11557_v59 }
 0x356   :  { %5186 = vmatprep.subr.mxu0 %v5168_v30  ;;  %v11480_v59 = vld [vmem:[%s14730_s1 + $0x45] ss:$8 sm:$0xf] }
 0x357   :  { %v13714_v61 = vpop.permute.xlu0 %7978  ;;  %v5149_v46 = vpop.permute.xlu1 %5148  ;;  %v10025_v34 = vrot.slane %v13729_v47, %v11964_v3 }
 0x358   :  { %14745 = vst [vmem:[#allocation8_spill] sm:$0xff] %v13714_v61  ;;  %v5167_v41 = vsel %vm5166_vm15, %v5149_v46, %v5151_v33  ;;  %v6729_v33 = vsel %vm249_vm5, %v13293_v56, %v13308_v43  ;;  %v11481_v56 = vld [vmem:[%s14730_s1 + $0x45] ss:$8 sm:$0xf0]  ;;  %v6732_v61 = vsel %vm249_vm5, %v13335_v53, %v13363_v11 }
 0x359   :  { %6762 = vrot.lane.b32.xlu0 %v6742_v22, %s11906_s14  ;;  %6766 = vrot.lane.b32.xlu1 %v6744_v25, %s11906_s14  ;;  %v13757_v44 = vor.u32 %v11481_v56, %v11480_v59 }
 0x35a   :  { %5187 = vmatpush1.msra.mxu0 %v5167_v41  ;;  %v10033_v41 = vrot.slane %v13729_v47, %v11962_v2 }
 0x35b   :  { %v5157_v31 = vpop.permute.xlu0 %5156  ;;  %v5155_v30 = vpop.permute.xlu1 %5154  ;;  %11476 = vmatmul.mubr.msk.f32.vlgmr.msra.gmra.mrb[0].mxu0 %vm249_vm5, %v13723_v10 }
 0x35c   :  { %v5170_v22 = vsel %vm5166_vm15, %v5155_v30, %v5157_v31  ;;  %v5169_v25 = vsel %vm5166_vm15, %v5153_v36, %v5155_v30  ;;  %5392 = vmatprep.mubr.f32.mxu0 %v14737_v35  ;;  %v6746_v36 = vmul.f32 %v6729_v33, %v13496_v40  ;;  %v6730_v33 = vsel %vm249_vm5, %v13308_v43, %v13325_v20 }
 0x35d   :  { %6768 = vrot.lane.b32.xlu0 %v6745_v29, %s11906_s14  ;;  %9650 = vrot.lane.b32.xlu1 %v9635_v12, %s11903_s7  ;;  %v10029_v12 = vrot.slane %v13729_v47, %v11974_v8  ;;  %v6747_v59 = vmul.f32 %v6730_v33, %v13524_v57 }
 0x35e   :  { %5257 = vmatprep.subr.mxu1 %v5170_v22  ;;  %v6731_v22 = vsel %vm249_vm5, %v13325_v20, %v13335_v53  ;;  %v5506_v20 = vrot.slane %v13757_v44, %v11982_v13  ;;  %v5498_v53 = vrot.slane %v13757_v44, %v11972_v7 }
 0x35f   :  { %5258 = vmatpush1.msra.mxu1 %v5169_v25  ;;  %v13751_v32 = vpop.permute.xlu0 %8384  ;;  %v13753_v46 = vpop.permute.xlu1 %8382  ;;  %v5490_v25 = vrot.slane %v13757_v44, %v11974_v8  ;;  %v6748_v56 = vmul.f32 %v6731_v22, %v13529_v4  ;;  %v11823_v22 = vld [vmem:[#allocation2 + $0x8] sm:$0xff] }
 0x360   :  { %14746 = vst [vmem:[#allocation9_spill] sm:$0xff] %v13751_v32  ;;  %14747 = vst [vmem:[#allocation10_spill] sm:$0xff] %v13753_v46  ;;  %11477 = vmatmul.mubr.msk.f32.vlgmr.msra.gmra.mrb[0].mxu1 %vm249_vm5, %v13723_v10  ;;  %v5502_v32 = vrot.slane %v13757_v44, %v11984_v14 }
 0x361   :  { %10054 = vrot.lane.b32.xlu0 %v10025_v34, %s11901_s30  ;;  %6770 = vrot.lane.b32.xlu1 %v6746_v36, %s11906_s14  ;;  %v5486_v34 = vrot.slane %v13757_v44, %v11964_v3 }
 0x362   :  { %5463 = vmatprep.mubr.f32.mxu1 %v14737_v35 }
 0x363   :  { %v5159_v29 = vpop.permute.xlu0 %5158  ;;  %v13766_v30 = vpop.permute.xlu1 %8386 }
 0x364   :  { %14748 = vst [vmem:[#allocation11_spill] sm:$0xff] %v13766_v30  ;;  %v11822_v30 = vld [vmem:[#allocation2 + $0x10] sm:$0xff]  ;;  %v5171_v33 = vsel %vm5166_vm15, %v5157_v31, %v5159_v29  ;;  %v14750_v31 = vmov 0.0  }
 0x365   :  { %10058 = vrot.lane.b32.xlu0 %v10033_v41, %s11901_s30  ;;  %10056 = vrot.lane.b32.xlu1 %v10029_v12, %s11901_s30  ;;  %v5524_v46 = vmul.f32 %v11822_v30, %v5490_v25  ;;  %v10041_v41 = vrot.slane %v13729_v47, %v11984_v14  ;;  %v10037_v12 = vrot.slane %v13729_v47, %v11972_v7 }
 0x367   :  { %v13782_v36 = vpop.permute.xlu0 %8388  ;;  %v5161_v43 = vpop.permute.xlu1 %5160 }
 0x368   :  { %14749 = vst [vmem:[#allocation12_spill] sm:$0xff] %v13782_v36  ;;  %v5172_v35 = vsel %vm5166_vm15, %v5159_v29, %v5161_v43  ;;  %v5523_v36 = vmul.f32 %v11823_v22, %v5486_v34  ;;  %v11825_v29 = vld [vmem:[#allocation2 + $0x28] sm:$0xff] }
 0x369   :  { %6774 = vrot.lane.b32.xlu0 %v6748_v56, %s11906_s14  ;;  %6772 = vrot.lane.b32.xlu1 %v6747_v59, %s11906_s14  ;;  %v11824_v56 = vld [vmem:[#allocation2 + $0x30] sm:$0xff]  ;;  %v5527_v34 = vmul.f32 %v11825_v29, %v5502_v32  ;;  %v5514_v32 = vrot.slane %v13757_v44, %v11990_v17  ;;  %v5510_v29 = vrot.slane %v13757_v44, %v11992_v18 }
 0x36a   :  { %5328 = vmatprep.subr.mxu0 %v5172_v35  ;;  %v5528_v59 = vmul.f32 %v11824_v56, %v5506_v20  ;;  %v13808_v35 = vld [vmem:[%s14731_s2 + $0x68] sm:$0xff]  ;;  %v6749_v20 = vmul.f32 %v6732_v61, %v13550_v54  ;;  %v10045_v61 = vrot.slane %v13729_v47, %v11982_v13  ;;  %v11826_v56 = vld [vmem:[#allocation2 + $0x20] sm:$0xff] }
 0x36b   :  { %5329 = vmatpush1.msra.mxu0 %v5171_v33  ;;  %v5163_v30 = vpop.permute.xlu0 %5162  ;;  %v13796_v25 = vpop.permute.xlu1 %8390  ;;  %v5494_v33 = vrot.slane %v13757_v44, %v11962_v2  ;;  %v5530_v44 = vmul.f32 %v13390_v58, %v5514_v32  ;;  %v10053_v58 = vrot.slane %v13729_v47, %v11990_v17  ;;  %v11564_v32 = vld [vmem:[%s14730_s1 + $0xc1] ss:$8 sm:$0xf] }
 0x36c   :  { %11478 = vmatmul.mubr.msk.f32.vlgmr.msra.gmra.mrb[2].mxu0 %vm249_vm5, %v13723_v10  ;;  %5536 = vmatprep.subr.mxu0 %v5524_v46  ;;  %v6750_v46 = vmul.f32 %v13363_v11, %v13552_v51  ;;  %v10049_v11 = vrot.slane %v13729_v47, %v11992_v18  ;;  %v5173_v22 = vsel %vm5166_vm15, %v5161_v43, %v5163_v30 }
 0x36d   :  { %10062 = vrot.lane.b32.xlu0 %v10041_v41, %s11901_s30  ;;  %10060 = vrot.lane.b32.xlu1 %v10037_v12, %s11901_s30  ;;  %v7145_v43 = vsel %vm3907_vm14, %v13396_v0, %v13394_v63  ;;  %v7146_v47 = vsel %vm3907_vm14, %v13394_v63, %v13419_v55 }
 0x36e   :  { %5537 = vmatpush1.msra.mxu0 %v5523_v36  ;;  %5600 = vmatprep.mubr.f32.mxu0 %v14750_v31 }
 0x36f   :  { %v13816_v41 = vpop.permute.xlu0 %8392  ;;  %v5165_v12 = vpop.permute.xlu1 %5164  ;;  %5678 = vmatprep.subr.mxu0 %v5528_v59  ;;  %v5526_v59 = vmul.f32 %v11826_v56, %v5498_v53  ;;  %v7147_v56 = vsel %vm3907_vm14, %v13419_v55, %v13417_v62 }
 0x370   :  { %14751 = vst [vmem:[#allocation13_spill] sm:$0xff] %v13816_v41  ;;  %v5174_v36 = vsel %vm5166_vm15, %v5163_v30, %v5165_v12  ;;  %11483 = vmatmul.mubr.msk.f32.vlgmr.msra.gmra.mrb[0].mxu0 %vm249_vm5, %v13808_v35  ;;  %v11828_v30 = vld [vmem:[#allocation2 + $0x38] sm:$0xff]  ;;  %vm14764_vm15 = vmmov %vm14758_vm4 }
 0x371   :  { %6778 = vrot.lane.b32.xlu0 %v6750_v46, %s11906_s14  ;;  %6776 = vrot.lane.b32.xlu1 %v6749_v20, %s11906_s14  ;;  %v11827_v20 = vld [vmem:[#allocation2 + $0x18] sm:$0xff] }
 0x372   :  { %5399 = vmatprep.subr.mxu1 %v5174_v36  ;;  %5679 = vmatpush1.msra.mxu0 %v5527_v34  ;;  %v5525_v41 = vmul.f32 %v11827_v20, %v5494_v33  ;;  %v7144_v36 = vsel %vm3907_vm14, %v13376_v45, %v13396_v0  ;;  %v5529_v34 = vmul.f32 %v11828_v30, %v5510_v29 }
 0x373   :  { %5400 = vmatpush1.msra.mxu1 %v5173_v22  ;;  %v13834_v12 = vpop.permute.xlu0 %8396  ;;  %v13836_v46 = vpop.permute.xlu1 %8394  ;;  %5742 = vmatprep.mubr.f32.mxu0 %v14750_v31  ;;  %v7161_v53 = vmul.f32 %v7144_v36, %v13442_v28  ;;  %v7162_v0 = vmul.f32 %v7145_v43, %v13457_v24  ;;  %v7164_v29 = vmul.f32 %v7147_v56, %v13496_v40 }
 0x374   :  { %11479 = vmatmul.mubr.msk.f32.vlgmr.msra.gmra.mrb[2].mxu1 %vm249_vm5, %v13723_v10  ;;  %11485 = vmatmul.mubr.msk.f32.vlgmr.msra.gmra.mrb[2].mxu0 %vm249_vm5, %v13808_v35 }
 0x375   :  { %10066 = vrot.lane.b32.xlu0 %v10049_v11, %s11901_s30  ;;  %10064 = vrot.lane.b32.xlu1 %v10045_v61, %s11901_s30  ;;  %v7160_v11 = vmul.f32 %v13376_v45, %v13455_v60 }
 0x376   :  { %5607 = vmatprep.subr.mxu1 %v5526_v59  ;;  %5671 = vmatprep.mubr.f32.mxu1 %v14750_v31  ;;  %v7163_v59 = vmul.f32 %v7146_v47, %v13476_v5 }
 0x377   :  { %v13855_v33 = vpop.permute.xlu0 %8802  ;;  %v13857_v10 = vpop.permute.xlu1 %8800  ;;  %5608 = vmatpush1.msra.mxu1 %v5525_v41  ;;  %6027 = vmatprep.mubr.f32.mxu0 %v14750_v31  ;;  %v11565_v41 = vld [vmem:[%s14730_s1 + $0xc1] ss:$8 sm:$0xf0] }
 0x378   :  { %11484 = vmatmul.mubr.msk.f32.vlgmr.msra.gmra.mrb[0].mxu1 %vm249_vm5, %v13808_v35  ;;  %5749 = vmatprep.subr.mxu1 %v5530_v44  ;;  %v13889_v45 = vor.u32 %v11565_v41, %v11564_v32  ;;  %v7148_v44 = vsel %vm3907_vm14, %v13417_v62, %v13440_v26 }
 0x379   :  { %7184 = vrot.lane.b32.xlu0 %v7162_v0, %s11905_s8  ;;  %7182 = vrot.lane.b32.xlu1 %v7161_v53, %s11905_s8 }
 0x37a   :  { %5750 = vmatpush1.msra.mxu1 %v5529_v34  ;;  %5813 = vmatprep.mubr.f32.mxu1 %v14750_v31  ;;  %v10447_v55 = vrot.slane %v13889_v45, %v11974_v8  ;;  %v10451_v30 = vrot.slane %v13889_v45, %v11962_v2  ;;  %v7165_v34 = vmul.f32 %v7148_v44, %v13524_v57 }
 0x37b   :  { %v13875_v61 = vpop.permute.xlu0 %8806  ;;  %v13877_v22 = vpop.permute.xlu1 %8804  ;;  %v10455_v62 = vrot.slane %v13889_v45, %v11972_v7 }
 0x37c   :  { %11486 = vmatmul.mubr.msk.f32.vlgmr.msra.gmra.mrb[2].mxu1 %vm249_vm5, %v13808_v35  ;;  %v10443_v35 = vrot.slane %v13889_v45, %v11964_v3 }
 0x37d   :  { %10068 = vrot.lane.b32.xlu0 %v10053_v58, %s11901_s30  ;;  %7180 = vrot.lane.b32.xlu1 %v7160_v11, %s11905_s8  ;;  %v7149_v58 = vsel %vm3907_vm14, %v13440_v26, %v13438_v37  ;;  %v13926_v11 = vld [vmem:[%s14731_s2 + $0x70] sm:$0xff] }
 0x37e   :  { %6098 = vmatprep.mubr.f32.mxu1 %v14750_v31  ;;  %v7166_v47 = vmul.f32 %v7149_v58, %v13529_v4 }
 0x37f   :  { %v13894_v63 = vpop.permute.xlu0 %8810  ;;  %v13896_v20 = vpop.permute.xlu1 %8808 }
 0x381   :  { %7188 = vrot.lane.b32.xlu0 %v7164_v29, %s11905_s8  ;;  %7186 = vrot.lane.b32.xlu1 %v7163_v59, %s11905_s8  ;;  %v7150_v59 = vsel %vm3907_vm14, %v13438_v37, %v13474_v23  ;;  %v10459_v29 = vrot.slane %v13889_v45, %v11984_v14  ;;  %v10463_v37 = vrot.slane %v13889_v45, %v11982_v13  ;;  %vm14763_vm14 = vmmov %vm14758_vm4 }
 0x383   :  { %v5929_v36 = vpop.permute.xlu0 %5928  ;;  %v13904_v43 = vpop.permute.xlu1 %8812 }
 0x385   :  { %10474 = vrot.lane.b32.xlu0 %v10447_v55, %s11900_s29  ;;  %10472 = vrot.lane.b32.xlu1 %v10443_v35, %s11900_s29  ;;  %v7167_v55 = vmul.f32 %v7150_v59, %v13550_v54 }
 0x387   :  { %v5927_v53 = vpop.permute.xlu0 %5926  ;;  %v5931_v0 = vpop.permute.xlu1 %5930 }
 0x388   :  { %v5944_v32 = vsel %vm5111_vm13, %v5927_v53, %v5929_v36  ;;  %v5945_v41 = vsel %vm5111_vm13, %v5929_v36, %v5931_v0 }
 0x389   :  { %7190 = vrot.lane.b32.xlu0 %v7165_v34, %s11905_s8  ;;  %10476 = vrot.lane.b32.xlu1 %v10451_v30, %s11900_s29  ;;  %v7168_v34 = vmul.f32 %v13474_v23, %v13552_v51 }
 0x38a   :  { %5963 = vmatprep.subr.mxu0 %v5945_v41 }
 0x38b   :  { %5964 = vmatpush1.msra.mxu0 %v5944_v32  ;;  %v5933_v26 = vpop.permute.xlu0 %5932  ;;  %v13929_v56 = vpop.permute.xlu1 %8814  ;;  %v7562_v32 = vsel %vm97_vm1, %v13511_v38, %v13509_v42 }
 0x38c   :  { %11490 = vmatmul.mubr.msk.f32.vlgmr.msra.gmra.mrb[0].mxu0 %vm249_vm5, %v13926_v11  ;;  %v5946_v30 = vsel %vm5111_vm13, %v5931_v0, %v5933_v26  ;;  %v10467_v0 = vrot.slane %v13889_v45, %v11992_v18  ;;  %v7579_v23 = vmul.f32 %v7562_v32, %v13442_v28 }
 0x38d   :  { %10478 = vrot.lane.b32.xlu0 %v10455_v62, %s11900_s29  ;;  %7192 = vrot.lane.b32.xlu1 %v7166_v47, %s11905_s8  ;;  %v7563_v47 = vsel %vm97_vm1, %v13509_v42, %v13522_v19  ;;  %v7578_v42 = vmul.f32 %v13511_v38, %v13455_v60  ;;  %v10471_v38 = vrot.slane %v13889_v45, %v11990_v17 }
 0x38e   :  { %6169 = vmatprep.mubr.f32.mxu0 %v14750_v31 }
 0x38f   :  { %v13942_v35 = vpop.permute.xlu0 %9218  ;;  %v5935_v36 = vpop.permute.xlu1 %5934 }
 0x390   :  { %v5947_v44 = vsel %vm5111_vm13, %v5933_v26, %v5935_v36 }
 0x391   :  { %7194 = vrot.lane.b32.xlu0 %v7167_v55, %s11905_s8  ;;  %10480 = vrot.lane.b32.xlu1 %v10459_v29, %s11900_s29  ;;  %v11571_v29 = vld [vmem:[%s14730_s1 + $0xc2] ss:$8 sm:$0xf] }
 0x392   :  { %6034 = vmatprep.subr.mxu1 %v5947_v44  ;;  %v11572_v55 = vld [vmem:[%s14730_s1 + $0xc2] ss:$8 sm:$0xf0]  ;;  %v7580_v44 = vmul.f32 %v7563_v47, %v13457_v24 }
 0x393   :  { %6035 = vmatpush1.msra.mxu1 %v5946_v30  ;;  %v13952_v53 = vpop.permute.xlu0 %9222  ;;  %v13954_v58 = vpop.permute.xlu1 %9220  ;;  %v7564_v30 = vsel %vm97_vm1, %v13522_v19, %v13538_v27  ;;  %v7565_v19 = vsel %vm97_vm1, %v13538_v27, %v13548_v39 }
 0x394   :  { %11491 = vmatmul.mubr.msk.f32.vlgmr.msra.gmra.mrb[0].mxu1 %vm249_vm5, %v13926_v11  ;;  %v7581_v32 = vmul.f32 %v7564_v30, %v13476_v5 }
 0x395   :  { %10482 = vrot.lane.b32.xlu0 %v10463_v37, %s11900_s29  ;;  %7196 = vrot.lane.b32.xlu1 %v7168_v34, %s11905_s8  ;;  %v13996_v34 = vor.u32 %v11572_v55, %v11571_v29 }
 0x396   :  { %6240 = vmatprep.mubr.f32.mxu1 %v14750_v31 }
 0x397   :  { %v5939_v41 = vpop.permute.xlu0 %5938  ;;  %v5937_v62 = vpop.permute.xlu1 %5936  ;;  %v10861_v45 = vrot.slane %v13996_v34, %v11964_v3  ;;  %v10869_v27 = vrot.slane %v13996_v34, %v11962_v2  ;;  %v10865_v3 = vrot.slane %v13996_v34, %v11974_v8 }
 0x398   :  { %v5949_v26 = vsel %vm5111_vm13, %v5937_v62, %v5939_v41  ;;  %v5948_v59 = vsel %vm5111_vm13, %v5935_v36, %v5937_v62 }
 0x399   :  { %7600 = vrot.lane.b32.xlu0 %v7579_v23, %s11899_s28  ;;  %10484 = vrot.lane.b32.xlu1 %v10467_v0, %s11900_s29 }
 0x39a   :  { %6105 = vmatprep.subr.mxu0 %v5949_v26  ;;  %v7582_v26 = vmul.f32 %v7565_v19, %v13496_v40 }
 0x39b   :  { %6106 = vmatpush1.msra.mxu0 %v5948_v59  ;;  %v13983_v36 = vpop.permute.xlu0 %9226  ;;  %v13985_v37 = vpop.permute.xlu1 %9224 }
 0x39c   :  { %11492 = vmatmul.mubr.msk.f32.vlgmr.msra.gmra.mrb[2].mxu0 %vm249_vm5, %v13926_v11 }
 0x39d   :  { %7598 = vrot.lane.b32.xlu0 %v7578_v42, %s11899_s28  ;;  %7602 = vrot.lane.b32.xlu1 %v7580_v44, %s11899_s28  ;;  %v7566_v42 = vsel %vm97_vm1, %v13548_v39, %v13565_v16 }
 0x39e   :  { %6445 = vmatprep.mubr.f32.mxu0 %v14750_v31  ;;  %v7583_v2 = vmul.f32 %v7566_v42, %v13524_v57 }
 0x39f   :  { %v5943_v0 = vpop.permute.xlu0 %5942  ;;  %v5941_v23 = vpop.permute.xlu1 %5940 }
 0x3a0   :  { %v5951_v62 = vsel %vm5111_vm13, %v5941_v23, %v5943_v0  ;;  %v5950_v47 = vsel %vm5111_vm13, %v5939_v41, %v5941_v23  ;;  %v10873_v0 = vrot.slane %v13996_v34, %v11972_v7  ;;  %vm14762_vm13 = vmmov %vm14758_vm4 }
 0x3a1   :  { %7604 = vrot.lane.b32.xlu0 %v7581_v32, %s11899_s28  ;;  %10486 = vrot.lane.b32.xlu1 %v10471_v38, %s11900_s29  ;;  %v10877_v32 = vrot.slane %v13996_v34, %v11984_v14  ;;  %v7586_v14 = vmul.f32 %v13609_v15, %v13552_v51 }
 0x3a2   :  { %6176 = vmatprep.subr.mxu1 %v5951_v62  ;;  %v7568_v62 = vsel %vm97_vm1, %v13575_v50, %v13609_v15 }
 0x3a3   :  { %6177 = vmatpush1.msra.mxu1 %v5950_v47  ;;  %v14010_v59 = vpop.permute.xlu0 %9230  ;;  %v14012_v29 = vpop.permute.xlu1 %9228  ;;  %v7585_v7 = vmul.f32 %v7568_v62, %v13550_v54 }
 0x3a4   :  { %11493 = vmatmul.mubr.msk.f32.vlgmr.msra.gmra.mrb[2].mxu1 %vm249_vm5, %v13926_v11  ;;  %v7567_v11 = vsel %vm97_vm1, %v13565_v16, %v13575_v50  ;;  %v14040_v16 = vld [vmem:[%s14731_s2 + $0x78] sm:$0xff] }
 0x3a5   :  { %10890 = vrot.lane.b32.xlu0 %v10861_v45, %s11899_s28  ;;  %7606 = vrot.lane.b32.xlu1 %v7582_v26, %s11899_s28  ;;  %v7584_v8 = vmul.f32 %v7567_v11, %v13529_v4  ;;  %v7996_v11 = vmul.f32 %v13626_v48, %v13455_v60 }
 0x3a6   :  { %6516 = vmatprep.mubr.f32.mxu1 %v14750_v31 }
 0x3a7   :  { %v6349_v41 = vpop.permute.xlu0 %6348  ;;  %v6347_v55 = vpop.permute.xlu1 %6346 }
 0x3a8   :  { %v6363_v44 = vsel %vm4691_vm12, %v6347_v55, %v6349_v41 }
 0x3a9   :  { %10894 = vrot.lane.b32.xlu0 %v10869_v27, %s11899_s28  ;;  %10892 = vrot.lane.b32.xlu1 %v10865_v3, %s11899_s28  ;;  %v7980_v27 = vsel %vm177_vm0, %v13626_v48, %v13638_v52  ;;  %v7981_v3 = vsel %vm177_vm0, %v13638_v52, %v13636_v49  ;;  %v10881_v52 = vrot.slane %v13996_v34, %v11982_v13 }
 0x3aa   :  { %6381 = vmatprep.subr.mxu0 %v6363_v44  ;;  %v7997_v15 = vmul.f32 %v7980_v27, %v13442_v28  ;;  %v7982_v28 = vsel %vm177_vm0, %v13636_v49, %v13663_v1  ;;  %v7983_v49 = vsel %vm177_vm0, %v13663_v1, %v13661_v6 }
 0x3ab   :  { %v14034_v30 = vpop.permute.xlu0 %9232  ;;  %v6345_v38 = vpop.permute.xlu1 %6344  ;;  %v7999_v60 = vmul.f32 %v7982_v28, %v13476_v5 }
 0x3ac   :  { %v6362_v39 = vsel %vm4691_vm12, %v6345_v38, %v6347_v55 }
 0x3ad   :  { %7610 = vrot.lane.b32.xlu0 %v7584_v8, %s11899_s28  ;;  %7608 = vrot.lane.b32.xlu1 %v7583_v2, %s11899_s28  ;;  %v10885_v8 = vrot.slane %v13996_v34, %v11992_v18  ;;  %v8000_v18 = vmul.f32 %v7983_v49, %v13496_v40 }
 0x3ae   :  { %6382 = vmatpush1.msra.mxu0 %v6362_v39  ;;  %v7984_v39 = vsel %vm177_vm0, %v13661_v6, %v13686_v21  ;;  %v7985_v6 = vsel %vm177_vm0, %v13686_v21, %v13684_v9 }
 0x3af   :  { %v6353_v23 = vpop.permute.xlu0 %6352  ;;  %v6351_v19 = vpop.permute.xlu1 %6350  ;;  %11497 = vmatmul.mubr.msk.f32.vlgmr.msra.gmra.mrb[0].mxu0 %vm249_vm5, %v14040_v16  ;;  %v8001_v5 = vmul.f32 %v7984_v39, %v13524_v57  ;;  %v8002_v62 = vmul.f32 %v7985_v6, %v13529_v4  ;;  %v14169_v39 = vld [vmem:[#allocation2 + $0x8] sm:$0xff] }
 0x3b0   :  { %v6365_v47 = vsel %vm4691_vm12, %v6351_v19, %v6353_v23  ;;  %v6364_v45 = vsel %vm4691_vm12, %v6349_v41, %v6351_v19  ;;  %6587 = vmatprep.mubr.f32.mxu0 %v14750_v31  ;;  %v7998_v41 = vmul.f32 %v7981_v3, %v13457_v24  ;;  %v14753_v3 = vld [vmem:[#allocation9_spill] sm:$0xff] }
 0x3b1   :  { %10898 = vrot.lane.b32.xlu0 %v10877_v32, %s11899_s28  ;;  %10896 = vrot.lane.b32.xlu1 %v10873_v0, %s11899_s28 }
 0x3b2   :  { %6452 = vmatprep.subr.mxu1 %v6365_v47 }
 0x3b3   :  { %6453 = vmatpush1.msra.mxu1 %v6364_v45  ;;  %v14061_v26 = vpop.permute.xlu0 %9638  ;;  %v14063_v50 = vpop.permute.xlu1 %9636 }
 0x3b4   :  { %11498 = vmatmul.mubr.msk.f32.vlgmr.msra.gmra.mrb[0].mxu1 %vm249_vm5, %v14040_v16 }
 0x3b5   :  { %7614 = vrot.lane.b32.xlu0 %v7586_v14, %s11899_s28  ;;  %7612 = vrot.lane.b32.xlu1 %v7585_v7, %s11899_s28  ;;  %v14752_v7 = vld [vmem:[#allocation8_spill] sm:$0xff] }
 0x3b6   :  { %6658 = vmatprep.mubr.f32.mxu1 %v14750_v31  ;;  %v7986_v21 = vsel %vm177_vm0, %v13684_v9, %v14752_v7 }
 0x3b7   :  { %v6355_v55 = vpop.permute.xlu0 %6354  ;;  %v14078_v42 = vpop.permute.xlu1 %9640 }
 0x3b8   :  { %v6366_v13 = vsel %vm4691_vm12, %v6353_v23, %v6355_v55  ;;  %v10889_v23 = vrot.slane %v13996_v34, %v11990_v17  ;;  %v8003_v17 = vmul.f32 %v7986_v21, %v13550_v54  ;;  %v8004_v34 = vmul.f32 %v14752_v7, %v13552_v51 }
 0x3b9   :  { %8020 = vrot.lane.b32.xlu0 %v7998_v41, %s11900_s29  ;;  %8018 = vrot.lane.b32.xlu1 %v7997_v15, %s11900_s29  ;;  %v14754_v15 = vld [vmem:[#allocation10_spill] sm:$0xff]  ;;  %v14755_v41 = vld [vmem:[#allocation11_spill] sm:$0xff] }
 0x3ba   :  { %v8398_v9 = vsel %vm921_vm2, %v14754_v15, %v14753_v3 }
 0x3bb   :  { %v14086_v44 = vpop.permute.xlu0 %9642  ;;  %v6357_v2 = vpop.permute.xlu1 %6356 }
 0x3bc   :  { %v6367_v24 = vsel %vm4691_vm12, %v6355_v55, %v6357_v2 }
 0x3bd   :  { %10900 = vrot.lane.b32.xlu0 %v10881_v52, %s11899_s28  ;;  %8016 = vrot.lane.b32.xlu1 %v7996_v11, %s11900_s29  ;;  %v14151_v11 = vld [vmem:[%s14731_s2 + $0x80] sm:$0xff] }
 0x3be   :  { %6523 = vmatprep.subr.mxu0 %v6367_v24  ;;  %v14156_v24 = vld [vmem:[#allocation2 + $0x18] sm:$0xff] }
 0x3bf   :  { %6524 = vmatpush1.msra.mxu0 %v6366_v13  ;;  %v6359_v48 = vpop.permute.xlu0 %6358  ;;  %v14098_v38 = vpop.permute.xlu1 %9644 }
 0x3c0   :  { %11499 = vmatmul.mubr.msk.f32.vlgmr.msra.gmra.mrb[2].mxu0 %vm249_vm5, %v14040_v16  ;;  %v6368_v19 = vsel %vm4691_vm12, %v6357_v2, %v6359_v48  ;;  %v14153_v2 = vld [vmem:[#allocation2 + $0x10] sm:$0xff] }
 0x3c1   :  { %8022 = vrot.lane.b32.xlu0 %v7999_v60, %s11900_s29  ;;  %10902 = vrot.lane.b32.xlu1 %v10885_v8, %s11899_s28  ;;  %v8415_v28 = vmul.f32 %v14153_v2, %v8398_v9  ;;  %v8816_v9 = vsel %vm1341_vm3, %v13857_v10, %v13855_v33 }
 0x3c2   :  { %6863 = vmatprep.mubr.f32.mxu0 %v14750_v31 }
 0x3c3   :  { %v14113_v32 = vpop.permute.xlu0 %9646  ;;  %v6361_v1 = vpop.permute.xlu1 %6360 }
 0x3c4   :  { %v6369_v0 = vsel %vm4691_vm12, %v6359_v48, %v6361_v1  ;;  %v14756_v48 = vld [vmem:[#allocation12_spill] sm:$0xff]  ;;  %vm14761_vm12 = vmmov %vm14758_vm4 }
 0x3c5   :  { %8026 = vrot.lane.b32.xlu0 %v8001_v5, %s11900_s29  ;;  %8024 = vrot.lane.b32.xlu1 %v8000_v18, %s11900_s29  ;;  %v8400_v49 = vsel %vm921_vm2, %v14755_v41, %v14756_v48  ;;  %v8414_v18 = vmul.f32 %v14169_v39, %v14754_v15  ;;  %v14173_v5 = vld [vmem:[#allocation2 + $0x20] sm:$0xff] }
 0x3c6   :  { %6594 = vmatprep.subr.mxu1 %v6369_v0  ;;  %v8417_v1 = vmul.f32 %v14173_v5, %v8400_v49 }
 0x3c7   :  { %6595 = vmatpush1.msra.mxu1 %v6368_v19  ;;  %v6765_v47 = vpop.permute.xlu0 %6764  ;;  %v14125_v45 = vpop.permute.xlu1 %9648  ;;  %v14757_v19 = vld [vmem:[#allocation13_spill] sm:$0xff] }
 0x3c8   :  { %11500 = vmatmul.mubr.msk.f32.vlgmr.msra.gmra.mrb[2].mxu1 %vm249_vm5, %v14040_v16  ;;  %v8399_v16 = vsel %vm921_vm2, %v14753_v3, %v14755_v41  ;;  %v8404_v3 = vsel %vm921_vm2, %v13836_v46, %v13834_v12 }
 0x3c9   :  { %10904 = vrot.lane.b32.xlu0 %v10889_v23, %s11899_s28  ;;  %8028 = vrot.lane.b32.xlu1 %v8002_v62, %s11900_s29  ;;  %v8416_v8 = vmul.f32 %v14156_v24, %v8399_v16  ;;  %v8401_v23 = vsel %vm921_vm2, %v14756_v48, %v13796_v25  ;;  %v8402_v62 = vsel %vm921_vm2, %v13796_v25, %v14757_v19 }
 0x3ca   :  { %6934 = vmatprep.mubr.f32.mxu1 %v14750_v31  ;;  %v8418_v21 = vmul.f32 %v8401_v23, %v13496_v40  ;;  %v8403_v25 = vsel %vm921_vm2, %v14757_v19, %v13836_v46  ;;  %v8821_v23 = vsel %vm1341_vm3, %v13894_v63, %v13904_v43  ;;  %v14261_v19 = vld [vmem:[#allocation2 + $0x30] sm:$0xff] }
 0x3cb   :  { %v6763_v14 = vpop.permute.xlu0 %6762  ;;  %v6767_v27 = vpop.permute.xlu1 %6766  ;;  %v8420_v40 = vmul.f32 %v8403_v25, %v13529_v4  ;;  %v8422_v4 = vmul.f32 %v13834_v12, %v13552_v51  ;;  %v8832_v51 = vmul.f32 %v14169_v39, %v13857_v10 }
 0x3cc   :  { %v6780_v55 = vsel %vm4272_vm11, %v6763_v14, %v6765_v47  ;;  %v6781_v52 = vsel %vm4272_vm11, %v6765_v47, %v6767_v27 }
 0x3cd   :  { %8032 = vrot.lane.b32.xlu0 %v8004_v34, %s11900_s29  ;;  %8030 = vrot.lane.b32.xlu1 %v8003_v17, %s11900_s29  ;;  %v8419_v17 = vmul.f32 %v8402_v62, %v13524_v57  ;;  %v8421_v57 = vmul.f32 %v8404_v3, %v13550_v54  ;;  %v8833_v54 = vmul.f32 %v14153_v2, %v8816_v9  ;;  %v14276_v3 = vld [vmem:[#allocation2 + $0x48] sm:$0xff] }
 0x3ce   :  { %6799 = vmatprep.subr.mxu0 %v6781_v52  ;;  %v8817_v52 = vsel %vm1341_vm3, %v13855_v33, %v13877_v22  ;;  %v8818_v33 = vsel %vm1341_vm3, %v13877_v22, %v13875_v61 }
 0x3cf   :  { %6800 = vmatpush1.msra.mxu0 %v6780_v55  ;;  %v6769_v13 = vpop.permute.xlu0 %6768  ;;  %v14159_v60 = vpop.permute.xlu1 %9650  ;;  %v8834_v12 = vmul.f32 %v14156_v24, %v8817_v52  ;;  %v8835_v10 = vmul.f32 %v14173_v5, %v8818_v33  ;;  %v9237_v33 = vsel %vm1761_vm9, %v13985_v37, %v13983_v36 }
 0x3d0   :  { %11504 = vmatmul.mubr.msk.f32.vlgmr.msra.gmra.mrb[0].mxu0 %vm249_vm5, %v14151_v11  ;;  %v6782_v7 = vsel %vm4272_vm11, %v6767_v27, %v6769_v13 }
 0x3d1   :  { %8438 = vrot.lane.b32.xlu0 %v8416_v8, %s11901_s30  ;;  %8436 = vrot.lane.b32.xlu1 %v8415_v28, %s11901_s30 }
 0x3d2   :  { %7005 = vmatprep.mubr.f32.mxu0 %v14750_v31 }
 0x3d3   :  { %v14176_v6 = vpop.permute.xlu0 %10054  ;;  %v6771_v0 = vpop.permute.xlu1 %6770 }
 0x3d4   :  { %v6783_v47 = vsel %vm4272_vm11, %v6769_v13, %v6771_v0  ;;  %v8819_v13 = vsel %vm1341_vm3, %v13875_v61, %v13896_v20  ;;  %v8820_v61 = vsel %vm1341_vm3, %v13896_v20, %v13894_v63  ;;  %v8822_v63 = vsel %vm1341_vm3, %v13904_v43, %v13929_v56 }
 0x3d5   :  { %8440 = vrot.lane.b32.xlu0 %v8417_v1, %s11901_s30  ;;  %8434 = vrot.lane.b32.xlu1 %v8414_v18, %s11901_s30  ;;  %v14243_v18 = vld [vmem:[#allocation2 + $0x28] sm:$0xff]  ;;  %v8837_v62 = vmul.f32 %v14261_v19, %v8820_v61  ;;  %v9234_v43 = vsel %vm1761_vm9, %v13942_v35, %v13954_v58 }
 0x3d6   :  { %6870 = vmatprep.subr.mxu1 %v6783_v47  ;;  %v8836_v1 = vmul.f32 %v14243_v18, %v8819_v13  ;;  %v14264_v47 = vld [vmem:[#allocation2 + $0x38] sm:$0xff]  ;;  %v9238_v13 = vsel %vm1761_vm9, %v13983_v36, %v14012_v29  ;;  %v9239_v36 = vsel %vm1761_vm9, %v14012_v29, %v14010_v59 }
 0x3d7   :  { %6871 = vmatpush1.msra.mxu1 %v6782_v7  ;;  %v14190_v34 = vpop.permute.xlu0 %10058  ;;  %v14192_v14 = vpop.permute.xlu1 %10056  ;;  %v8838_v20 = vmul.f32 %v14264_v47, %v8821_v23 }
 0x3d8   :  { %11505 = vmatmul.mubr.msk.f32.vlgmr.msra.gmra.mrb[0].mxu1 %vm249_vm5, %v14151_v11 }
 0x3d9   :  { %8444 = vrot.lane.b32.xlu0 %v8419_v17, %s11901_s30  ;;  %8442 = vrot.lane.b32.xlu1 %v8418_v21, %s11901_s30  ;;  %v14273_v17 = vld [vmem:[#allocation2 + $0x40] sm:$0xff] }
 0x3da   :  { %7076 = vmatprep.mubr.f32.mxu1 %v14750_v31  ;;  %v8839_v25 = vmul.f32 %v14273_v17, %v8822_v63 }
 0x3db   :  { %v6775_v27 = vpop.permute.xlu0 %6774  ;;  %v6773_v15 = vpop.permute.xlu1 %6772 }
 0x3dc   :  { %v6785_v46 = vsel %vm4272_vm11, %v6773_v15, %v6775_v27  ;;  %v6784_v41 = vsel %vm4272_vm11, %v6771_v0, %v6773_v15  ;;  %v9235_v15 = vsel %vm1761_vm9, %v13954_v58, %v13952_v53  ;;  %v9236_v58 = vsel %vm1761_vm9, %v13952_v53, %v13985_v37 }
 0x3dd   :  { %8448 = vrot.lane.b32.xlu0 %v8421_v57, %s11901_s30  ;;  %8446 = vrot.lane.b32.xlu1 %v8420_v40, %s11901_s30  ;;  %v8840_v40 = vmul.f32 %v14276_v3, %v13929_v56  ;;  %v9251_v56 = vmul.f32 %v14153_v2, %v9234_v43  ;;  %v9240_v37 = vsel %vm1761_vm9, %v14010_v59, %v14034_v30 }
 0x3de   :  { %6941 = vmatprep.subr.mxu0 %v6785_v46  ;;  %v14292_v46 = vld [vmem:[%s14731_s2 + $0x88] sm:$0xff]  ;;  %v9257_v61 = vmul.f32 %v14273_v17, %v9240_v37 }
 0x3df   :  { %6942 = vmatpush1.msra.mxu0 %v6784_v41  ;;  %v14217_v16 = vpop.permute.xlu0 %10062  ;;  %v14219_v55 = vpop.permute.xlu1 %10060  ;;  %v9252_v41 = vmul.f32 %v14156_v24, %v9235_v15  ;;  %v9655_v15 = vsel %vm1396_vm8, %v14086_v44, %v14098_v38 }
 0x3e0   :  { %11506 = vmatmul.mubr.msk.f32.vlgmr.msra.gmra.mrb[2].mxu0 %vm249_vm5, %v14151_v11 }
 0x3e1   :  { %8854 = vrot.lane.b32.xlu0 %v8833_v54, %s11903_s7  ;;  %8450 = vrot.lane.b32.xlu1 %v8422_v4, %s11901_s30 }
 0x3e2   :  { %7281 = vmatprep.mubr.f32.mxu0 %v14750_v31 }
 0x3e3   :  { %v6779_v28 = vpop.permute.xlu0 %6778  ;;  %v6777_v8 = vpop.permute.xlu1 %6776 }
 0x3e4   :  { %v6787_v48 = vsel %vm4272_vm11, %v6777_v8, %v6779_v28  ;;  %v6786_v49 = vsel %vm4272_vm11, %v6775_v27, %v6777_v8  ;;  %v9253_v28 = vmul.f32 %v14173_v5, %v9236_v58  ;;  %vm14760_vm11 = vmmov %vm14758_vm4 }
 0x3e5   :  { %8852 = vrot.lane.b32.xlu0 %v8832_v51, %s11903_s7  ;;  %8856 = vrot.lane.b32.xlu1 %v8834_v12, %s11903_s7  ;;  %v9250_v12 = vmul.f32 %v14169_v39, %v13942_v35  ;;  %v9254_v35 = vmul.f32 %v14243_v18, %v9237_v33 }
 0x3e6   :  { %7012 = vmatprep.subr.mxu1 %v6787_v48  ;;  %v9255_v48 = vmul.f32 %v14261_v19, %v9238_v13  ;;  %v9676_v13 = vmul.f32 %v14276_v3, %v14159_v60 }
 0x3e7   :  { %7013 = vmatpush1.msra.mxu1 %v6786_v49  ;;  %v14246_v22 = vpop.permute.xlu0 %10066  ;;  %v14248_v0 = vpop.permute.xlu1 %10064 }
 0x3e8   :  { %11507 = vmatmul.mubr.msk.f32.vlgmr.msra.gmra.mrb[2].mxu1 %vm249_vm5, %v14151_v11 }
 0x3e9   :  { %8860 = vrot.lane.b32.xlu0 %v8836_v1, %s11903_s7  ;;  %8858 = vrot.lane.b32.xlu1 %v8835_v10, %s11903_s7  ;;  %v9256_v1 = vmul.f32 %v14264_v47, %v9239_v36 }
 0x3ea   :  { %7352 = vmatprep.mubr.f32.mxu1 %v14750_v31 }
 0x3eb   :  { %v7185_v7 = vpop.permute.xlu0 %7184  ;;  %v7183_v21 = vpop.permute.xlu1 %7182 }
 0x3ec   :  { %v7199_v11 = vsel %vm3852_vm10, %v7183_v21, %v7185_v7 }
 0x3ed   :  { %8864 = vrot.lane.b32.xlu0 %v8838_v20, %s11903_s7  ;;  %8862 = vrot.lane.b32.xlu1 %v8837_v62, %s11903_s7  ;;  %v9652_v20 = vsel %vm1396_vm8, %v14063_v50, %v14061_v26 }
 0x3ee   :  { %7217 = vmatprep.subr.mxu0 %v7199_v11 }
 0x3ef   :  { %v14280_v57 = vpop.permute.xlu0 %10068  ;;  %v7181_v27 = vpop.permute.xlu1 %7180 }
 0x3f0   :  { %v7198_v9 = vsel %vm3852_vm10, %v7181_v27, %v7183_v21  ;;  %v9669_v21 = vmul.f32 %v14153_v2, %v9652_v20  ;;  %v10086_v20 = vmul.f32 %v14169_v39, %v14176_v6 }
 0x3f1   :  { %8868 = vrot.lane.b32.xlu0 %v8840_v40, %s11903_s7  ;;  %8866 = vrot.lane.b32.xlu1 %v8839_v25, %s11903_s7  ;;  %v9653_v25 = vsel %vm1396_vm8, %v14061_v26, %v14078_v42  ;;  %v9654_v26 = vsel %vm1396_vm8, %v14078_v42, %v14086_v44  ;;  %v9656_v44 = vsel %vm1396_vm8, %v14098_v38, %v14113_v32 }
 0x3f2   :  { %7218 = vmatpush1.msra.mxu0 %v7198_v9  ;;  %v9670_v40 = vmul.f32 %v14156_v24, %v9653_v25  ;;  %v9673_v58 = vmul.f32 %v14261_v19, %v9656_v44  ;;  %v9658_v38 = vsel %vm1396_vm8, %v14125_v45, %v14159_v60 }
 0x3f3   :  { %v7189_v4 = vpop.permute.xlu0 %7188  ;;  %v7187_v54 = vpop.permute.xlu1 %7186  ;;  %11511 = vmatmul.mubr.msk.f32.vlgmr.msra.gmra.mrb[0].mxu0 %vm249_vm5, %v14292_v46  ;;  %v9675_v33 = vmul.f32 %v14273_v17, %v9658_v38 }
 0x3f4   :  { %v7201_v52 = vsel %vm3852_vm10, %v7187_v54, %v7189_v4  ;;  %v7200_v51 = vsel %vm3852_vm10, %v7185_v7, %v7187_v54  ;;  %7423 = vmatprep.mubr.f32.mxu0 %v14750_v31  ;;  %v9258_v7 = vmul.f32 %v14276_v3, %v14034_v30  ;;  %v9668_v30 = vmul.f32 %v14169_v39, %v14063_v50 }
 0x3f5   :  { %9274 = vrot.lane.b32.xlu0 %v9252_v41, %s11904_s12  ;;  %9272 = vrot.lane.b32.xlu1 %v9251_v56, %s11904_s12  ;;  %v9671_v56 = vmul.f32 %v14173_v5, %v9654_v26  ;;  %v9672_v41 = vmul.f32 %v14243_v18, %v9655_v15  ;;  %v9657_v54 = vsel %vm1396_vm8, %v14113_v32, %v14125_v45 }
 0x3f6   :  { %7288 = vmatprep.subr.mxu1 %v7201_v52  ;;  %v9674_v52 = vmul.f32 %v14264_v47, %v9657_v54 }
 0x3f7   :  { %7289 = vmatpush1.msra.mxu1 %v7200_v51  ;;  %v14311_v8 = vpop.permute.xlu0 %10474  ;;  %v14313_v53 = vpop.permute.xlu1 %10472 }
 0x3f8   :  { %11512 = vmatmul.mubr.msk.f32.vlgmr.msra.gmra.mrb[0].mxu1 %vm249_vm5, %v14292_v46 }
 0x3f9   :  { %9276 = vrot.lane.b32.xlu0 %v9253_v28, %s11904_s12  ;;  %9270 = vrot.lane.b32.xlu1 %v9250_v12, %s11904_s12  ;;  %v14404_v28 = vld [vmem:[%s14731_s2 + $0x90] sm:$0xff] }
 0x3fa   :  { %7494 = vmatprep.mubr.f32.mxu1 %v14750_v31 }
 0x3fb   :  { %v7191_v49 = vpop.permute.xlu0 %7190  ;;  %v14328_v10 = vpop.permute.xlu1 %10476 }
 0x3fc   :  { %v7202_v59 = vsel %vm3852_vm10, %v7189_v4, %v7191_v49 }
 0x3fd   :  { %9280 = vrot.lane.b32.xlu0 %v9255_v48, %s11904_s12  ;;  %9278 = vrot.lane.b32.xlu1 %v9254_v35, %s11904_s12  ;;  %v10070_v48 = vsel %vm976_vm7, %v14176_v6, %v14192_v14 }
 0x3fe   :  { %v10087_v60 = vmul.f32 %v14153_v2, %v10070_v48 }
 0x3ff   :  { %v14340_v23 = vpop.permute.xlu0 %10478  ;;  %v7193_v62 = vpop.permute.xlu1 %7192 }
 0x400   :  { %v7203_v29 = vsel %vm3852_vm10, %v7191_v49, %v7193_v62  ;;  %v10071_v49 = vsel %vm976_vm7, %v14192_v14, %v14190_v34  ;;  %v10072_v14 = vsel %vm976_vm7, %v14190_v34, %v14219_v55  ;;  %v10073_v34 = vsel %vm976_vm7, %v14219_v55, %v14217_v16 }
 0x401   :  { %9284 = vrot.lane.b32.xlu0 %v9257_v61, %s11904_s12  ;;  %9282 = vrot.lane.b32.xlu1 %v9256_v1, %s11904_s12  ;;  %v10088_v36 = vmul.f32 %v14156_v24, %v10071_v49  ;;  %v10090_v6 = vmul.f32 %v14243_v18, %v10073_v34  ;;  %v10075_v55 = vsel %vm976_vm7, %v14248_v0, %v14246_v22 }
 0x402   :  { %7359 = vmatprep.subr.mxu0 %v7203_v29  ;;  %v10089_v29 = vmul.f32 %v14173_v5, %v10072_v14  ;;  %v10092_v26 = vmul.f32 %v14264_v47, %v10075_v55 }
 0x403   :  { %7360 = vmatpush1.msra.mxu0 %v7202_v59  ;;  %v7195_v63 = vpop.permute.xlu0 %7194  ;;  %v14352_v11 = vpop.permute.xlu1 %10480 }
 0x404   :  { %11513 = vmatmul.mubr.msk.f32.vlgmr.msra.gmra.mrb[2].mxu0 %vm249_vm5, %v14292_v46  ;;  %v7204_v50 = vsel %vm3852_vm10, %v7193_v62, %v7195_v63  ;;  %v10491_v38 = vsel %vm14761_vm12, %v14340_v23, %v14352_v11  ;;  %vm14767_vm12 = vmmov %vm14758_vm4 }
 0x405   :  { %9690 = vrot.lane.b32.xlu0 %v9669_v21, %s11898_s27  ;;  %9286 = vrot.lane.b32.xlu1 %v9258_v7, %s11904_s12  ;;  %v10074_v21 = vsel %vm976_vm7, %v14217_v16, %v14248_v0  ;;  %v10076_v16 = vsel %vm976_vm7, %v14246_v22, %v14280_v57  ;;  %v10488_v22 = vsel %vm14758_vm4, %v14313_v53, %v14311_v8 }
 0x406   :  { %7699 = vmatprep.mubr.f32.mxu0 %v14750_v31  ;;  %v10093_v15 = vmul.f32 %v14273_v17, %v10076_v16 }
 0x407   :  { %v14365_v27 = vpop.permute.xlu0 %10482  ;;  %v7197_v43 = vpop.permute.xlu1 %7196 }
 0x408   :  { %v7205_v9 = vsel %vm3852_vm10, %v7195_v63, %v7197_v43  ;;  %v10091_v63 = vmul.f32 %v14261_v19, %v10074_v21  ;;  %vm14759_vm10 = vmmov %vm14758_vm4 }
 0x409   :  { %9688 = vrot.lane.b32.xlu0 %v9668_v30, %s11898_s27  ;;  %9692 = vrot.lane.b32.xlu1 %v9670_v40, %s11898_s27  ;;  %v10489_v44 = vsel %vm14759_vm10, %v14311_v8, %v14328_v10  ;;  %v10490_v8 = vsel %vm14760_vm11, %v14328_v10, %v14340_v23  ;;  %v10508_v10 = vmul.f32 %v14243_v18, %v10491_v38  ;;  %vm14765_vm10 = vmmov %vm14758_vm4 }
 0x40a   :  { %7430 = vmatprep.subr.mxu1 %v7205_v9  ;;  %v10492_v23 = vsel %vm14763_vm14, %v14352_v11, %v14365_v27  ;;  %vm14766_vm11 = vmmov %vm14758_vm4 }
 0x40b   :  { %7431 = vmatpush1.msra.mxu1 %v7204_v50  ;;  %v7601_v4 = vpop.permute.xlu0 %7600  ;;  %v14379_v42 = vpop.permute.xlu1 %10484  ;;  %v10094_v50 = vmul.f32 %v14276_v3, %v14280_v57  ;;  %v10504_v57 = vmul.f32 %v14169_v39, %v14313_v53  ;;  %v10507_v53 = vmul.f32 %v14173_v5, %v10490_v8  ;;  %v10509_v48 = vmul.f32 %v14261_v19, %v10492_v23  ;;  %vm14769_vm14 = vmmov %vm14758_vm4 }
 0x40c   :  { %11514 = vmatmul.mubr.msk.f32.vlgmr.msra.gmra.mrb[2].mxu1 %vm249_vm5, %v14292_v46 }
 0x40d   :  { %9694 = vrot.lane.b32.xlu1 %v9671_v56, %s11898_s27  ;;  %9696 = vrot.lane.b32.xlu0 %v9672_v41, %s11898_s27  ;;  %v10505_v56 = vmul.f32 %v14153_v2, %v10488_v22  ;;  %v11913_v22 = vmov 0  }
 0x40e   :  { %7770 = vmatprep.mubr.f32.mxu1 %v14750_v31  ;;  %11807 = vset.pattern.permute.xlu0 %v11913_v22 }
 0x40f   :  { %v7599_v51 = vpop.permute.xlu0 %7598  ;;  %v7603_v12 = vpop.permute.xlu1 %7602  ;;  %11808 = vset.pattern.permute.xlu1 %v11913_v22 }
 0x410   :  { %v7616_v32 = vsel %vm564_vm6, %v7599_v51, %v7601_v4  ;;  %v7617_v46 = vsel %vm564_vm6, %v7601_v4, %v7603_v12 }
 0x411   :  { %9698 = vrot.lane.b32.xlu1 %v9673_v58, %s11898_s27  ;;  %9700 = vrot.lane.b32.xlu0 %v9674_v52, %s11898_s27  ;;  %v10506_v52 = vmul.f32 %v14156_v24, %v10489_v44 }
 0x412   :  { %7635 = vmatprep.subr.mxu0 %v7617_v46 }
 0x413   :  { %7636 = vmatpush1.msra.mxu0 %v7616_v32  ;;  %v7605_v45 = vpop.permute.xlu0 %7604  ;;  %v14409_v35 = vpop.permute.xlu1 %10486 }
 0x414   :  { %11518 = vmatmul.mubr.msk.f32.vlgmr.msra.gmra.mrb[0].mxu0 %vm249_vm5, %v14404_v28  ;;  %v7618_v62 = vsel %vm564_vm6, %v7603_v12, %v7605_v45 }
 0x415   :  { %9704 = vrot.lane.b32.xlu0 %v9676_v13, %s11898_s27  ;;  %9702 = vrot.lane.b32.xlu1 %v9675_v33, %s11898_s27 }
 0x416   :  { %7841 = vmatprep.mubr.f32.mxu0 %v14750_v31 }
 0x417   :  { %v14424_v37 = vpop.permute.xlu0 %10890  ;;  %v7607_v1 = vpop.permute.xlu1 %7606 }
 0x418   :  { %v7619_v61 = vsel %vm564_vm6, %v7605_v45, %v7607_v1  ;;  %v11524_v45 = vld [vmem:[%s14731_s2 + $0x98] sm:$0xff] }
 0x419   :  { %10110 = vrot.lane.b32.xlu0 %v10088_v36, %s11897_s22  ;;  %10108 = vrot.lane.b32.xlu1 %v10087_v60, %s11897_s22 }
 0x41a   :  { %7706 = vmatprep.subr.mxu1 %v7619_v61 }
 0x41b   :  { %7707 = vmatpush1.msra.mxu1 %v7618_v62  ;;  %v14436_v59 = vpop.permute.xlu0 %10894  ;;  %v14438_v7 = vpop.permute.xlu1 %10892 }
 0x41c   :  { %11519 = vmatmul.mubr.msk.f32.vlgmr.msra.gmra.mrb[0].mxu1 %vm249_vm5, %v14404_v28  ;;  %v10906_v62 = vsel %vm564_vm6, %v14424_v37, %v14438_v7 }
 0x41d   :  { %10106 = vrot.lane.b32.xlu1 %v10086_v20, %s11897_s22  ;;  %10112 = vrot.lane.b32.xlu0 %v10089_v29, %s11897_s22 }
 0x41e   :  { %7912 = vmatprep.mubr.f32.mxu1 %v14750_v31 }
 0x41f   :  { %v7611_v25 = vpop.permute.xlu0 %7610  ;;  %v7609_v30 = vpop.permute.xlu1 %7608 }
 0x420   :  { %v7620_v40 = vsel %vm564_vm6, %v7607_v1, %v7609_v30  ;;  %v7621_v43 = vsel %vm564_vm6, %v7609_v30, %v7611_v25  ;;  %v10512_v1 = vmul.f32 %v14276_v3, %v14409_v35 }
 0x421   :  { %10114 = vrot.lane.b32.xlu1 %v10090_v6, %s11897_s22  ;;  %10116 = vrot.lane.b32.xlu0 %v10091_v63, %s11897_s22 }
 0x422   :  { %7777 = vmatprep.subr.mxu0 %v7621_v43 }
 0x423   :  { %7778 = vmatpush1.msra.mxu0 %v7620_v40  ;;  %v14465_v9 = vpop.permute.xlu0 %10898  ;;  %v14467_v0 = vpop.permute.xlu1 %10896 }
 0x424   :  { %11520 = vmatmul.mubr.msk.f32.vlgmr.msra.gmra.mrb[2].mxu0 %vm249_vm5, %v14404_v28  ;;  %v10909_v55 = vsel %vm564_vm6, %v14467_v0, %v14465_v9 }
 0x425   :  { %10118 = vrot.lane.b32.xlu1 %v10092_v26, %s11897_s22  ;;  %10120 = vrot.lane.b32.xlu0 %v10093_v15, %s11897_s22 }
 0x426   :  { %8117 = vmatprep.mubr.f32.mxu0 %v14750_v31 }
 0x427   :  { %v7615_v41 = vpop.permute.xlu0 %7614  ;;  %v7613_v4 = vpop.permute.xlu1 %7612 }
 0x428   :  { %v7622_v54 = vsel %vm564_vm6, %v7611_v25, %v7613_v4  ;;  %v7623_v58 = vsel %vm564_vm6, %v7613_v4, %v7615_v41  ;;  %v11531_v4 = vld [vmem:[%s14731_s2 + $0xa0] sm:$0xff] }
 0x429   :  { %10122 = vrot.lane.b32.xlu1 %v10094_v50, %s11897_s22  ;;  %10526 = vrot.lane.b32.xlu0 %v10505_v56, %s11896_s17 }
 0x42a   :  { %7848 = vmatprep.subr.mxu1 %v7623_v58 }
 0x42b   :  { %7849 = vmatpush1.msra.mxu1 %v7622_v54  ;;  %v8021_v51 = vpop.permute.xlu0 %8020  ;;  %v8019_v12 = vpop.permute.xlu1 %8018 }
 0x42c   :  { %v8035_v32 = vsel %vm14762_vm13, %v8019_v12, %v8021_v51  ;;  %11521 = vmatmul.mubr.msk.f32.vlgmr.msra.gmra.mrb[2].mxu1 %vm249_vm5, %v14404_v28  ;;  %v10493_v28 = vsel %vm14764_vm15, %v14365_v27, %v14379_v42  ;;  %v10494_v27 = vsel %vm14765_vm10, %v14379_v42, %v14409_v35  ;;  %v10907_v42 = vsel %vm564_vm6, %v14438_v7, %v14436_v59  ;;  %vm14768_vm13 = vmmov %vm14758_vm4 }
 0x42d   :  { %10524 = vrot.lane.b32.xlu0 %v10504_v57, %s11896_s17  ;;  %10528 = vrot.lane.b32.xlu1 %v10506_v52, %s11896_s17  ;;  %v10510_v49 = vmul.f32 %v14264_v47, %v10493_v28  ;;  %v10511_v36 = vmul.f32 %v14273_v17, %v10494_v27  ;;  %v10923_v35 = vmul.f32 %v14153_v2, %v10906_v62  ;;  %vm14770_vm15 = vmmov %vm14758_vm4  ;;  %v11538_v28 = vld [vmem:[%s14731_s2 + $0xa8] sm:$0xff] }
 0x42e   :  { %8053 = vmatprep.subr.mxu0 %v8035_v32  ;;  %8188 = vmatprep.mubr.f32.mxu1 %v14750_v31  ;;  %v10924_v34 = vmul.f32 %v14156_v24, %v10907_v42  ;;  %v10908_v7 = vsel %vm564_vm6, %v14436_v59, %v14467_v0  ;;  %v10922_v2 = vmul.f32 %v14169_v39, %v14424_v37 }
 0x42f   :  { %v10901_v46 = vpop.permute.xlu0 %10900  ;;  %v8017_v33 = vpop.permute.xlu1 %8016  ;;  %v10925_v24 = vmul.f32 %v14173_v5, %v10908_v7  ;;  %v10926_v39 = vmul.f32 %v14243_v18, %v10909_v55 }
 0x430   :  { %v8034_v13 = vsel %vm14758_vm4, %v8017_v33, %v8019_v12  ;;  %v10910_v16 = vsel %vm564_vm6, %v14465_v9, %v10901_v46 }
 0x431   :  { %10530 = vrot.lane.b32.xlu1 %v10507_v53, %s11896_s17  ;;  %10532 = vrot.lane.b32.xlu0 %v10508_v10, %s11896_s17  ;;  %v10927_v5 = vmul.f32 %v14261_v19, %v10910_v16 }
 0x432   :  { %8054 = vmatpush1.msra.mxu0 %v8034_v13 }
 0x433   :  { %v8023_v11 = vpop.permute.xlu0 %8022  ;;  %v10903_v60 = vpop.permute.xlu1 %10902  ;;  %11525 = vmatmul.mubr.msk.f32.vlgmr.msra.gmra.mrb[0].mxu0 %vm249_vm5, %v11524_v45 }
 0x434   :  { %8259 = vmatprep.mubr.f32.mxu0 %v14750_v31  ;;  %v8036_v29 = vsel %vm14767_vm12, %v8021_v51, %v8023_v11  ;;  %v10911_v15 = vsel %vm564_vm6, %v10901_v46, %v10903_v60 }
 0x435   :  { %10534 = vrot.lane.b32.xlu1 %v10509_v48, %s11896_s17  ;;  %10536 = vrot.lane.b32.xlu0 %v10510_v49, %s11896_s17  ;;  %v10928_v18 = vmul.f32 %v14264_v47, %v10911_v15 }
 0x437   :  { %v8027_v14 = vpop.permute.xlu0 %8026  ;;  %v8025_v61 = vpop.permute.xlu1 %8024 }
 0x438   :  { %v8037_v20 = vsel %vm14766_vm11, %v8023_v11, %v8025_v61  ;;  %v8038_v25 = vsel %vm14769_vm14, %v8025_v61, %v8027_v14 }
 0x439   :  { %10540 = vrot.lane.b32.xlu0 %v10512_v1, %s11896_s17  ;;  %10538 = vrot.lane.b32.xlu1 %v10511_v36, %s11896_s17 }
 0x43a   :  { %8124 = vmatprep.subr.mxu1 %v8037_v20 }
 0x43b   :  { %8125 = vmatpush1.msra.mxu1 %v8036_v29  ;;  %v10905_v21 = vpop.permute.xlu0 %10904  ;;  %v8029_v6 = vpop.permute.xlu1 %8028 }
 0x43c   :  { %v8039_v63 = vsel %vm14768_vm13, %v8027_v14, %v8029_v6  ;;  %11526 = vmatmul.mubr.msk.f32.vlgmr.msra.gmra.mrb[0].mxu1 %vm249_vm5, %v11524_v45  ;;  %v10912_v9 = vsel %vm564_vm6, %v10903_v60, %v10905_v21  ;;  %v10930_v44 = vmul.f32 %v14276_v3, %v10905_v21  ;;  %v11545_v21 = vld [vmem:[%s14731_s2 + $0xb0] sm:$0xff] }
 0x43d   :  { %10946 = vrot.lane.b32.xlu0 %v10924_v34, %s11895_s0  ;;  %10944 = vrot.lane.b32.xlu1 %v10923_v35, %s11895_s0  ;;  %v10929_v19 = vmul.f32 %v14273_v17, %v10912_v9  ;;  %v11271_v17 = vld [vmem:[%s14732_s3] sm:$0xff]  ;;  %v11552_v9 = vld [vmem:[%s14731_s2 + $0xb8] sm:$0xff] }
 0x43e   :  { %8195 = vmatprep.subr.mxu0 %v8039_v63  ;;  %8330 = vmatprep.mubr.f32.mxu1 %v14750_v31 }
 0x43f   :  { %8196 = vmatpush1.msra.mxu0 %v8038_v25  ;;  %v8033_v59 = vpop.permute.xlu0 %8032  ;;  %v8031_v30 = vpop.permute.xlu1 %8030 }
 0x440   :  { %v8040_v40 = vsel %vm14770_vm15, %v8029_v6, %v8031_v30  ;;  %v8041_v43 = vsel %vm14758_vm4, %v8031_v30, %v8033_v59  ;;  %11527 = vmatmul.mubr.msk.f32.vlgmr.msra.gmra.mrb[2].mxu0 %vm249_vm5, %v11524_v45 }
 0x441   :  { %10942 = vrot.lane.b32.xlu1 %v10922_v2, %s11895_s0  ;;  %10948 = vrot.lane.b32.xlu0 %v10925_v24, %s11895_s0 }
 0x442   :  { %8266 = vmatprep.subr.mxu1 %v8041_v43  ;;  %8535 = vmatprep.mubr.f32.mxu0 %v14750_v31 }
 0x443   :  { %8267 = vmatpush1.msra.mxu1 %v8040_v40  ;;  %v8439_v37 = vpop.permute.xlu0 %8438  ;;  %v8437_v26 = vpop.permute.xlu1 %8436 }
 0x444   :  { %v8453_v0 = vsel %vm976_vm7, %v8437_v26, %v8439_v37  ;;  %11528 = vmatmul.mubr.msk.f32.vlgmr.msra.gmra.mrb[2].mxu1 %vm249_vm5, %v11524_v45 }
 0x445   :  { %10950 = vrot.lane.b32.xlu1 %v10926_v39, %s11895_s0  ;;  %10952 = vrot.lane.b32.xlu0 %v10927_v5, %s11895_s0 }
 0x446   :  { %8471 = vmatprep.subr.mxu0 %v8453_v0  ;;  %8606 = vmatprep.mubr.f32.mxu1 %v14750_v31 }
 0x447   :  { %v8441_v50 = vpop.permute.xlu0 %8440  ;;  %v8435_v56 = vpop.permute.xlu1 %8434 }
 0x448   :  { %v8452_v41 = vsel %vm976_vm7, %v8435_v56, %v8437_v26  ;;  %v8454_v57 = vsel %vm976_vm7, %v8439_v37, %v8441_v50 }
 0x449   :  { %10956 = vrot.lane.b32.xlu0 %v10929_v19, %s11895_s0  ;;  %10954 = vrot.lane.b32.xlu1 %v10928_v18, %s11895_s0 }
 0x44a   :  { %8472 = vmatpush1.msra.mxu0 %v8452_v41 }
 0x44b   :  { %v8445_v54 = vpop.permute.xlu0 %8444  ;;  %v8443_v47 = vpop.permute.xlu1 %8442  ;;  %11532 = vmatmul.mubr.msk.f32.vlgmr.msra.gmra.mrb[0].mxu0 %vm249_vm5, %v11531_v4 }
 0x44c   :  { %v8455_v58 = vsel %vm976_vm7, %v8441_v50, %v8443_v47  ;;  %8677 = vmatprep.mubr.f32.mxu0 %v14750_v31  ;;  %v8456_v12 = vsel %vm976_vm7, %v8443_v47, %v8445_v54 }
 0x44d   :  { %10958 = vrot.lane.b32.xlu1 %v10930_v44, %s11895_s0  ;;  %8542 = vmatprep.subr.mxu1 %v8455_v58 }
 0x44e   :  { %8543 = vmatpush1.msra.mxu1 %v8454_v57  ;;  %11274 = vperm.xlu0 %11807, %v11271_v17  }
 0x44f   :  { %v8449_v3 = vpop.permute.xlu0 %8448  ;;  %v8447_v52 = vpop.permute.xlu1 %8446  ;;  %11533 = vmatmul.mubr.msk.f32.vlgmr.msra.gmra.mrb[0].mxu1 %vm249_vm5, %v11531_v4 }
 0x450   :  { %v8457_v51 = vsel %vm976_vm7, %v8445_v54, %v8447_v52  ;;  %8748 = vmatprep.mubr.f32.mxu1 %v14750_v31  ;;  %v8458_v53 = vsel %vm976_vm7, %v8447_v52, %v8449_v3 }
 0x451   :  { %8613 = vmatprep.subr.mxu0 %v8457_v51 }
 0x452   :  { %8614 = vmatpush1.msra.mxu0 %v8456_v12  ;;  %v11559_v12 = vld [vmem:[%s14731_s2 + $0xc0] sm:$0xff] }
 0x453   :  { %v8855_v8 = vpop.permute.xlu0 %8854  ;;  %v8451_v38 = vpop.permute.xlu1 %8450  ;;  %11534 = vmatmul.mubr.msk.f32.vlgmr.msra.gmra.mrb[2].mxu0 %vm249_vm5, %v11531_v4 }
 0x454   :  { %v8459_v32 = vsel %vm976_vm7, %v8449_v3, %v8451_v38  ;;  %8953 = vmatprep.mubr.f32.mxu0 %v14750_v31 }
 0x455   :  { %8684 = vmatprep.subr.mxu1 %v8459_v32 }
 0x456   :  { %8685 = vmatpush1.msra.mxu1 %v8458_v53 }
 0x457   :  { %v8853_v10 = vpop.permute.xlu0 %8852  ;;  %v8857_v46 = vpop.permute.xlu1 %8856  ;;  %11535 = vmatmul.mubr.msk.f32.vlgmr.msra.gmra.mrb[2].mxu1 %vm249_vm5, %v11531_v4 }
 0x458   :  { %v8870_v33 = vsel %vm1396_vm8, %v8853_v10, %v8855_v8  ;;  %v8871_v23 = vsel %vm1396_vm8, %v8855_v8, %v8857_v46  ;;  %9024 = vmatprep.mubr.f32.mxu1 %v14750_v31 }
 0x459   :  { %8889 = vmatprep.subr.mxu0 %v8871_v23 }
 0x45a   :  { %8890 = vmatpush1.msra.mxu0 %v8870_v33 }
 0x45b   :  { %v8861_v13 = vpop.permute.xlu0 %8860  ;;  %v8859_v45 = vpop.permute.xlu1 %8858  ;;  %11539 = vmatmul.mubr.msk.f32.vlgmr.msra.gmra.mrb[0].mxu0 %vm249_vm5, %v11538_v28 }
 0x45c   :  { %v8872_v48 = vsel %vm1396_vm8, %v8857_v46, %v8859_v45  ;;  %v8873_v49 = vsel %vm1396_vm8, %v8859_v45, %v8861_v13  ;;  %9095 = vmatprep.mubr.f32.mxu0 %v14750_v31 }
 0x45d   :  { %8960 = vmatprep.subr.mxu1 %v8873_v49 }
 0x45e   :  { %8961 = vmatpush1.msra.mxu1 %v8872_v48 }
 0x45f   :  { %v8865_v11 = vpop.permute.xlu0 %8864  ;;  %v8863_v60 = vpop.permute.xlu1 %8862  ;;  %11540 = vmatmul.mubr.msk.f32.vlgmr.msra.gmra.mrb[0].mxu1 %vm249_vm5, %v11538_v28 }
 0x460   :  { %v8874_v27 = vsel %vm1396_vm8, %v8861_v13, %v8863_v60  ;;  %v8875_v36 = vsel %vm1396_vm8, %v8863_v60, %v8865_v11  ;;  %9166 = vmatprep.mubr.f32.mxu1 %v14750_v31 }
 0x461   :  { %9031 = vmatprep.subr.mxu0 %v8875_v36 }
 0x462   :  { %9032 = vmatpush1.msra.mxu0 %v8874_v27 }
 0x463   :  { %v8869_v1 = vpop.permute.xlu0 %8868  ;;  %v8867_v14 = vpop.permute.xlu1 %8866  ;;  %11541 = vmatmul.mubr.msk.f32.vlgmr.msra.gmra.mrb[2].mxu0 %vm249_vm5, %v11538_v28 }
 0x464   :  { %v8876_v61 = vsel %vm1396_vm8, %v8865_v11, %v8867_v14  ;;  %v8877_v62 = vsel %vm1396_vm8, %v8867_v14, %v8869_v1  ;;  %9371 = vmatprep.mubr.f32.mxu0 %v14750_v31  ;;  %v11566_v1 = vld [vmem:[%s14731_s2 + $0xc8] sm:$0xff] }
 0x465   :  { %9102 = vmatprep.subr.mxu1 %v8877_v62 }
 0x466   :  { %9103 = vmatpush1.msra.mxu1 %v8876_v61 }
 0x467   :  { %v9275_v42 = vpop.permute.xlu0 %9274  ;;  %v9273_v20 = vpop.permute.xlu1 %9272  ;;  %11542 = vmatmul.mubr.msk.f32.vlgmr.msra.gmra.mrb[2].mxu1 %vm249_vm5, %v11538_v28 }
 0x468   :  { %v9289_v29 = vsel %vm1761_vm9, %v9273_v20, %v9275_v42  ;;  %9442 = vmatprep.mubr.f32.mxu1 %v14750_v31 }
 0x469   :  { %9307 = vmatprep.subr.mxu0 %v9289_v29 }
 0x46b   :  { %v9277_v35 = vpop.permute.xlu0 %9276  ;;  %v9271_v34 = vpop.permute.xlu1 %9270 }
 0x46c   :  { %v9288_v6 = vsel %vm1761_vm9, %v9271_v34, %v9273_v20  ;;  %v9290_v2 = vsel %vm1761_vm9, %v9275_v42, %v9277_v35 }
 0x46d   :  { %9308 = vmatpush1.msra.mxu0 %v9288_v6 }
 0x46e   :  { %11546 = vmatmul.mubr.msk.f32.vlgmr.msra.gmra.mrb[0].mxu0 %vm249_vm5, %v11545_v21 }
 0x46f   :  { %v9281_v7 = vpop.permute.xlu0 %9280  ;;  %v9279_v63 = vpop.permute.xlu1 %9278  ;;  %9513 = vmatprep.mubr.f32.mxu0 %v14750_v31 }
 0x470   :  { %v9291_v25 = vsel %vm1761_vm9, %v9277_v35, %v9279_v63  ;;  %v9292_v55 = vsel %vm1761_vm9, %v9279_v63, %v9281_v7 }
 0x471   :  { %9378 = vmatprep.subr.mxu1 %v9291_v25 }
 0x472   :  { %9379 = vmatpush1.msra.mxu1 %v9290_v2 }
 0x473   :  { %v9285_v24 = vpop.permute.xlu0 %9284  ;;  %v9283_v59 = vpop.permute.xlu1 %9282  ;;  %11547 = vmatmul.mubr.msk.f32.vlgmr.msra.gmra.mrb[0].mxu1 %vm249_vm5, %v11545_v21 }
 0x474   :  { %v9293_v30 = vsel %vm1761_vm9, %v9281_v7, %v9283_v59  ;;  %9584 = vmatprep.mubr.f32.mxu1 %v14750_v31  ;;  %v9294_v39 = vsel %vm1761_vm9, %v9283_v59, %v9285_v24 }
 0x475   :  { %9449 = vmatprep.subr.mxu0 %v9293_v30 }
 0x476   :  { %9450 = vmatpush1.msra.mxu0 %v9292_v55  ;;  %v11573_v55 = vld [vmem:[%s14731_s2 + $0xd0] sm:$0xff] }
 0x477   :  { %v9691_v16 = vpop.permute.xlu0 %9690  ;;  %v9287_v40 = vpop.permute.xlu1 %9286  ;;  %11548 = vmatmul.mubr.msk.f32.vlgmr.msra.gmra.mrb[2].mxu0 %vm249_vm5, %v11545_v21 }
 0x478   :  { %v9295_v43 = vsel %vm1761_vm9, %v9285_v24, %v9287_v40  ;;  %9789 = vmatprep.mubr.f32.mxu0 %v14750_v31 }
 0x479   :  { %9520 = vmatprep.subr.mxu1 %v9295_v43 }
 0x47a   :  { %9521 = vmatpush1.msra.mxu1 %v9294_v39 }
 0x47b   :  { %v9689_v5 = vpop.permute.xlu0 %9688  ;;  %v9693_v37 = vpop.permute.xlu1 %9692  ;;  %11549 = vmatmul.mubr.msk.f32.vlgmr.msra.gmra.mrb[2].mxu1 %vm249_vm5, %v11545_v21 }
 0x47c   :  { %v9706_v26 = vsel %vm1341_vm3, %v9689_v5, %v9691_v16  ;;  %v9707_v15 = vsel %vm1341_vm3, %v9691_v16, %v9693_v37  ;;  %9860 = vmatprep.mubr.f32.mxu1 %v14750_v31 }
 0x47d   :  { %9725 = vmatprep.subr.mxu0 %v9707_v15 }
 0x47e   :  { %9726 = vmatpush1.msra.mxu0 %v9706_v26 }
 0x47f   :  { %v9697_v0 = vpop.permute.xlu0 %9696  ;;  %v9695_v22 = vpop.permute.xlu1 %9694  ;;  %11553 = vmatmul.mubr.msk.f32.vlgmr.msra.gmra.mrb[0].mxu0 %vm249_vm5, %v11552_v9 }
 0x480   :  { %v9708_v18 = vsel %vm1341_vm3, %v9693_v37, %v9695_v22  ;;  %v9709_v19 = vsel %vm1341_vm3, %v9695_v22, %v9697_v0  ;;  %9931 = vmatprep.mubr.f32.mxu0 %v14750_v31 }
 0x481   :  { %9796 = vmatprep.subr.mxu1 %v9709_v19 }
 0x482   :  { %9797 = vmatpush1.msra.mxu1 %v9708_v18 }
 0x483   :  { %v9701_v50 = vpop.permute.xlu0 %9700  ;;  %v9699_v56 = vpop.permute.xlu1 %9698  ;;  %11554 = vmatmul.mubr.msk.f32.vlgmr.msra.gmra.mrb[0].mxu1 %vm249_vm5, %v11552_v9 }
 0x484   :  { %v9710_v41 = vsel %vm1341_vm3, %v9697_v0, %v9699_v56  ;;  %v9711_v4 = vsel %vm1341_vm3, %v9699_v56, %v9701_v50  ;;  %10002 = vmatprep.mubr.f32.mxu1 %v14750_v31 }
 0x485   :  { %9867 = vmatprep.subr.mxu0 %v9711_v4 }
 0x486   :  { %9868 = vmatpush1.msra.mxu0 %v9710_v41 }
 0x487   :  { %v9705_v44 = vpop.permute.xlu0 %9704  ;;  %v9703_v54 = vpop.permute.xlu1 %9702  ;;  %11555 = vmatmul.mubr.msk.f32.vlgmr.msra.gmra.mrb[2].mxu0 %vm249_vm5, %v11552_v9 }
 0x488   :  { %v9712_v47 = vsel %vm1341_vm3, %v9701_v50, %v9703_v54  ;;  %v9713_v17 = vsel %vm1341_vm3, %v9703_v54, %v9705_v44  ;;  %10207 = vmatprep.mubr.f32.mxu0 %v14750_v31 }
 0x489   :  { %9938 = vmatprep.subr.mxu1 %v9713_v17 }
 0x48a   :  { %9939 = vmatpush1.msra.mxu1 %v9712_v47 }
 0x48b   :  { %v10111_v58 = vpop.permute.xlu0 %10110  ;;  %v10109_v57 = vpop.permute.xlu1 %10108  ;;  %11556 = vmatmul.mubr.msk.f32.vlgmr.msra.gmra.mrb[2].mxu1 %vm249_vm5, %v11552_v9 }
 0x48c   :  { %v10125_v3 = vsel %vm921_vm2, %v10109_v57, %v10111_v58  ;;  %10278 = vmatprep.mubr.f32.mxu1 %v14750_v31 }
 0x48d   :  { %10143 = vmatprep.subr.mxu0 %v10125_v3 }
 0x48f   :  { %v10113_v52 = vpop.permute.xlu0 %10112  ;;  %v10107_v51 = vpop.permute.xlu1 %10106 }
 0x490   :  { %v10124_v8 = vsel %vm921_vm2, %v10107_v51, %v10109_v57  ;;  %v10126_v10 = vsel %vm921_vm2, %v10111_v58, %v10113_v52 }
 0x491   :  { %10144 = vmatpush1.msra.mxu0 %v10124_v8 }
 0x492   :  { %11560 = vmatmul.mubr.msk.f32.vlgmr.msra.gmra.mrb[0].mxu0 %vm249_vm5, %v11559_v12 }
 0x493   :  { %v10117_v38 = vpop.permute.xlu0 %10116  ;;  %v10115_v32 = vpop.permute.xlu1 %10114  ;;  %10349 = vmatprep.mubr.f32.mxu0 %v14750_v31 }
 0x494   :  { %v10127_v53 = vsel %vm921_vm2, %v10113_v52, %v10115_v32  ;;  %v10128_v28 = vsel %vm921_vm2, %v10115_v32, %v10117_v38 }
 0x495   :  { %10214 = vmatprep.subr.mxu1 %v10127_v53 }
 0x496   :  { %10215 = vmatpush1.msra.mxu1 %v10126_v10 }
 0x497   :  { %v10121_v46 = vpop.permute.xlu0 %10120  ;;  %v10119_v33 = vpop.permute.xlu1 %10118  ;;  %11561 = vmatmul.mubr.msk.f32.vlgmr.msra.gmra.mrb[0].mxu1 %vm249_vm5, %v11559_v12 }
 0x498   :  { %v10129_v23 = vsel %vm921_vm2, %v10117_v38, %v10119_v33  ;;  %10420 = vmatprep.mubr.f32.mxu1 %v14750_v31  ;;  %v10130_v49 = vsel %vm921_vm2, %v10119_v33, %v10121_v46 }
 0x499   :  { %10285 = vmatprep.subr.mxu0 %v10129_v23 }
 0x49a   :  { %10286 = vmatpush1.msra.mxu0 %v10128_v28 }
 0x49b   :  { %v10527_v13 = vpop.permute.xlu0 %10526  ;;  %v10123_v45 = vpop.permute.xlu1 %10122  ;;  %11562 = vmatmul.mubr.msk.f32.vlgmr.msra.gmra.mrb[2].mxu0 %vm249_vm5, %v11559_v12 }
 0x49c   :  { %v10131_v48 = vsel %vm921_vm2, %v10121_v46, %v10123_v45  ;;  %10625 = vmatprep.mubr.f32.mxu0 %v14750_v31 }
 0x49d   :  { %10356 = vmatprep.subr.mxu1 %v10131_v48 }
 0x49e   :  { %10357 = vmatpush1.msra.mxu1 %v10130_v49 }
 0x49f   :  { %v10525_v11 = vpop.permute.xlu0 %10524  ;;  %v10529_v60 = vpop.permute.xlu1 %10528  ;;  %11563 = vmatmul.mubr.msk.f32.vlgmr.msra.gmra.mrb[2].mxu1 %vm249_vm5, %v11559_v12 }
 0x4a0   :  { %v10542_v27 = vsel %vm177_vm0, %v10525_v11, %v10527_v13  ;;  %v10543_v36 = vsel %vm177_vm0, %v10527_v13, %v10529_v60  ;;  %10696 = vmatprep.mubr.f32.mxu1 %v14750_v31 }
 0x4a1   :  { %10561 = vmatprep.subr.mxu0 %v10543_v36 }
 0x4a2   :  { %10562 = vmatpush1.msra.mxu0 %v10542_v27 }
 0x4a3   :  { %v10533_v14 = vpop.permute.xlu0 %10532  ;;  %v10531_v61 = vpop.permute.xlu1 %10530  ;;  %11567 = vmatmul.mubr.msk.f32.vlgmr.msra.gmra.mrb[0].mxu0 %vm249_vm5, %v11566_v1 }
 0x4a4   :  { %v10544_v62 = vsel %vm177_vm0, %v10529_v60, %v10531_v61  ;;  %v10545_v42 = vsel %vm177_vm0, %v10531_v61, %v10533_v14  ;;  %10767 = vmatprep.mubr.f32.mxu0 %v14750_v31 }
 0x4a5   :  { %10632 = vmatprep.subr.mxu1 %v10545_v42 }
 0x4a6   :  { %10633 = vmatpush1.msra.mxu1 %v10544_v62 }
 0x4a7   :  { %v10537_v20 = vpop.permute.xlu0 %10536  ;;  %v10535_v29 = vpop.permute.xlu1 %10534  ;;  %11568 = vmatmul.mubr.msk.f32.vlgmr.msra.gmra.mrb[0].mxu1 %vm249_vm5, %v11566_v1 }
 0x4a8   :  { %v10546_v35 = vsel %vm177_vm0, %v10533_v14, %v10535_v29  ;;  %v10547_v34 = vsel %vm177_vm0, %v10535_v29, %v10537_v20  ;;  %10838 = vmatprep.mubr.f32.mxu1 %v14750_v31 }
 0x4a9   :  { %10703 = vmatprep.subr.mxu0 %v10547_v34 }
 0x4aa   :  { %10704 = vmatpush1.msra.mxu0 %v10546_v35 }
 0x4ab   :  { %v10541_v21 = vpop.permute.xlu0 %10540  ;;  %v10539_v6 = vpop.permute.xlu1 %10538  ;;  %11569 = vmatmul.mubr.msk.f32.vlgmr.msra.gmra.mrb[2].mxu0 %vm249_vm5, %v11566_v1 }
 0x4ac   :  { %v10548_v7 = vsel %vm177_vm0, %v10537_v20, %v10539_v6  ;;  %v10549_v63 = vsel %vm177_vm0, %v10539_v6, %v10541_v21  ;;  %11043 = vmatprep.mubr.f32.mxu0 %v14750_v31 }
 0x4ad   :  { %10774 = vmatprep.subr.mxu1 %v10549_v63 }
 0x4ae   :  { %10775 = vmatpush1.msra.mxu1 %v10548_v7 }
 0x4af   :  { %v10947_v25 = vpop.permute.xlu0 %10946  ;;  %v10945_v2 = vpop.permute.xlu1 %10944  ;;  %11570 = vmatmul.mubr.msk.f32.vlgmr.msra.gmra.mrb[2].mxu1 %vm249_vm5, %v11566_v1 }
 0x4b0   :  { %v10961_v24 = vsel %vm97_vm1, %v10945_v2, %v10947_v25  ;;  %11114 = vmatprep.mubr.f32.mxu1 %v14750_v31 }
 0x4b1   :  { %10979 = vmatprep.subr.mxu0 %v10961_v24 }
 0x4b3   :  { %v10949_v59 = vpop.permute.xlu0 %10948  ;;  %v10943_v30 = vpop.permute.xlu1 %10942 }
 0x4b4   :  { %v10960_v16 = vsel %vm97_vm1, %v10943_v30, %v10945_v2  ;;  %v10962_v5 = vsel %vm97_vm1, %v10947_v25, %v10949_v59 }
 0x4b5   :  { %10980 = vmatpush1.msra.mxu0 %v10960_v16 }
 0x4b6   :  { %11574 = vmatmul.mubr.msk.f32.vlgmr.msra.gmra.mrb[0].mxu0 %vm249_vm5, %v11573_v55 }
 0x4b7   :  { %v10951_v40 = vpop.permute.xlu1 %10950  ;;  %11185 = vmatprep.mubr.f32.mxu0 %v14750_v31  ;;  %v10953_v43 = vpop.permute.xlu0 %10952 }
 0x4b8   :  { %v10963_v39 = vsel %vm97_vm1, %v10949_v59, %v10951_v40  ;;  %v10964_v15 = vsel %vm97_vm1, %v10951_v40, %v10953_v43  ;;  %v11339_v59 = vld [vmem:[%s14734_s5] sm:$0xff] }
 0x4b9   :  { %11050 = vmatprep.subr.mxu1 %v10963_v39  ;;  %v11322_v40 = vld [vmem:[%s14733_s4] sm:$0xff]  ;;  %s11914_s4 = smov [#allocation5]  }
 0x4ba   :  { %11051 = vmatpush1.msra.mxu1 %v10962_v5  ;;  %s11383_s5 = sshll.u32 %s11914_s4, 4  ;;  %s11384_s5 = int_to_ptr.vmem [resolvable:$true] %s11383_s5 }
 0x4bb   :  { %11575 = vmatmul.mubr.msk.f32.vlgmr.msra.gmra.mrb[0].mxu1 %vm249_vm5, %v11573_v55  ;;  %v10955_v37 = vpop.permute.xlu1 %10954  ;;  %v10957_v9 = vpop.permute.xlu0 %10956  ;;  %s11868_s28 = scalar_lea.vmem %s11384_s5, 1024  ;;  %p11873_p9 = scmp.lt.s32.totalorder %s11384_s5, %s11384_s5 }
 0x4bc   :  { %v10965_v26 = vsel %vm97_vm1, %v10953_v43, %v10955_v37  ;;  %11256 = vmatprep.mubr.f32.mxu1 %v14750_v31  ;;  %v10966_v18 = vsel %vm97_vm1, %v10955_v37, %v10957_v9  ;;  %p11869_p8 = scmp.ne.s32.totalorder %s11384_s5, %s11868_s28  ;;  %p11874_p10 = scmp.lt.s32.totalorder %s11868_s28, %s11868_s28 }
 0x4bd   :  { %11121 = vmatprep.subr.mxu0 %v10965_v26 }
 0x4be   :  { %11122 = vmatpush1.msra.mxu0 %v10964_v15  ;;  %p11875_p11 = por %p11874_p10, %p11873_p9 }
 0x4bf   :  { %11576 = vmatmul.mubr.msk.f32.vlgmr.msra.gmra.mrb[2].mxu0 %vm249_vm5, %v11573_v55  ;;  %v10959_v0 = vpop.permute.xlu1 %10958 }
 0x4c0   :  { %v10967_v22 = vsel %vm97_vm1, %v10957_v9, %v10959_v0  ;;  %p11876_p12 = pnand %p11875_p11, %p11869_p8 }
 0x4c1   :  { %11192 = vmatprep.subr.mxu1 %v10967_v22 }
 0x4c2   :  { %11193 = vmatpush1.msra.mxu1 %v10966_v18 }
 0x4c3   :  { %11577 = vmatmul.mubr.msk.f32.vlgmr.msra.gmra.mrb[2].mxu1 %vm249_vm5, %v11573_v55 }
 0x4cd   :  { %v11275_v19 = vpop.permute.xlu0 %11274 }
 0x589   :  { %v11045_v50 = vpop.f32.mrb[0].mxu0 }
 0x58a   :  { %v11047_v56 = vpop.f32.mrb[1].mxu0  ;;  %v11277_v31 = vadd.f32 %v11275_v19, %v11045_v50 }
 0x58b   :  { %v11278_v41 = vadd.f32 %v11275_v19, %v11047_v56 }
 0x58d   :  { %v11285_v44 = vadd.f32 %v11278_v41, %v11277_v31 }
 0x58e   :  { %v11116_v4 = vpop.f32.mrb[0].mxu1 }
 0x58f   :  { %v11279_v54 = vadd.f32 %v11275_v19, %v11116_v4  ;;  %v11118_v47 = vpop.f32.mrb[1].mxu1 }
 0x590   :  { %v11280_v17 = vadd.f32 %v11275_v19, %v11118_v47 }
 0x591   :  { %v11286_v58 = vadd.f32 %v11285_v44, %v11279_v54 }
 0x592   :  { %v11187_v57 = vpop.f32.mrb[2].mxu0 }
 0x593   :  { %v11287_v3 = vadd.f32 %v11286_v58, %v11280_v17  ;;  %v11281_v52 = vadd.f32 %v11275_v19, %v11187_v57  ;;  %v11189_v51 = vpop.f32.mrb[3].mxu0  ;;  %v11838_v58 = vld [vmem:[#allocation2 + $0x8] sm:$0xff] }
 0x594   :  { %v11282_v12 = vadd.f32 %v11275_v19, %v11189_v51  ;;  %v11840_v51 = vld [vmem:[#allocation2 + $0x18] sm:$0xff] }
 0x595   :  { %v11288_v8 = vadd.f32 %v11287_v3, %v11281_v52  ;;  %v11839_v3 = vld [vmem:[#allocation2 + $0x10] sm:$0xff] }
 0x596   :  { %v11258_v38 = vpop.f32.mrb[2].mxu1 }
 0x597   :  { %v11289_v32 = vadd.f32 %v11288_v8, %v11282_v12  ;;  %v11283_v53 = vadd.f32 %v11275_v19, %v11258_v38  ;;  %v11260_v10 = vpop.f32.mrb[3].mxu1  ;;  %v11841_v8 = vld [vmem:[#allocation2 + $0x20] sm:$0xff] }
 0x598   :  { %v11284_v46 = vadd.f32 %v11275_v19, %v11260_v10  ;;  %v11843_v10 = vld [vmem:[#allocation2 + $0x30] sm:$0xff] }
 0x599   :  { %v11290_v33 = vadd.f32 %v11289_v32, %v11283_v53  ;;  %v11842_v32 = vld [vmem:[#allocation2 + $0x28] sm:$0xff] }
 0x59b   :  { %v11291_v23 = vadd.f32 %v11290_v33, %v11284_v46  ;;  %v11844_v33 = vld [vmem:[#allocation2 + $0x38] sm:$0xff] }
 0x59d   :  { %11292 = vadd.xlane.f32.xlu1 %v11291_v23 }
 0x62a   :  { %v11293_v28 = vpop.xlane.xlu1 %11292 }
 0x62b   :  { %v11295_v13 = vmul.f32 0.0009765625, %v11293_v28  ;;  %v11845_v28 = vld [vmem:[#allocation2 + $0x40] sm:$0xff] }
 0x62d   :  { %v11296_v45 = vsub.f32 %v11277_v31, %v11295_v13  ;;  %v11297_v48 = vsub.f32 %v11278_v41, %v11295_v13  ;;  %v11298_v49 = vsub.f32 %v11279_v54, %v11295_v13  ;;  %v11299_v11 = vsub.f32 %v11280_v17, %v11295_v13 }
 0x62e   :  { %v11300_v36 = vsub.f32 %v11281_v52, %v11295_v13  ;;  %v11301_v61 = vsub.f32 %v11282_v12, %v11295_v13  ;;  %v11302_v20 = vsub.f32 %v11283_v53, %v11295_v13  ;;  %v11303_v34 = vsub.f32 %v11284_v46, %v11295_v13 }
 0x62f   :  { %v11304_v60 = vmul.f32 %v11296_v45, %v11296_v45  ;;  %v11305_v27 = vmul.f32 %v11297_v48, %v11297_v48  ;;  %v11306_v1 = vmul.f32 %v11298_v49, %v11298_v49  ;;  %v11307_v62 = vmul.f32 %v11299_v11, %v11299_v11 }
 0x630   :  { %v11308_v29 = vmul.f32 %v11300_v36, %v11300_v36  ;;  %v11309_v21 = vmul.f32 %v11301_v61, %v11301_v61  ;;  %v11310_v7 = vmul.f32 %v11302_v20, %v11302_v20  ;;  %v11311_v25 = vmul.f32 %v11303_v34, %v11303_v34 }
 0x631   :  { %v11312_v14 = vadd.f32 %v11305_v27, %v11304_v60 }
 0x633   :  { %v11313_v42 = vadd.f32 %v11312_v14, %v11306_v1 }
 0x635   :  { %v11314_v35 = vadd.f32 %v11313_v42, %v11307_v62 }
 0x637   :  { %v11315_v6 = vadd.f32 %v11314_v35, %v11308_v29 }
 0x639   :  { %v11316_v63 = vadd.f32 %v11315_v6, %v11309_v21 }
 0x63b   :  { %v11317_v2 = vadd.f32 %v11316_v63, %v11310_v7 }
 0x63d   :  { %v11318_v24 = vadd.f32 %v11317_v2, %v11311_v25 }
 0x63f   :  { %11319 = vadd.xlane.f32.xlu0 %v11318_v24 }
 0x655   :  { %11342 = vperm.xlu0 %11807, %v11339_v59  }
 0x6cc   :  { %v11320_v30 = vpop.xlane.xlu0 %11319 }
 0x6cd   :  { %v11321_v55 = vmul.f32 0.0009765625, %v11320_v30 }
 0x6cf   :  { %v11323_v16 = vadd.f32 1e-05, %v11321_v55 }
 0x6d1   :  { %11809 = vrsqrt.f32 %v11323_v16 }
 0x6d4   :  { %v11343_v0 = vpop.permute.xlu0 %11342 }
 0x6db   :  { %v11810_v43 = vpop.eup %11809 }
 0x6dc   :  { %v11325_v39 = vmul.f32 %v11810_v43, %v11322_v40 }
 0x6de   :  { %11328 = vperm.xlu1 %11808, %v11325_v39  }
 0x75d   :  { %v11329_v5 = vpop.permute.xlu1 %11328 }
 0x75e   :  { %v11331_v37 = vmul.f32 %v11329_v5, %v11296_v45  ;;  %v11332_v26 = vmul.f32 %v11329_v5, %v11297_v48  ;;  %v11333_v15 = vmul.f32 %v11329_v5, %v11298_v49  ;;  %v11334_v9 = vmul.f32 %v11329_v5, %v11299_v11 }
 0x75f   :  { %v11335_v22 = vmul.f32 %v11329_v5, %v11300_v36  ;;  %v11336_v18 = vmul.f32 %v11329_v5, %v11301_v61  ;;  %v11337_v19 = vmul.f32 %v11329_v5, %v11302_v20  ;;  %v11338_v50 = vmul.f32 %v11329_v5, %v11303_v34 }
 0x760   :  { %v11345_v56 = vadd.f32 %v11343_v0, %v11331_v37  ;;  %v11346_v31 = vadd.f32 %v11343_v0, %v11332_v26  ;;  %v11347_v41 = vadd.f32 %v11343_v0, %v11333_v15  ;;  %v11348_v4 = vadd.f32 %v11343_v0, %v11334_v9 }
 0x761   :  { %v11349_v44 = vadd.f32 %v11343_v0, %v11335_v22  ;;  %v11350_v54 = vadd.f32 %v11343_v0, %v11336_v18  ;;  %v11351_v47 = vadd.f32 %v11343_v0, %v11337_v19  ;;  %v11352_v17 = vadd.f32 %v11343_v0, %v11338_v50 }
 0x762   :  { %v11353_v57 = vadd.f32 %v11838_v58, %v11345_v56  ;;  %v11354_v52 = vadd.f32 %v11839_v3, %v11346_v31  ;;  %v11355_v12 = vadd.f32 %v11840_v51, %v11347_v41  ;;  %v11356_v38 = vadd.f32 %v11841_v8, %v11348_v4 }
 0x763   :  { %v11357_v53 = vadd.f32 %v11842_v32, %v11349_v44  ;;  %v11358_v46 = vadd.f32 %v11843_v10, %v11350_v54  ;;  %v11359_v23 = vadd.f32 %v11844_v33, %v11351_v47  ;;  %v11360_v13 = vadd.f32 %v11845_v28, %v11352_v17 }
 0x764   :  { %v11361_v45 = vmax.f32 %v11353_v57, 0.0  ;;  %v11362_v48 = vmax.f32 %v11354_v52, 0.0  ;;  %v11363_v49 = vmax.f32 %v11355_v12, 0.0  ;;  %v11364_v11 = vmax.f32 %v11356_v38, 0.0 }
 0x765   :  { %v11365_v60 = vmax.f32 %v11357_v53, 0.0  ;;  %v11366_v27 = vmax.f32 %v11358_v46, 0.0  ;;  %v11367_v36 = vmax.f32 %v11359_v23, 0.0  ;;  %v11368_v1 = vmax.f32 %v11360_v13, 0.0 }
 0x766   :  { %11369 = vst [vmem:[#allocation5] sm:$0xff] %v11361_v45  ;;  %11370 = vst [vmem:[#allocation5 + $0x8] sm:$0xff] %v11362_v48 }
 0x767   :  { %11371 = vst [vmem:[#allocation5 + $0x10] sm:$0xff] %v11363_v49  ;;  %11372 = vst [vmem:[#allocation5 + $0x18] sm:$0xff] %v11364_v11 }
 0x768   :  { %11373 = vst [vmem:[#allocation5 + $0x20] sm:$0xff] %v11365_v60  ;;  %11374 = vst [vmem:[#allocation5 + $0x28] sm:$0xff] %v11366_v27 }
 0x769   :  { %11375 = vst [vmem:[#allocation5 + $0x30] sm:$0xff] %v11367_v36  ;;  %11376 = vst [vmem:[#allocation5 + $0x38] sm:$0xff] %v11368_v1 }
 0x76a   :  { %11879 = shalt.err (!%p11876_p12)
}
 0x76b   :  { %s11880_s30 = scalar_lea.hbm %s14735_s6, 1024 }
 0x76c   :  { %p11881_p13 = scmp.ne.s32.totalorder %s14735_s6, %s11880_s30  ;;  %p11884_p0 = scmp.lt.u32.totalorder %s11880_s30, %s14735_s6 }
 0x76e   :  { %p11886_p1 = pnand %p11884_p0, %p11881_p13 }
 0x770   :  { %11889 = shalt.err (!%p11886_p1)
}
 0x771   :  { %11386 = dma.vmem_to_hbm [thread:$0]  %s11384_s5, 1024, %s14735_s6, [#allocation4]  }
 0x772   :  { %11892 = dma.done.wait [#allocation4], 1024  }
 0x773   :  { %11893 = vsyncadd [#allocation4], 4294966272 }
 0x774   :  { %11390 = vsyncpa [#allocation3], 1 }
 0x775   :  { %11391 = vsyncpa [#allocation4], 1 }

</bundles_post_ra>
